<compile_context>
chip_gen: v6e
topology: v6e:2x2x1
jax: 0.10.0
libtpu: 0.0.40
codegen_flags: <defaults>
</compile_context>

<pallas_src>
import functools

import jax
import jax.numpy as jnp
from jax.experimental import pallas as pl
from jax.experimental.pallas import tpu as pltpu


# ----------------------------------------------------------------------------
# In-kernel LSTM cell helpers
# ----------------------------------------------------------------------------
def _gates_to_hc(gates, c, H):
    """gates: (BB, 4H) pre-activations with g-columns pre-scaled by 2.

    Single sigmoid over the full vreg; tanh(g) recovered as 2*sigmoid(2g)-1.
    PyTorch gate order: i, f, g, o.
    """
    s = jax.nn.sigmoid(gates)                 # one EUP pass over (BB, 4H)
    i_g = s[:, 0 * H:1 * H]
    f_g = s[:, 1 * H:2 * H]
    g_g = 2.0 * s[:, 2 * H:3 * H] - 1.0       # = tanh(raw g), cheap VPU fixup
    o_g = s[:, 3 * H:4 * H]
    c_new = f_g * c + i_g * g_g
    h_new = o_g * jnp.tanh(c_new)             # one more EUP pass
    return h_new, c_new


def _cell_hoisted(z_in, h, c, whh, H):
    """LSTM cell whose input projection (incl. bias) was precomputed: z_in."""
    gates = z_in + jnp.dot(h.astype(jnp.bfloat16), whh,
                           preferred_element_type=jnp.float32)
    return _gates_to_hc(gates, c, H)


def _cell_fused(x_in, h, c, w_cat, b, H):
    """LSTM cell with [W_ih; W_hh] fused into one dot on concat([x, h])."""
    xh = jnp.concatenate([x_in, h], axis=-1).astype(jnp.bfloat16)
    gates = jnp.dot(xh, w_cat, preferred_element_type=jnp.float32) + b
    return _gates_to_hc(gates, c, H)


# ----------------------------------------------------------------------------
# Fused Pallas kernel
# ----------------------------------------------------------------------------
def fused_lstm_ae_kernel(
    x_ref,                                   # (T, BB, F)  f32, time-major
    e_wih0_ref, e_whh0_ref, e_b0_ref,        # (F,4H) bf16, (H,4H) bf16, (1,4H) f32
    e_w1_ref, e_b1_ref,                      # (2H,4H) bf16 fused, (1,4H) f32
    wb_ref, bb_ref,                          # (H,H/2) bf16, (1,H/2) f32
    we_ref, be_ref,                          # (H/2,H) bf16, (1,H) f32
    d_wih0_ref, d_whh0_ref, d_b0_ref,        # (H,4H) bf16, (H,4H) bf16, (1,4H) f32
    d_w1_ref, d_b1_ref,                      # (2H,4H) bf16 fused, (1,4H) f32
    wo_bd_ref, bo_ref,                       # (T*H,T*F) bf16 block-diag, (1,T*F) f32
    out_ref,                                 # (BB, T*F) f32 lane-dense slab
    *, seq_len, hidden_dim,
):
    T = seq_len
    H = hidden_dim
    BB = out_ref.shape[0]
    F = x_ref.shape[2]

    # Hoist recurrent weight loads / bias broadcasts out of the unrolled loops
    # (JAX does not CSE broadcast_in_dim).
    e_whh0 = e_whh0_ref[...]
    e_w1 = e_w1_ref[...]
    d_whh0 = d_whh0_ref[...]
    d_w1 = d_w1_ref[...]
    e_b1 = jnp.broadcast_to(e_b1_ref[...], (BB, 4 * H))
    d_b1 = jnp.broadcast_to(d_b1_ref[...], (BB, 4 * H))

    # --- encoder layer-0 input projections: one dot, off the critical path --
    x_flat = x_ref[...].reshape(T * BB, F).astype(jnp.bfloat16)
    xp = jnp.dot(x_flat, e_wih0_ref[...], preferred_element_type=jnp.float32)
    xp = xp + jnp.broadcast_to(e_b0_ref[...], (T * BB, 4 * H))

    zeros = jnp.zeros((BB, H), jnp.float32)

    # --- encoder: 2 stacked LSTM layers advanced together per timestep ------
    h1, c1, h2, c2 = zeros, zeros, zeros, zeros
    for t in range(T):
        h1, c1 = _cell_hoisted(xp[t * BB:(t + 1) * BB, :], h1, c1, e_whh0, H)
        h2, c2 = _cell_fused(h1, h2, c2, e_w1, e_b1, H)

    # --- bottleneck -> ReLU -> expand ---------------------------------------
    bn = jnp.dot(h2.astype(jnp.bfloat16), wb_ref[...],
                 preferred_element_type=jnp.float32)
    bn = jnp.maximum(bn + jnp.broadcast_to(bb_ref[...], bn.shape), 0.0)
    expanded = jnp.dot(bn.astype(jnp.bfloat16), we_ref[...],
                       preferred_element_type=jnp.float32)
    expanded = expanded + jnp.broadcast_to(be_ref[...], expanded.shape)

    # --- decoder layer-0 input projection is loop-invariant: compute once ---
    z0 = jnp.dot(expanded.astype(jnp.bfloat16), d_wih0_ref[...],
                 preferred_element_type=jnp.float32)
    z0 = z0 + jnp.broadcast_to(d_b0_ref[...], (BB, 4 * H))

    # --- decoder: same `expanded` fed every step; collect hiddens -----------
    dh1, dc1, dh2, dc2 = zeros, zeros, zeros, zeros
    hs = []
    for t in range(T):
        dh1, dc1 = _cell_hoisted(z0, dh1, dc1, d_whh0, H)
        dh2, dc2 = _cell_fused(dh1, dh2, dc2, d_w1, d_b1, H)
        hs.append(dh2)

    # --- deferred output projection: one block-diagonal dot, lane-dense store
    hcat = jnp.concatenate(hs, axis=-1).astype(jnp.bfloat16)      # (BB, T*H)
    out = jnp.dot(hcat, wo_bd_ref[...], preferred_element_type=jnp.float32)
    out = out + jnp.broadcast_to(bo_ref[...], out.shape)
    out_ref[...] = out.astype(out_ref.dtype)


# ----------------------------------------------------------------------------
# Wrapper (weight prep + pallas_call)
# ----------------------------------------------------------------------------
def _scale_g_cols(arr, H):
    """Scale the g-gate columns (indices 2H:3H of the last axis) by 2."""
    scale = jnp.concatenate([
        jnp.ones((2 * H,), arr.dtype),
        jnp.full((H,), 2.0, arr.dtype),
        jnp.ones((H,), arr.dtype),
    ])
    return arr * scale


def lstm_autoencoder_forward(x, params, *, batch_block=8):
    """x: (B, T, input_dim) float32 (batch_first, like the PyTorch module)."""
    B, T, input_dim = x.shape
    e0, e1 = params["encoder"]
    d0, d1 = params["decoder"]
    wb_t, bb = params["bottleneck"]
    we_t, be = params["expand"]
    wo_t, bo = params["output"]
    H = e0[1].shape[0]

    BB = min(batch_block, B)
    assert B % BB == 0, "batch must be a multiple of the batch block"
    n_blocks = B // BB

    def prep_layer(wih_T, whh_T, b, fuse):
        wih_T = _scale_g_cols(wih_T, H).astype(jnp.bfloat16)
        whh_T = _scale_g_cols(whh_T, H).astype(jnp.bfloat16)
        b2 = _scale_g_cols(b, H).reshape(1, -1).astype(jnp.float32)
        if fuse:
            return jnp.concatenate([wih_T, whh_T], axis=0), b2
        return wih_T, whh_T, b2

    e_wih0, e_whh0, e_b0 = prep_layer(*e0, fuse=False)
    e_w1, e_b1 = prep_layer(*e1, fuse=True)
    d_wih0, d_whh0, d_b0 = prep_layer(*d0, fuse=False)
    d_w1, d_b1 = prep_layer(*d1, fuse=True)

    wb = wb_t.astype(jnp.bfloat16)
    bb2 = bb.reshape(1, -1).astype(jnp.float32)
    we = we_t.astype(jnp.bfloat16)
    be2 = be.reshape(1, -1).astype(jnp.float32)

    # Block-diagonal output weight: out[:, t*F:(t+1)*F] = dh2_t @ wo_t + bo.
    wo_bd = jnp.kron(jnp.eye(T, dtype=jnp.float32), wo_t).astype(jnp.bfloat16)
    bo_t = jnp.tile(bo.reshape(1, -1), (1, T)).astype(jnp.float32)

    x_tbf = jnp.transpose(x, (1, 0, 2))  # (T, B, F): time-major for the kernel

    inputs = [
        x_tbf,
        e_wih0, e_whh0, e_b0,
        e_w1, e_b1,
        wb, bb2, we, be2,
        d_wih0, d_whh0, d_b0,
        d_w1, d_b1,
        wo_bd, bo_t,
    ]

    def rep_spec(a):
        nd = a.ndim
        return pl.BlockSpec(a.shape, lambda i, _nd=nd: (0,) * _nd)

    in_specs = [pl.BlockSpec((T, BB, input_dim), lambda i: (0, i, 0))]
    in_specs += [rep_spec(a) for a in inputs[1:]]

    out_flat = pl.pallas_call(
        functools.partial(fused_lstm_ae_kernel, seq_len=T, hidden_dim=H),
        out_shape=jax.ShapeDtypeStruct((B, T * input_dim), jnp.float32),
        grid=(n_blocks,),
        in_specs=in_specs,
        out_specs=pl.BlockSpec((BB, T * input_dim), lambda i: (i, 0)),
        compiler_params=pltpu.CompilerParams(
            dimension_semantics=("parallel",)),
    )(*inputs)

    return out_flat.reshape(B, T, input_dim)


# ----------------------------------------------------------------------------
# Pure-JAX reference (f32) for correctness checking
# ----------------------------------------------------------------------------
def lstm_autoencoder_reference(x, params):
    def lstm(x_seq, layers):
        out = x_seq
        h = None
        for (wih_T, whh_T, b) in layers:
            Bn, Tn, _ = out.shape
            Hn = whh_T.shape[0]
            h = jnp.zeros((Bn, Hn), jnp.float32)
            c = jnp.zeros((Bn, Hn), jnp.float32)
            ys = []
            for t in range(Tn):
                gates = out[:, t, :] @ wih_T + h @ whh_T + b
                i = jax.nn.sigmoid(gates[:, :Hn])
                f = jax.nn.sigmoid(gates[:, Hn:2 * Hn])
                g = jnp.tanh(gates[:, 2 * Hn:3 * Hn])
                o = jax.nn.sigmoid(gates[:, 3 * Hn:])
                c = f * c + i * g
                h = o * jnp.tanh(c)
                ys.append(h)
            out = jnp.stack(ys, axis=1)
        return out, h

    _, h_enc = lstm(x, params["encoder"])
    wb_t, bb = params["bottleneck"]
    we_t, be = params["expand"]
    wo_t, bo = params["output"]
    bn = jnp.maximum(h_enc @ wb_t + bb, 0.0)
    exp = bn @ we_t + be
    Bn, Tn, _ = x.shape
    dec_in = jnp.broadcast_to(exp[:, None, :], (Bn, Tn, exp.shape[-1]))
    dec_out, _ = lstm(dec_in, params["decoder"])
    return dec_out @ wo_t + bo


# ----------------------------------------------------------------------------
# Parameter construction (deterministic, PyTorch-like uniform init)
# ----------------------------------------------------------------------------
def _uniform(key, shape, scale):
    return jax.random.uniform(key, shape, jnp.float32, -scale, scale)


def init_lstm_params(key, num_layers, input_dim, hidden_dim):
    """Returns list of (wih_T, whh_T, b_combined) per layer."""
    scale = 1.0 / jnp.sqrt(hidden_dim)
    params = []
    for layer in range(num_layers):
        din = input_dim if layer == 0 else hidden_dim
        key, k1, k2, k3, k4 = jax.random.split(key, 5)
        wih = _uniform(k1, (4 * hidden_dim, din), scale)
        whh = _uniform(k2, (4 * hidden_dim, hidden_dim), scale)
        bih = _uniform(k3, (4 * hidden_dim,), scale)
        bhh = _uniform(k4, (4 * hidden_dim,), scale)
        params.append((wih.T, whh.T, bih + bhh))
    return params, key


def init_linear_params(key, din, dout):
    scale = 1.0 / jnp.sqrt(din)
    key, k1, k2 = jax.random.split(key, 3)
    w = _uniform(k1, (dout, din), scale)
    b = _uniform(k2, (dout,), scale)
    return (w.T, b), key


# ----------------------------------------------------------------------------
# Main
# ----------------------------------------------------------------------------
if __name__ == "__main__":
    B, T = 16, 8
    INPUT_DIM = 16
    HIDDEN_DIM = 32
    NUM_LAYERS = 2

    key = jax.random.PRNGKey(0)
    key, kx = jax.random.split(key)
    x = jax.random.normal(kx, (B, T, INPUT_DIM), jnp.float32)

    enc_params, key = init_lstm_params(key, NUM_LAYERS, INPUT_DIM, HIDDEN_DIM)
    dec_params, key = init_lstm_params(key, NUM_LAYERS, HIDDEN_DIM, HIDDEN_DIM)
    bottleneck_p, key = init_linear_params(key, HIDDEN_DIM, HIDDEN_DIM // 2)
    expand_p, key = init_linear_params(key, HIDDEN_DIM // 2, HIDDEN_DIM)
    output_p, key = init_linear_params(key, HIDDEN_DIM, INPUT_DIM)

    params = {
        "encoder": enc_params,
        "decoder": dec_params,
        "bottleneck": bottleneck_p,
        "expand": expand_p,
        "output": output_p,
    }

    out = lstm_autoencoder_forward(x, params)
    out = jax.block_until_ready(out)

    assert out.shape == (B, T, INPUT_DIM), out.shape
    assert out.dtype == jnp.float32
    assert bool(jnp.all(jnp.isfinite(out)))

    # Correctness vs f32 reference (bf16 matmul operands -> small drift).
    ref = lstm_autoencoder_reference(x, params)
    max_err = float(jnp.max(jnp.abs(out - ref)))
    assert max_err < 5e-2, f"max abs error vs reference: {max_err}"

    print("KERNEL_OK")
</pallas_src>

<mosaic_0001>
module attributes {stable_mosaic.version = 11 : i64} {
  func.func @fused_lstm_ae_kernel(%arg0: i32, %arg1: memref<8x8x16xf32, #tpu.memory_space<vmem>>, %arg2: memref<16x128xbf16, #tpu.memory_space<vmem>>, %arg3: memref<32x128xbf16, #tpu.memory_space<vmem>>, %arg4: memref<1x128xf32, #tpu.memory_space<vmem>>, %arg5: memref<64x128xbf16, #tpu.memory_space<vmem>>, %arg6: memref<1x128xf32, #tpu.memory_space<vmem>>, %arg7: memref<32x16xbf16, #tpu.memory_space<vmem>>, %arg8: memref<1x16xf32, #tpu.memory_space<vmem>>, %arg9: memref<16x32xbf16, #tpu.memory_space<vmem>>, %arg10: memref<1x32xf32, #tpu.memory_space<vmem>>, %arg11: memref<32x128xbf16, #tpu.memory_space<vmem>>, %arg12: memref<32x128xbf16, #tpu.memory_space<vmem>>, %arg13: memref<1x128xf32, #tpu.memory_space<vmem>>, %arg14: memref<64x128xbf16, #tpu.memory_space<vmem>>, %arg15: memref<1x128xf32, #tpu.memory_space<vmem>>, %arg16: memref<256x128xbf16, #tpu.memory_space<vmem>>, %arg17: memref<1x128xf32, #tpu.memory_space<vmem>>, %arg18: memref<8x128xf32, #tpu.memory_space<vmem>>) attributes {dimension_semantics = [#tpu.dimension_semantics<parallel>], iteration_bounds = array<i64: 2>, scalar_prefetch = 0 : i64, scratch_operands = 0 : i64, tpu.core_type = #tpu.core_type<tc>, window_params = [{transform_indices = @transform_0, window_bounds = array<i64: 8, 8, 16>}, {pipeline_mode = #tpu.pipeline_mode<synchronous>, transform_indices = @transform_1, window_bounds = array<i64: 16, 128>}, {pipeline_mode = #tpu.pipeline_mode<synchronous>, transform_indices = @transform_2, window_bounds = array<i64: 32, 128>}, {pipeline_mode = #tpu.pipeline_mode<synchronous>, transform_indices = @transform_3, window_bounds = array<i64: 1, 128>}, {pipeline_mode = #tpu.pipeline_mode<synchronous>, transform_indices = @transform_4, window_bounds = array<i64: 64, 128>}, {pipeline_mode = #tpu.pipeline_mode<synchronous>, transform_indices = @transform_5, window_bounds = array<i64: 1, 128>}, {pipeline_mode = #tpu.pipeline_mode<synchronous>, transform_indices = @transform_6, window_bounds = array<i64: 32, 16>}, {pipeline_mode = #tpu.pipeline_mode<synchronous>, transform_indices = @transform_7, window_bounds = array<i64: 1, 16>}, {pipeline_mode = #tpu.pipeline_mode<synchronous>, transform_indices = @transform_8, window_bounds = array<i64: 16, 32>}, {pipeline_mode = #tpu.pipeline_mode<synchronous>, transform_indices = @transform_9, window_bounds = array<i64: 1, 32>}, {pipeline_mode = #tpu.pipeline_mode<synchronous>, transform_indices = @transform_10, window_bounds = array<i64: 32, 128>}, {pipeline_mode = #tpu.pipeline_mode<synchronous>, transform_indices = @transform_11, window_bounds = array<i64: 32, 128>}, {pipeline_mode = #tpu.pipeline_mode<synchronous>, transform_indices = @transform_12, window_bounds = array<i64: 1, 128>}, {pipeline_mode = #tpu.pipeline_mode<synchronous>, transform_indices = @transform_13, window_bounds = array<i64: 64, 128>}, {pipeline_mode = #tpu.pipeline_mode<synchronous>, transform_indices = @transform_14, window_bounds = array<i64: 1, 128>}, {pipeline_mode = #tpu.pipeline_mode<synchronous>, transform_indices = @transform_15, window_bounds = array<i64: 256, 128>}, {pipeline_mode = #tpu.pipeline_mode<synchronous>, transform_indices = @transform_16, window_bounds = array<i64: 1, 128>}, {transform_indices = @transform_17, window_bounds = array<i64: 8, 128>}]} {
    %c0 = arith.constant 0 : index
    %c0_0 = arith.constant 0 : index
    %0 = vector.load %arg3[%c0, %c0_0] : memref<32x128xbf16, #tpu.memory_space<vmem>>, vector<32x128xbf16>
    %c0_1 = arith.constant 0 : index
    %c0_2 = arith.constant 0 : index
    %1 = vector.load %arg5[%c0_1, %c0_2] : memref<64x128xbf16, #tpu.memory_space<vmem>>, vector<64x128xbf16>
    %c0_3 = arith.constant 0 : index
    %c0_4 = arith.constant 0 : index
    %2 = vector.load %arg12[%c0_3, %c0_4] : memref<32x128xbf16, #tpu.memory_space<vmem>>, vector<32x128xbf16>
    %c0_5 = arith.constant 0 : index
    %c0_6 = arith.constant 0 : index
    %3 = vector.load %arg14[%c0_5, %c0_6] : memref<64x128xbf16, #tpu.memory_space<vmem>>, vector<64x128xbf16>
    %c0_7 = arith.constant 0 : index
    %c0_8 = arith.constant 0 : index
    %4 = vector.load %arg6[%c0_7, %c0_8] : memref<1x128xf32, #tpu.memory_space<vmem>>, vector<1x128xf32>
    %5 = vector.shape_cast %4 : vector<1x128xf32> to vector<1x128xf32>
    %6 = vector.broadcast %5 : vector<1x128xf32> to vector<8x128xf32>
    %c0_9 = arith.constant 0 : index
    %c0_10 = arith.constant 0 : index
    %7 = vector.load %arg15[%c0_9, %c0_10] : memref<1x128xf32, #tpu.memory_space<vmem>>, vector<1x128xf32>
    %8 = vector.shape_cast %7 : vector<1x128xf32> to vector<1x128xf32>
    %9 = vector.broadcast %8 : vector<1x128xf32> to vector<8x128xf32>
    %c0_11 = arith.constant 0 : index
    %c0_12 = arith.constant 0 : index
    %c0_13 = arith.constant 0 : index
    %10 = vector.load %arg1[%c0_11, %c0_12, %c0_13] : memref<8x8x16xf32, #tpu.memory_space<vmem>>, vector<8x8x16xf32>
    %11 = vector.shape_cast %10 : vector<8x8x16xf32> to vector<64x16xf32>
    %12 = arith.truncf %11 : vector<64x16xf32> to vector<64x16xbf16>
    %c0_14 = arith.constant 0 : index
    %c0_15 = arith.constant 0 : index
    %13 = vector.load %arg2[%c0_14, %c0_15] : memref<16x128xbf16, #tpu.memory_space<vmem>>, vector<16x128xbf16>
    %cst = arith.constant dense<0.000000e+00> : vector<64x128xf32>
    %14 = tpu.matmul %12, %13, %cst {dimension_numbers = #tpu.dot_dimension_numbers<[1], [0], [0], [1], [0, 0, 1, 1], [], []>} : vector<64x16xbf16>, vector<16x128xbf16>, vector<64x128xf32> -> vector<64x128xf32>
    %c0_16 = arith.constant 0 : index
    %c0_17 = arith.constant 0 : index
    %15 = vector.load %arg4[%c0_16, %c0_17] : memref<1x128xf32, #tpu.memory_space<vmem>>, vector<1x128xf32>
    %16 = vector.shape_cast %15 : vector<1x128xf32> to vector<1x128xf32>
    %17 = vector.broadcast %16 : vector<1x128xf32> to vector<64x128xf32>
    %18 = arith.addf %14, %17 : vector<64x128xf32>
    %cst_18 = arith.constant 0.000000e+00 : f32
    %19 = vector.broadcast %cst_18 : f32 to vector<8x32xf32>
    %20 = vector.extract_strided_slice %18 {offsets = [0, 0], sizes = [8, 128], strides = [1, 1]} : vector<64x128xf32> to vector<8x128xf32>
    %21 = arith.truncf %19 : vector<8x32xf32> to vector<8x32xbf16>
    %cst_19 = arith.constant dense<0.000000e+00> : vector<8x128xf32>
    %22 = tpu.matmul %21, %0, %cst_19 {dimension_numbers = #tpu.dot_dimension_numbers<[1], [0], [0], [1], [0, 0, 1, 1], [], []>} : vector<8x32xbf16>, vector<32x128xbf16>, vector<8x128xf32> -> vector<8x128xf32>
    %23 = arith.addf %20, %22 : vector<8x128xf32>
    %24 = arith.negf %23 : vector<8x128xf32>
    %25 = math.exp %24 : vector<8x128xf32>
    %cst_20 = arith.constant 1.000000e+00 : f32
    %26 = vector.broadcast %cst_20 : f32 to vector<8x128xf32>
    %27 = arith.addf %26, %25 : vector<8x128xf32>
    %28 = arith.divf %26, %27 : vector<8x128xf32>
    %29 = vector.extract_strided_slice %28 {offsets = [0, 0], sizes = [8, 32], strides = [1, 1]} : vector<8x128xf32> to vector<8x32xf32>
    %30 = vector.extract_strided_slice %28 {offsets = [0, 32], sizes = [8, 32], strides = [1, 1]} : vector<8x128xf32> to vector<8x32xf32>
    %31 = vector.extract_strided_slice %28 {offsets = [0, 64], sizes = [8, 32], strides = [1, 1]} : vector<8x128xf32> to vector<8x32xf32>
    %cst_21 = arith.constant 2.000000e+00 : f32
    %32 = vector.broadcast %cst_21 : f32 to vector<8x32xf32>
    %33 = arith.mulf %32, %31 : vector<8x32xf32>
    %cst_22 = arith.constant 1.000000e+00 : f32
    %34 = vector.broadcast %cst_22 : f32 to vector<8x32xf32>
    %35 = arith.subf %33, %34 : vector<8x32xf32>
    %36 = vector.extract_strided_slice %28 {offsets = [0, 96], sizes = [8, 32], strides = [1, 1]} : vector<8x128xf32> to vector<8x32xf32>
    %37 = arith.mulf %30, %19 : vector<8x32xf32>
    %38 = arith.mulf %29, %35 : vector<8x32xf32>
    %39 = arith.addf %37, %38 : vector<8x32xf32>
    %40 = math.tanh %39 : vector<8x32xf32>
    %41 = arith.mulf %36, %40 : vector<8x32xf32>
    %42 = tpu.concatenate %41, %19 in 1 : vector<8x32xf32>, vector<8x32xf32> -> vector<8x64xf32>
    %43 = arith.truncf %42 : vector<8x64xf32> to vector<8x64xbf16>
    %cst_23 = arith.constant dense<0.000000e+00> : vector<8x128xf32>
    %44 = tpu.matmul %43, %1, %cst_23 {dimension_numbers = #tpu.dot_dimension_numbers<[1], [0], [0], [1], [0, 0, 1, 1], [], []>} : vector<8x64xbf16>, vector<64x128xbf16>, vector<8x128xf32> -> vector<8x128xf32>
    %45 = arith.addf %44, %6 : vector<8x128xf32>
    %46 = arith.negf %45 : vector<8x128xf32>
    %47 = math.exp %46 : vector<8x128xf32>
    %cst_24 = arith.constant 1.000000e+00 : f32
    %48 = vector.broadcast %cst_24 : f32 to vector<8x128xf32>
    %49 = arith.addf %48, %47 : vector<8x128xf32>
    %50 = arith.divf %48, %49 : vector<8x128xf32>
    %51 = vector.extract_strided_slice %50 {offsets = [0, 0], sizes = [8, 32], strides = [1, 1]} : vector<8x128xf32> to vector<8x32xf32>
    %52 = vector.extract_strided_slice %50 {offsets = [0, 32], sizes = [8, 32], strides = [1, 1]} : vector<8x128xf32> to vector<8x32xf32>
    %53 = vector.extract_strided_slice %50 {offsets = [0, 64], sizes = [8, 32], strides = [1, 1]} : vector<8x128xf32> to vector<8x32xf32>
    %cst_25 = arith.constant 2.000000e+00 : f32
    %54 = vector.broadcast %cst_25 : f32 to vector<8x32xf32>
    %55 = arith.mulf %54, %53 : vector<8x32xf32>
    %cst_26 = arith.constant 1.000000e+00 : f32
    %56 = vector.broadcast %cst_26 : f32 to vector<8x32xf32>
    %57 = arith.subf %55, %56 : vector<8x32xf32>
    %58 = vector.extract_strided_slice %50 {offsets = [0, 96], sizes = [8, 32], strides = [1, 1]} : vector<8x128xf32> to vector<8x32xf32>
    %59 = arith.mulf %52, %19 : vector<8x32xf32>
    %60 = arith.mulf %51, %57 : vector<8x32xf32>
    %61 = arith.addf %59, %60 : vector<8x32xf32>
    %62 = math.tanh %61 : vector<8x32xf32>
    %63 = arith.mulf %58, %62 : vector<8x32xf32>
    %64 = vector.extract_strided_slice %18 {offsets = [8, 0], sizes = [8, 128], strides = [1, 1]} : vector<64x128xf32> to vector<8x128xf32>
    %65 = arith.truncf %41 : vector<8x32xf32> to vector<8x32xbf16>
    %cst_27 = arith.constant dense<0.000000e+00> : vector<8x128xf32>
    %66 = tpu.matmul %65, %0, %cst_27 {dimension_numbers = #tpu.dot_dimension_numbers<[1], [0], [0], [1], [0, 0, 1, 1], [], []>} : vector<8x32xbf16>, vector<32x128xbf16>, vector<8x128xf32> -> vector<8x128xf32>
    %67 = arith.addf %64, %66 : vector<8x128xf32>
    %68 = arith.negf %67 : vector<8x128xf32>
    %69 = math.exp %68 : vector<8x128xf32>
    %cst_28 = arith.constant 1.000000e+00 : f32
    %70 = vector.broadcast %cst_28 : f32 to vector<8x128xf32>
    %71 = arith.addf %70, %69 : vector<8x128xf32>
    %72 = arith.divf %70, %71 : vector<8x128xf32>
    %73 = vector.extract_strided_slice %72 {offsets = [0, 0], sizes = [8, 32], strides = [1, 1]} : vector<8x128xf32> to vector<8x32xf32>
    %74 = vector.extract_strided_slice %72 {offsets = [0, 32], sizes = [8, 32], strides = [1, 1]} : vector<8x128xf32> to vector<8x32xf32>
    %75 = vector.extract_strided_slice %72 {offsets = [0, 64], sizes = [8, 32], strides = [1, 1]} : vector<8x128xf32> to vector<8x32xf32>
    %cst_29 = arith.constant 2.000000e+00 : f32
    %76 = vector.broadcast %cst_29 : f32 to vector<8x32xf32>
    %77 = arith.mulf %76, %75 : vector<8x32xf32>
    %cst_30 = arith.constant 1.000000e+00 : f32
    %78 = vector.broadcast %cst_30 : f32 to vector<8x32xf32>
    %79 = arith.subf %77, %78 : vector<8x32xf32>
    %80 = vector.extract_strided_slice %72 {offsets = [0, 96], sizes = [8, 32], strides = [1, 1]} : vector<8x128xf32> to vector<8x32xf32>
    %81 = arith.mulf %74, %39 : vector<8x32xf32>
    %82 = arith.mulf %73, %79 : vector<8x32xf32>
    %83 = arith.addf %81, %82 : vector<8x32xf32>
    %84 = math.tanh %83 : vector<8x32xf32>
    %85 = arith.mulf %80, %84 : vector<8x32xf32>
    %86 = tpu.concatenate %85, %63 in 1 : vector<8x32xf32>, vector<8x32xf32> -> vector<8x64xf32>
    %87 = arith.truncf %86 : vector<8x64xf32> to vector<8x64xbf16>
    %cst_31 = arith.constant dense<0.000000e+00> : vector<8x128xf32>
    %88 = tpu.matmul %87, %1, %cst_31 {dimension_numbers = #tpu.dot_dimension_numbers<[1], [0], [0], [1], [0, 0, 1, 1], [], []>} : vector<8x64xbf16>, vector<64x128xbf16>, vector<8x128xf32> -> vector<8x128xf32>
    %89 = arith.addf %88, %6 : vector<8x128xf32>
    %90 = arith.negf %89 : vector<8x128xf32>
    %91 = math.exp %90 : vector<8x128xf32>
    %cst_32 = arith.constant 1.000000e+00 : f32
    %92 = vector.broadcast %cst_32 : f32 to vector<8x128xf32>
    %93 = arith.addf %92, %91 : vector<8x128xf32>
    %94 = arith.divf %92, %93 : vector<8x128xf32>
    %95 = vector.extract_strided_slice %94 {offsets = [0, 0], sizes = [8, 32], strides = [1, 1]} : vector<8x128xf32> to vector<8x32xf32>
    %96 = vector.extract_strided_slice %94 {offsets = [0, 32], sizes = [8, 32], strides = [1, 1]} : vector<8x128xf32> to vector<8x32xf32>
    %97 = vector.extract_strided_slice %94 {offsets = [0, 64], sizes = [8, 32], strides = [1, 1]} : vector<8x128xf32> to vector<8x32xf32>
    %cst_33 = arith.constant 2.000000e+00 : f32
    %98 = vector.broadcast %cst_33 : f32 to vector<8x32xf32>
    %99 = arith.mulf %98, %97 : vector<8x32xf32>
    %cst_34 = arith.constant 1.000000e+00 : f32
    %100 = vector.broadcast %cst_34 : f32 to vector<8x32xf32>
    %101 = arith.subf %99, %100 : vector<8x32xf32>
    %102 = vector.extract_strided_slice %94 {offsets = [0, 96], sizes = [8, 32], strides = [1, 1]} : vector<8x128xf32> to vector<8x32xf32>
    %103 = arith.mulf %96, %61 : vector<8x32xf32>
    %104 = arith.mulf %95, %101 : vector<8x32xf32>
    %105 = arith.addf %103, %104 : vector<8x32xf32>
    %106 = math.tanh %105 : vector<8x32xf32>
    %107 = arith.mulf %102, %106 : vector<8x32xf32>
    %108 = vector.extract_strided_slice %18 {offsets = [16, 0], sizes = [8, 128], strides = [1, 1]} : vector<64x128xf32> to vector<8x128xf32>
    %109 = arith.truncf %85 : vector<8x32xf32> to vector<8x32xbf16>
    %cst_35 = arith.constant dense<0.000000e+00> : vector<8x128xf32>
    %110 = tpu.matmul %109, %0, %cst_35 {dimension_numbers = #tpu.dot_dimension_numbers<[1], [0], [0], [1], [0, 0, 1, 1], [], []>} : vector<8x32xbf16>, vector<32x128xbf16>, vector<8x128xf32> -> vector<8x128xf32>
    %111 = arith.addf %108, %110 : vector<8x128xf32>
    %112 = arith.negf %111 : vector<8x128xf32>
    %113 = math.exp %112 : vector<8x128xf32>
    %cst_36 = arith.constant 1.000000e+00 : f32
    %114 = vector.broadcast %cst_36 : f32 to vector<8x128xf32>
    %115 = arith.addf %114, %113 : vector<8x128xf32>
    %116 = arith.divf %114, %115 : vector<8x128xf32>
    %117 = vector.extract_strided_slice %116 {offsets = [0, 0], sizes = [8, 32], strides = [1, 1]} : vector<8x128xf32> to vector<8x32xf32>
    %118 = vector.extract_strided_slice %116 {offsets = [0, 32], sizes = [8, 32], strides = [1, 1]} : vector<8x128xf32> to vector<8x32xf32>
    %119 = vector.extract_strided_slice %116 {offsets = [0, 64], sizes = [8, 32], strides = [1, 1]} : vector<8x128xf32> to vector<8x32xf32>
    %cst_37 = arith.constant 2.000000e+00 : f32
    %120 = vector.broadcast %cst_37 : f32 to vector<8x32xf32>
    %121 = arith.mulf %120, %119 : vector<8x32xf32>
    %cst_38 = arith.constant 1.000000e+00 : f32
    %122 = vector.broadcast %cst_38 : f32 to vector<8x32xf32>
    %123 = arith.subf %121, %122 : vector<8x32xf32>
    %124 = vector.extract_strided_slice %116 {offsets = [0, 96], sizes = [8, 32], strides = [1, 1]} : vector<8x128xf32> to vector<8x32xf32>
    %125 = arith.mulf %118, %83 : vector<8x32xf32>
    %126 = arith.mulf %117, %123 : vector<8x32xf32>
    %127 = arith.addf %125, %126 : vector<8x32xf32>
    %128 = math.tanh %127 : vector<8x32xf32>
    %129 = arith.mulf %124, %128 : vector<8x32xf32>
    %130 = tpu.concatenate %129, %107 in 1 : vector<8x32xf32>, vector<8x32xf32> -> vector<8x64xf32>
    %131 = arith.truncf %130 : vector<8x64xf32> to vector<8x64xbf16>
    %cst_39 = arith.constant dense<0.000000e+00> : vector<8x128xf32>
    %132 = tpu.matmul %131, %1, %cst_39 {dimension_numbers = #tpu.dot_dimension_numbers<[1], [0], [0], [1], [0, 0, 1, 1], [], []>} : vector<8x64xbf16>, vector<64x128xbf16>, vector<8x128xf32> -> vector<8x128xf32>
    %133 = arith.addf %132, %6 : vector<8x128xf32>
    %134 = arith.negf %133 : vector<8x128xf32>
    %135 = math.exp %134 : vector<8x128xf32>
    %cst_40 = arith.constant 1.000000e+00 : f32
    %136 = vector.broadcast %cst_40 : f32 to vector<8x128xf32>
    %137 = arith.addf %136, %135 : vector<8x128xf32>
    %138 = arith.divf %136, %137 : vector<8x128xf32>
    %139 = vector.extract_strided_slice %138 {offsets = [0, 0], sizes = [8, 32], strides = [1, 1]} : vector<8x128xf32> to vector<8x32xf32>
    %140 = vector.extract_strided_slice %138 {offsets = [0, 32], sizes = [8, 32], strides = [1, 1]} : vector<8x128xf32> to vector<8x32xf32>
    %141 = vector.extract_strided_slice %138 {offsets = [0, 64], sizes = [8, 32], strides = [1, 1]} : vector<8x128xf32> to vector<8x32xf32>
    %cst_41 = arith.constant 2.000000e+00 : f32
    %142 = vector.broadcast %cst_41 : f32 to vector<8x32xf32>
    %143 = arith.mulf %142, %141 : vector<8x32xf32>
    %cst_42 = arith.constant 1.000000e+00 : f32
    %144 = vector.broadcast %cst_42 : f32 to vector<8x32xf32>
    %145 = arith.subf %143, %144 : vector<8x32xf32>
    %146 = vector.extract_strided_slice %138 {offsets = [0, 96], sizes = [8, 32], strides = [1, 1]} : vector<8x128xf32> to vector<8x32xf32>
    %147 = arith.mulf %140, %105 : vector<8x32xf32>
    %148 = arith.mulf %139, %145 : vector<8x32xf32>
    %149 = arith.addf %147, %148 : vector<8x32xf32>
    %150 = math.tanh %149 : vector<8x32xf32>
    %151 = arith.mulf %146, %150 : vector<8x32xf32>
    %152 = vector.extract_strided_slice %18 {offsets = [24, 0], sizes = [8, 128], strides = [1, 1]} : vector<64x128xf32> to vector<8x128xf32>
    %153 = arith.truncf %129 : vector<8x32xf32> to vector<8x32xbf16>
    %cst_43 = arith.constant dense<0.000000e+00> : vector<8x128xf32>
    %154 = tpu.matmul %153, %0, %cst_43 {dimension_numbers = #tpu.dot_dimension_numbers<[1], [0], [0], [1], [0, 0, 1, 1], [], []>} : vector<8x32xbf16>, vector<32x128xbf16>, vector<8x128xf32> -> vector<8x128xf32>
    %155 = arith.addf %152, %154 : vector<8x128xf32>
    %156 = arith.negf %155 : vector<8x128xf32>
    %157 = math.exp %156 : vector<8x128xf32>
    %cst_44 = arith.constant 1.000000e+00 : f32
    %158 = vector.broadcast %cst_44 : f32 to vector<8x128xf32>
    %159 = arith.addf %158, %157 : vector<8x128xf32>
    %160 = arith.divf %158, %159 : vector<8x128xf32>
    %161 = vector.extract_strided_slice %160 {offsets = [0, 0], sizes = [8, 32], strides = [1, 1]} : vector<8x128xf32> to vector<8x32xf32>
    %162 = vector.extract_strided_slice %160 {offsets = [0, 32], sizes = [8, 32], strides = [1, 1]} : vector<8x128xf32> to vector<8x32xf32>
    %163 = vector.extract_strided_slice %160 {offsets = [0, 64], sizes = [8, 32], strides = [1, 1]} : vector<8x128xf32> to vector<8x32xf32>
    %cst_45 = arith.constant 2.000000e+00 : f32
    %164 = vector.broadcast %cst_45 : f32 to vector<8x32xf32>
    %165 = arith.mulf %164, %163 : vector<8x32xf32>
    %cst_46 = arith.constant 1.000000e+00 : f32
    %166 = vector.broadcast %cst_46 : f32 to vector<8x32xf32>
    %167 = arith.subf %165, %166 : vector<8x32xf32>
    %168 = vector.extract_strided_slice %160 {offsets = [0, 96], sizes = [8, 32], strides = [1, 1]} : vector<8x128xf32> to vector<8x32xf32>
    %169 = arith.mulf %162, %127 : vector<8x32xf32>
    %170 = arith.mulf %161, %167 : vector<8x32xf32>
    %171 = arith.addf %169, %170 : vector<8x32xf32>
    %172 = math.tanh %171 : vector<8x32xf32>
    %173 = arith.mulf %168, %172 : vector<8x32xf32>
    %174 = tpu.concatenate %173, %151 in 1 : vector<8x32xf32>, vector<8x32xf32> -> vector<8x64xf32>
    %175 = arith.truncf %174 : vector<8x64xf32> to vector<8x64xbf16>
    %cst_47 = arith.constant dense<0.000000e+00> : vector<8x128xf32>
    %176 = tpu.matmul %175, %1, %cst_47 {dimension_numbers = #tpu.dot_dimension_numbers<[1], [0], [0], [1], [0, 0, 1, 1], [], []>} : vector<8x64xbf16>, vector<64x128xbf16>, vector<8x128xf32> -> vector<8x128xf32>
    %177 = arith.addf %176, %6 : vector<8x128xf32>
    %178 = arith.negf %177 : vector<8x128xf32>
    %179 = math.exp %178 : vector<8x128xf32>
    %cst_48 = arith.constant 1.000000e+00 : f32
    %180 = vector.broadcast %cst_48 : f32 to vector<8x128xf32>
    %181 = arith.addf %180, %179 : vector<8x128xf32>
    %182 = arith.divf %180, %181 : vector<8x128xf32>
    %183 = vector.extract_strided_slice %182 {offsets = [0, 0], sizes = [8, 32], strides = [1, 1]} : vector<8x128xf32> to vector<8x32xf32>
    %184 = vector.extract_strided_slice %182 {offsets = [0, 32], sizes = [8, 32], strides = [1, 1]} : vector<8x128xf32> to vector<8x32xf32>
    %185 = vector.extract_strided_slice %182 {offsets = [0, 64], sizes = [8, 32], strides = [1, 1]} : vector<8x128xf32> to vector<8x32xf32>
    %cst_49 = arith.constant 2.000000e+00 : f32
    %186 = vector.broadcast %cst_49 : f32 to vector<8x32xf32>
    %187 = arith.mulf %186, %185 : vector<8x32xf32>
    %cst_50 = arith.constant 1.000000e+00 : f32
    %188 = vector.broadcast %cst_50 : f32 to vector<8x32xf32>
    %189 = arith.subf %187, %188 : vector<8x32xf32>
    %190 = vector.extract_strided_slice %182 {offsets = [0, 96], sizes = [8, 32], strides = [1, 1]} : vector<8x128xf32> to vector<8x32xf32>
    %191 = arith.mulf %184, %149 : vector<8x32xf32>
    %192 = arith.mulf %183, %189 : vector<8x32xf32>
    %193 = arith.addf %191, %192 : vector<8x32xf32>
    %194 = math.tanh %193 : vector<8x32xf32>
    %195 = arith.mulf %190, %194 : vector<8x32xf32>
    %196 = vector.extract_strided_slice %18 {offsets = [32, 0], sizes = [8, 128], strides = [1, 1]} : vector<64x128xf32> to vector<8x128xf32>
    %197 = arith.truncf %173 : vector<8x32xf32> to vector<8x32xbf16>
    %cst_51 = arith.constant dense<0.000000e+00> : vector<8x128xf32>
    %198 = tpu.matmul %197, %0, %cst_51 {dimension_numbers = #tpu.dot_dimension_numbers<[1], [0], [0], [1], [0, 0, 1, 1], [], []>} : vector<8x32xbf16>, vector<32x128xbf16>, vector<8x128xf32> -> vector<8x128xf32>
    %199 = arith.addf %196, %198 : vector<8x128xf32>
    %200 = arith.negf %199 : vector<8x128xf32>
    %201 = math.exp %200 : vector<8x128xf32>
    %cst_52 = arith.constant 1.000000e+00 : f32
    %202 = vector.broadcast %cst_52 : f32 to vector<8x128xf32>
    %203 = arith.addf %202, %201 : vector<8x128xf32>
    %204 = arith.divf %202, %203 : vector<8x128xf32>
    %205 = vector.extract_strided_slice %204 {offsets = [0, 0], sizes = [8, 32], strides = [1, 1]} : vector<8x128xf32> to vector<8x32xf32>
    %206 = vector.extract_strided_slice %204 {offsets = [0, 32], sizes = [8, 32], strides = [1, 1]} : vector<8x128xf32> to vector<8x32xf32>
    %207 = vector.extract_strided_slice %204 {offsets = [0, 64], sizes = [8, 32], strides = [1, 1]} : vector<8x128xf32> to vector<8x32xf32>
    %cst_53 = arith.constant 2.000000e+00 : f32
    %208 = vector.broadcast %cst_53 : f32 to vector<8x32xf32>
    %209 = arith.mulf %208, %207 : vector<8x32xf32>
    %cst_54 = arith.constant 1.000000e+00 : f32
    %210 = vector.broadcast %cst_54 : f32 to vector<8x32xf32>
    %211 = arith.subf %209, %210 : vector<8x32xf32>
    %212 = vector.extract_strided_slice %204 {offsets = [0, 96], sizes = [8, 32], strides = [1, 1]} : vector<8x128xf32> to vector<8x32xf32>
    %213 = arith.mulf %206, %171 : vector<8x32xf32>
    %214 = arith.mulf %205, %211 : vector<8x32xf32>
    %215 = arith.addf %213, %214 : vector<8x32xf32>
    %216 = math.tanh %215 : vector<8x32xf32>
    %217 = arith.mulf %212, %216 : vector<8x32xf32>
    %218 = tpu.concatenate %217, %195 in 1 : vector<8x32xf32>, vector<8x32xf32> -> vector<8x64xf32>
    %219 = arith.truncf %218 : vector<8x64xf32> to vector<8x64xbf16>
    %cst_55 = arith.constant dense<0.000000e+00> : vector<8x128xf32>
    %220 = tpu.matmul %219, %1, %cst_55 {dimension_numbers = #tpu.dot_dimension_numbers<[1], [0], [0], [1], [0, 0, 1, 1], [], []>} : vector<8x64xbf16>, vector<64x128xbf16>, vector<8x128xf32> -> vector<8x128xf32>
    %221 = arith.addf %220, %6 : vector<8x128xf32>
    %222 = arith.negf %221 : vector<8x128xf32>
    %223 = math.exp %222 : vector<8x128xf32>
    %cst_56 = arith.constant 1.000000e+00 : f32
    %224 = vector.broadcast %cst_56 : f32 to vector<8x128xf32>
    %225 = arith.addf %224, %223 : vector<8x128xf32>
    %226 = arith.divf %224, %225 : vector<8x128xf32>
    %227 = vector.extract_strided_slice %226 {offsets = [0, 0], sizes = [8, 32], strides = [1, 1]} : vector<8x128xf32> to vector<8x32xf32>
    %228 = vector.extract_strided_slice %226 {offsets = [0, 32], sizes = [8, 32], strides = [1, 1]} : vector<8x128xf32> to vector<8x32xf32>
    %229 = vector.extract_strided_slice %226 {offsets = [0, 64], sizes = [8, 32], strides = [1, 1]} : vector<8x128xf32> to vector<8x32xf32>
    %cst_57 = arith.constant 2.000000e+00 : f32
    %230 = vector.broadcast %cst_57 : f32 to vector<8x32xf32>
    %231 = arith.mulf %230, %229 : vector<8x32xf32>
    %cst_58 = arith.constant 1.000000e+00 : f32
    %232 = vector.broadcast %cst_58 : f32 to vector<8x32xf32>
    %233 = arith.subf %231, %232 : vector<8x32xf32>
    %234 = vector.extract_strided_slice %226 {offsets = [0, 96], sizes = [8, 32], strides = [1, 1]} : vector<8x128xf32> to vector<8x32xf32>
    %235 = arith.mulf %228, %193 : vector<8x32xf32>
    %236 = arith.mulf %227, %233 : vector<8x32xf32>
    %237 = arith.addf %235, %236 : vector<8x32xf32>
    %238 = math.tanh %237 : vector<8x32xf32>
    %239 = arith.mulf %234, %238 : vector<8x32xf32>
    %240 = vector.extract_strided_slice %18 {offsets = [40, 0], sizes = [8, 128], strides = [1, 1]} : vector<64x128xf32> to vector<8x128xf32>
    %241 = arith.truncf %217 : vector<8x32xf32> to vector<8x32xbf16>
    %cst_59 = arith.constant dense<0.000000e+00> : vector<8x128xf32>
    %242 = tpu.matmul %241, %0, %cst_59 {dimension_numbers = #tpu.dot_dimension_numbers<[1], [0], [0], [1], [0, 0, 1, 1], [], []>} : vector<8x32xbf16>, vector<32x128xbf16>, vector<8x128xf32> -> vector<8x128xf32>
    %243 = arith.addf %240, %242 : vector<8x128xf32>
    %244 = arith.negf %243 : vector<8x128xf32>
    %245 = math.exp %244 : vector<8x128xf32>
    %cst_60 = arith.constant 1.000000e+00 : f32
    %246 = vector.broadcast %cst_60 : f32 to vector<8x128xf32>
    %247 = arith.addf %246, %245 : vector<8x128xf32>
    %248 = arith.divf %246, %247 : vector<8x128xf32>
    %249 = vector.extract_strided_slice %248 {offsets = [0, 0], sizes = [8, 32], strides = [1, 1]} : vector<8x128xf32> to vector<8x32xf32>
    %250 = vector.extract_strided_slice %248 {offsets = [0, 32], sizes = [8, 32], strides = [1, 1]} : vector<8x128xf32> to vector<8x32xf32>
    %251 = vector.extract_strided_slice %248 {offsets = [0, 64], sizes = [8, 32], strides = [1, 1]} : vector<8x128xf32> to vector<8x32xf32>
    %cst_61 = arith.constant 2.000000e+00 : f32
    %252 = vector.broadcast %cst_61 : f32 to vector<8x32xf32>
    %253 = arith.mulf %252, %251 : vector<8x32xf32>
    %cst_62 = arith.constant 1.000000e+00 : f32
    %254 = vector.broadcast %cst_62 : f32 to vector<8x32xf32>
    %255 = arith.subf %253, %254 : vector<8x32xf32>
    %256 = vector.extract_strided_slice %248 {offsets = [0, 96], sizes = [8, 32], strides = [1, 1]} : vector<8x128xf32> to vector<8x32xf32>
    %257 = arith.mulf %250, %215 : vector<8x32xf32>
    %258 = arith.mulf %249, %255 : vector<8x32xf32>
    %259 = arith.addf %257, %258 : vector<8x32xf32>
    %260 = math.tanh %259 : vector<8x32xf32>
    %261 = arith.mulf %256, %260 : vector<8x32xf32>
    %262 = tpu.concatenate %261, %239 in 1 : vector<8x32xf32>, vector<8x32xf32> -> vector<8x64xf32>
    %263 = arith.truncf %262 : vector<8x64xf32> to vector<8x64xbf16>
    %cst_63 = arith.constant dense<0.000000e+00> : vector<8x128xf32>
    %264 = tpu.matmul %263, %1, %cst_63 {dimension_numbers = #tpu.dot_dimension_numbers<[1], [0], [0], [1], [0, 0, 1, 1], [], []>} : vector<8x64xbf16>, vector<64x128xbf16>, vector<8x128xf32> -> vector<8x128xf32>
    %265 = arith.addf %264, %6 : vector<8x128xf32>
    %266 = arith.negf %265 : vector<8x128xf32>
    %267 = math.exp %266 : vector<8x128xf32>
    %cst_64 = arith.constant 1.000000e+00 : f32
    %268 = vector.broadcast %cst_64 : f32 to vector<8x128xf32>
    %269 = arith.addf %268, %267 : vector<8x128xf32>
    %270 = arith.divf %268, %269 : vector<8x128xf32>
    %271 = vector.extract_strided_slice %270 {offsets = [0, 0], sizes = [8, 32], strides = [1, 1]} : vector<8x128xf32> to vector<8x32xf32>
    %272 = vector.extract_strided_slice %270 {offsets = [0, 32], sizes = [8, 32], strides = [1, 1]} : vector<8x128xf32> to vector<8x32xf32>
    %273 = vector.extract_strided_slice %270 {offsets = [0, 64], sizes = [8, 32], strides = [1, 1]} : vector<8x128xf32> to vector<8x32xf32>
    %cst_65 = arith.constant 2.000000e+00 : f32
    %274 = vector.broadcast %cst_65 : f32 to vector<8x32xf32>
    %275 = arith.mulf %274, %273 : vector<8x32xf32>
    %cst_66 = arith.constant 1.000000e+00 : f32
    %276 = vector.broadcast %cst_66 : f32 to vector<8x32xf32>
    %277 = arith.subf %275, %276 : vector<8x32xf32>
    %278 = vector.extract_strided_slice %270 {offsets = [0, 96], sizes = [8, 32], strides = [1, 1]} : vector<8x128xf32> to vector<8x32xf32>
    %279 = arith.mulf %272, %237 : vector<8x32xf32>
    %280 = arith.mulf %271, %277 : vector<8x32xf32>
    %281 = arith.addf %279, %280 : vector<8x32xf32>
    %282 = math.tanh %281 : vector<8x32xf32>
    %283 = arith.mulf %278, %282 : vector<8x32xf32>
    %284 = vector.extract_strided_slice %18 {offsets = [48, 0], sizes = [8, 128], strides = [1, 1]} : vector<64x128xf32> to vector<8x128xf32>
    %285 = arith.truncf %261 : vector<8x32xf32> to vector<8x32xbf16>
    %cst_67 = arith.constant dense<0.000000e+00> : vector<8x128xf32>
    %286 = tpu.matmul %285, %0, %cst_67 {dimension_numbers = #tpu.dot_dimension_numbers<[1], [0], [0], [1], [0, 0, 1, 1], [], []>} : vector<8x32xbf16>, vector<32x128xbf16>, vector<8x128xf32> -> vector<8x128xf32>
    %287 = arith.addf %284, %286 : vector<8x128xf32>
    %288 = arith.negf %287 : vector<8x128xf32>
    %289 = math.exp %288 : vector<8x128xf32>
    %cst_68 = arith.constant 1.000000e+00 : f32
    %290 = vector.broadcast %cst_68 : f32 to vector<8x128xf32>
    %291 = arith.addf %290, %289 : vector<8x128xf32>
    %292 = arith.divf %290, %291 : vector<8x128xf32>
    %293 = vector.extract_strided_slice %292 {offsets = [0, 0], sizes = [8, 32], strides = [1, 1]} : vector<8x128xf32> to vector<8x32xf32>
    %294 = vector.extract_strided_slice %292 {offsets = [0, 32], sizes = [8, 32], strides = [1, 1]} : vector<8x128xf32> to vector<8x32xf32>
    %295 = vector.extract_strided_slice %292 {offsets = [0, 64], sizes = [8, 32], strides = [1, 1]} : vector<8x128xf32> to vector<8x32xf32>
    %cst_69 = arith.constant 2.000000e+00 : f32
    %296 = vector.broadcast %cst_69 : f32 to vector<8x32xf32>
    %297 = arith.mulf %296, %295 : vector<8x32xf32>
    %cst_70 = arith.constant 1.000000e+00 : f32
    %298 = vector.broadcast %cst_70 : f32 to vector<8x32xf32>
    %299 = arith.subf %297, %298 : vector<8x32xf32>
    %300 = vector.extract_strided_slice %292 {offsets = [0, 96], sizes = [8, 32], strides = [1, 1]} : vector<8x128xf32> to vector<8x32xf32>
    %301 = arith.mulf %294, %259 : vector<8x32xf32>
    %302 = arith.mulf %293, %299 : vector<8x32xf32>
    %303 = arith.addf %301, %302 : vector<8x32xf32>
    %304 = math.tanh %303 : vector<8x32xf32>
    %305 = arith.mulf %300, %304 : vector<8x32xf32>
    %306 = tpu.concatenate %305, %283 in 1 : vector<8x32xf32>, vector<8x32xf32> -> vector<8x64xf32>
    %307 = arith.truncf %306 : vector<8x64xf32> to vector<8x64xbf16>
    %cst_71 = arith.constant dense<0.000000e+00> : vector<8x128xf32>
    %308 = tpu.matmul %307, %1, %cst_71 {dimension_numbers = #tpu.dot_dimension_numbers<[1], [0], [0], [1], [0, 0, 1, 1], [], []>} : vector<8x64xbf16>, vector<64x128xbf16>, vector<8x128xf32> -> vector<8x128xf32>
    %309 = arith.addf %308, %6 : vector<8x128xf32>
    %310 = arith.negf %309 : vector<8x128xf32>
    %311 = math.exp %310 : vector<8x128xf32>
    %cst_72 = arith.constant 1.000000e+00 : f32
    %312 = vector.broadcast %cst_72 : f32 to vector<8x128xf32>
    %313 = arith.addf %312, %311 : vector<8x128xf32>
    %314 = arith.divf %312, %313 : vector<8x128xf32>
    %315 = vector.extract_strided_slice %314 {offsets = [0, 0], sizes = [8, 32], strides = [1, 1]} : vector<8x128xf32> to vector<8x32xf32>
    %316 = vector.extract_strided_slice %314 {offsets = [0, 32], sizes = [8, 32], strides = [1, 1]} : vector<8x128xf32> to vector<8x32xf32>
    %317 = vector.extract_strided_slice %314 {offsets = [0, 64], sizes = [8, 32], strides = [1, 1]} : vector<8x128xf32> to vector<8x32xf32>
    %cst_73 = arith.constant 2.000000e+00 : f32
    %318 = vector.broadcast %cst_73 : f32 to vector<8x32xf32>
    %319 = arith.mulf %318, %317 : vector<8x32xf32>
    %cst_74 = arith.constant 1.000000e+00 : f32
    %320 = vector.broadcast %cst_74 : f32 to vector<8x32xf32>
    %321 = arith.subf %319, %320 : vector<8x32xf32>
    %322 = vector.extract_strided_slice %314 {offsets = [0, 96], sizes = [8, 32], strides = [1, 1]} : vector<8x128xf32> to vector<8x32xf32>
    %323 = arith.mulf %316, %281 : vector<8x32xf32>
    %324 = arith.mulf %315, %321 : vector<8x32xf32>
    %325 = arith.addf %323, %324 : vector<8x32xf32>
    %326 = math.tanh %325 : vector<8x32xf32>
    %327 = arith.mulf %322, %326 : vector<8x32xf32>
    %328 = vector.extract_strided_slice %18 {offsets = [56, 0], sizes = [8, 128], strides = [1, 1]} : vector<64x128xf32> to vector<8x128xf32>
    %329 = arith.truncf %305 : vector<8x32xf32> to vector<8x32xbf16>
    %cst_75 = arith.constant dense<0.000000e+00> : vector<8x128xf32>
    %330 = tpu.matmul %329, %0, %cst_75 {dimension_numbers = #tpu.dot_dimension_numbers<[1], [0], [0], [1], [0, 0, 1, 1], [], []>} : vector<8x32xbf16>, vector<32x128xbf16>, vector<8x128xf32> -> vector<8x128xf32>
    %331 = arith.addf %328, %330 : vector<8x128xf32>
    %332 = arith.negf %331 : vector<8x128xf32>
    %333 = math.exp %332 : vector<8x128xf32>
    %cst_76 = arith.constant 1.000000e+00 : f32
    %334 = vector.broadcast %cst_76 : f32 to vector<8x128xf32>
    %335 = arith.addf %334, %333 : vector<8x128xf32>
    %336 = arith.divf %334, %335 : vector<8x128xf32>
    %337 = vector.extract_strided_slice %336 {offsets = [0, 0], sizes = [8, 32], strides = [1, 1]} : vector<8x128xf32> to vector<8x32xf32>
    %338 = vector.extract_strided_slice %336 {offsets = [0, 32], sizes = [8, 32], strides = [1, 1]} : vector<8x128xf32> to vector<8x32xf32>
    %339 = vector.extract_strided_slice %336 {offsets = [0, 64], sizes = [8, 32], strides = [1, 1]} : vector<8x128xf32> to vector<8x32xf32>
    %cst_77 = arith.constant 2.000000e+00 : f32
    %340 = vector.broadcast %cst_77 : f32 to vector<8x32xf32>
    %341 = arith.mulf %340, %339 : vector<8x32xf32>
    %cst_78 = arith.constant 1.000000e+00 : f32
    %342 = vector.broadcast %cst_78 : f32 to vector<8x32xf32>
    %343 = arith.subf %341, %342 : vector<8x32xf32>
    %344 = vector.extract_strided_slice %336 {offsets = [0, 96], sizes = [8, 32], strides = [1, 1]} : vector<8x128xf32> to vector<8x32xf32>
    %345 = arith.mulf %338, %303 : vector<8x32xf32>
    %346 = arith.mulf %337, %343 : vector<8x32xf32>
    %347 = arith.addf %345, %346 : vector<8x32xf32>
    %348 = math.tanh %347 : vector<8x32xf32>
    %349 = arith.mulf %344, %348 : vector<8x32xf32>
    %350 = tpu.concatenate %349, %327 in 1 : vector<8x32xf32>, vector<8x32xf32> -> vector<8x64xf32>
    %351 = arith.truncf %350 : vector<8x64xf32> to vector<8x64xbf16>
    %cst_79 = arith.constant dense<0.000000e+00> : vector<8x128xf32>
    %352 = tpu.matmul %351, %1, %cst_79 {dimension_numbers = #tpu.dot_dimension_numbers<[1], [0], [0], [1], [0, 0, 1, 1], [], []>} : vector<8x64xbf16>, vector<64x128xbf16>, vector<8x128xf32> -> vector<8x128xf32>
    %353 = arith.addf %352, %6 : vector<8x128xf32>
    %354 = arith.negf %353 : vector<8x128xf32>
    %355 = math.exp %354 : vector<8x128xf32>
    %cst_80 = arith.constant 1.000000e+00 : f32
    %356 = vector.broadcast %cst_80 : f32 to vector<8x128xf32>
    %357 = arith.addf %356, %355 : vector<8x128xf32>
    %358 = arith.divf %356, %357 : vector<8x128xf32>
    %359 = vector.extract_strided_slice %358 {offsets = [0, 0], sizes = [8, 32], strides = [1, 1]} : vector<8x128xf32> to vector<8x32xf32>
    %360 = vector.extract_strided_slice %358 {offsets = [0, 32], sizes = [8, 32], strides = [1, 1]} : vector<8x128xf32> to vector<8x32xf32>
    %361 = vector.extract_strided_slice %358 {offsets = [0, 64], sizes = [8, 32], strides = [1, 1]} : vector<8x128xf32> to vector<8x32xf32>
    %cst_81 = arith.constant 2.000000e+00 : f32
    %362 = vector.broadcast %cst_81 : f32 to vector<8x32xf32>
    %363 = arith.mulf %362, %361 : vector<8x32xf32>
    %cst_82 = arith.constant 1.000000e+00 : f32
    %364 = vector.broadcast %cst_82 : f32 to vector<8x32xf32>
    %365 = arith.subf %363, %364 : vector<8x32xf32>
    %366 = vector.extract_strided_slice %358 {offsets = [0, 96], sizes = [8, 32], strides = [1, 1]} : vector<8x128xf32> to vector<8x32xf32>
    %367 = arith.mulf %360, %325 : vector<8x32xf32>
    %368 = arith.mulf %359, %365 : vector<8x32xf32>
    %369 = arith.addf %367, %368 : vector<8x32xf32>
    %370 = math.tanh %369 : vector<8x32xf32>
    %371 = arith.mulf %366, %370 : vector<8x32xf32>
    %372 = arith.truncf %371 : vector<8x32xf32> to vector<8x32xbf16>
    %c0_83 = arith.constant 0 : index
    %c0_84 = arith.constant 0 : index
    %373 = vector.load %arg7[%c0_83, %c0_84] : memref<32x16xbf16, #tpu.memory_space<vmem>>, vector<32x16xbf16>
    %cst_85 = arith.constant dense<0.000000e+00> : vector<8x16xf32>
    %374 = tpu.matmul %372, %373, %cst_85 {dimension_numbers = #tpu.dot_dimension_numbers<[1], [0], [0], [1], [0, 0, 1, 1], [], []>} : vector<8x32xbf16>, vector<32x16xbf16>, vector<8x16xf32> -> vector<8x16xf32>
    %c0_86 = arith.constant 0 : index
    %c0_87 = arith.constant 0 : index
    %375 = vector.load %arg8[%c0_86, %c0_87] : memref<1x16xf32, #tpu.memory_space<vmem>>, vector<1x16xf32>
    %376 = vector.shape_cast %375 : vector<1x16xf32> to vector<1x16xf32>
    %377 = vector.broadcast %376 : vector<1x16xf32> to vector<8x16xf32>
    %378 = arith.addf %374, %377 : vector<8x16xf32>
    %cst_88 = arith.constant 0.000000e+00 : f32
    %379 = vector.broadcast %cst_88 : f32 to vector<8x16xf32>
    %380 = arith.maximumf %378, %379 : vector<8x16xf32>
    %381 = arith.truncf %380 : vector<8x16xf32> to vector<8x16xbf16>
    %c0_89 = arith.constant 0 : index
    %c0_90 = arith.constant 0 : index
    %382 = vector.load %arg9[%c0_89, %c0_90] : memref<16x32xbf16, #tpu.memory_space<vmem>>, vector<16x32xbf16>
    %cst_91 = arith.constant dense<0.000000e+00> : vector<8x32xf32>
    %383 = tpu.matmul %381, %382, %cst_91 {dimension_numbers = #tpu.dot_dimension_numbers<[1], [0], [0], [1], [0, 0, 1, 1], [], []>} : vector<8x16xbf16>, vector<16x32xbf16>, vector<8x32xf32> -> vector<8x32xf32>
    %c0_92 = arith.constant 0 : index
    %c0_93 = arith.constant 0 : index
    %384 = vector.load %arg10[%c0_92, %c0_93] : memref<1x32xf32, #tpu.memory_space<vmem>>, vector<1x32xf32>
    %385 = vector.shape_cast %384 : vector<1x32xf32> to vector<1x32xf32>
    %386 = vector.broadcast %385 : vector<1x32xf32> to vector<8x32xf32>
    %387 = arith.addf %383, %386 : vector<8x32xf32>
    %388 = arith.truncf %387 : vector<8x32xf32> to vector<8x32xbf16>
    %c0_94 = arith.constant 0 : index
    %c0_95 = arith.constant 0 : index
    %389 = vector.load %arg11[%c0_94, %c0_95] : memref<32x128xbf16, #tpu.memory_space<vmem>>, vector<32x128xbf16>
    %cst_96 = arith.constant dense<0.000000e+00> : vector<8x128xf32>
    %390 = tpu.matmul %388, %389, %cst_96 {dimension_numbers = #tpu.dot_dimension_numbers<[1], [0], [0], [1], [0, 0, 1, 1], [], []>} : vector<8x32xbf16>, vector<32x128xbf16>, vector<8x128xf32> -> vector<8x128xf32>
    %c0_97 = arith.constant 0 : index
    %c0_98 = arith.constant 0 : index
    %391 = vector.load %arg13[%c0_97, %c0_98] : memref<1x128xf32, #tpu.memory_space<vmem>>, vector<1x128xf32>
    %392 = vector.shape_cast %391 : vector<1x128xf32> to vector<1x128xf32>
    %393 = vector.broadcast %392 : vector<1x128xf32> to vector<8x128xf32>
    %394 = arith.addf %390, %393 : vector<8x128xf32>
    %395 = arith.truncf %19 : vector<8x32xf32> to vector<8x32xbf16>
    %cst_99 = arith.constant dense<0.000000e+00> : vector<8x128xf32>
    %396 = tpu.matmul %395, %2, %cst_99 {dimension_numbers = #tpu.dot_dimension_numbers<[1], [0], [0], [1], [0, 0, 1, 1], [], []>} : vector<8x32xbf16>, vector<32x128xbf16>, vector<8x128xf32> -> vector<8x128xf32>
    %397 = arith.addf %394, %396 : vector<8x128xf32>
    %398 = arith.negf %397 : vector<8x128xf32>
    %399 = math.exp %398 : vector<8x128xf32>
    %cst_100 = arith.constant 1.000000e+00 : f32
    %400 = vector.broadcast %cst_100 : f32 to vector<8x128xf32>
    %401 = arith.addf %400, %399 : vector<8x128xf32>
    %402 = arith.divf %400, %401 : vector<8x128xf32>
    %403 = vector.extract_strided_slice %402 {offsets = [0, 0], sizes = [8, 32], strides = [1, 1]} : vector<8x128xf32> to vector<8x32xf32>
    %404 = vector.extract_strided_slice %402 {offsets = [0, 32], sizes = [8, 32], strides = [1, 1]} : vector<8x128xf32> to vector<8x32xf32>
    %405 = vector.extract_strided_slice %402 {offsets = [0, 64], sizes = [8, 32], strides = [1, 1]} : vector<8x128xf32> to vector<8x32xf32>
    %cst_101 = arith.constant 2.000000e+00 : f32
    %406 = vector.broadcast %cst_101 : f32 to vector<8x32xf32>
    %407 = arith.mulf %406, %405 : vector<8x32xf32>
    %cst_102 = arith.constant 1.000000e+00 : f32
    %408 = vector.broadcast %cst_102 : f32 to vector<8x32xf32>
    %409 = arith.subf %407, %408 : vector<8x32xf32>
    %410 = vector.extract_strided_slice %402 {offsets = [0, 96], sizes = [8, 32], strides = [1, 1]} : vector<8x128xf32> to vector<8x32xf32>
    %411 = arith.mulf %404, %19 : vector<8x32xf32>
    %412 = arith.mulf %403, %409 : vector<8x32xf32>
    %413 = arith.addf %411, %412 : vector<8x32xf32>
    %414 = math.tanh %413 : vector<8x32xf32>
    %415 = arith.mulf %410, %414 : vector<8x32xf32>
    %416 = tpu.concatenate %415, %19 in 1 : vector<8x32xf32>, vector<8x32xf32> -> vector<8x64xf32>
    %417 = arith.truncf %416 : vector<8x64xf32> to vector<8x64xbf16>
    %cst_103 = arith.constant dense<0.000000e+00> : vector<8x128xf32>
    %418 = tpu.matmul %417, %3, %cst_103 {dimension_numbers = #tpu.dot_dimension_numbers<[1], [0], [0], [1], [0, 0, 1, 1], [], []>} : vector<8x64xbf16>, vector<64x128xbf16>, vector<8x128xf32> -> vector<8x128xf32>
    %419 = arith.addf %418, %9 : vector<8x128xf32>
    %420 = arith.negf %419 : vector<8x128xf32>
    %421 = math.exp %420 : vector<8x128xf32>
    %cst_104 = arith.constant 1.000000e+00 : f32
    %422 = vector.broadcast %cst_104 : f32 to vector<8x128xf32>
    %423 = arith.addf %422, %421 : vector<8x128xf32>
    %424 = arith.divf %422, %423 : vector<8x128xf32>
    %425 = vector.extract_strided_slice %424 {offsets = [0, 0], sizes = [8, 32], strides = [1, 1]} : vector<8x128xf32> to vector<8x32xf32>
    %426 = vector.extract_strided_slice %424 {offsets = [0, 32], sizes = [8, 32], strides = [1, 1]} : vector<8x128xf32> to vector<8x32xf32>
    %427 = vector.extract_strided_slice %424 {offsets = [0, 64], sizes = [8, 32], strides = [1, 1]} : vector<8x128xf32> to vector<8x32xf32>
    %cst_105 = arith.constant 2.000000e+00 : f32
    %428 = vector.broadcast %cst_105 : f32 to vector<8x32xf32>
    %429 = arith.mulf %428, %427 : vector<8x32xf32>
    %cst_106 = arith.constant 1.000000e+00 : f32
    %430 = vector.broadcast %cst_106 : f32 to vector<8x32xf32>
    %431 = arith.subf %429, %430 : vector<8x32xf32>
    %432 = vector.extract_strided_slice %424 {offsets = [0, 96], sizes = [8, 32], strides = [1, 1]} : vector<8x128xf32> to vector<8x32xf32>
    %433 = arith.mulf %426, %19 : vector<8x32xf32>
    %434 = arith.mulf %425, %431 : vector<8x32xf32>
    %435 = arith.addf %433, %434 : vector<8x32xf32>
    %436 = math.tanh %435 : vector<8x32xf32>
    %437 = arith.mulf %432, %436 : vector<8x32xf32>
    %438 = arith.truncf %415 : vector<8x32xf32> to vector<8x32xbf16>
    %cst_107 = arith.constant dense<0.000000e+00> : vector<8x128xf32>
    %439 = tpu.matmul %438, %2, %cst_107 {dimension_numbers = #tpu.dot_dimension_numbers<[1], [0], [0], [1], [0, 0, 1, 1], [], []>} : vector<8x32xbf16>, vector<32x128xbf16>, vector<8x128xf32> -> vector<8x128xf32>
    %440 = arith.addf %394, %439 : vector<8x128xf32>
    %441 = arith.negf %440 : vector<8x128xf32>
    %442 = math.exp %441 : vector<8x128xf32>
    %cst_108 = arith.constant 1.000000e+00 : f32
    %443 = vector.broadcast %cst_108 : f32 to vector<8x128xf32>
    %444 = arith.addf %443, %442 : vector<8x128xf32>
    %445 = arith.divf %443, %444 : vector<8x128xf32>
    %446 = vector.extract_strided_slice %445 {offsets = [0, 0], sizes = [8, 32], strides = [1, 1]} : vector<8x128xf32> to vector<8x32xf32>
    %447 = vector.extract_strided_slice %445 {offsets = [0, 32], sizes = [8, 32], strides = [1, 1]} : vector<8x128xf32> to vector<8x32xf32>
    %448 = vector.extract_strided_slice %445 {offsets = [0, 64], sizes = [8, 32], strides = [1, 1]} : vector<8x128xf32> to vector<8x32xf32>
    %cst_109 = arith.constant 2.000000e+00 : f32
    %449 = vector.broadcast %cst_109 : f32 to vector<8x32xf32>
    %450 = arith.mulf %449, %448 : vector<8x32xf32>
    %cst_110 = arith.constant 1.000000e+00 : f32
    %451 = vector.broadcast %cst_110 : f32 to vector<8x32xf32>
    %452 = arith.subf %450, %451 : vector<8x32xf32>
    %453 = vector.extract_strided_slice %445 {offsets = [0, 96], sizes = [8, 32], strides = [1, 1]} : vector<8x128xf32> to vector<8x32xf32>
    %454 = arith.mulf %447, %413 : vector<8x32xf32>
    %455 = arith.mulf %446, %452 : vector<8x32xf32>
    %456 = arith.addf %454, %455 : vector<8x32xf32>
    %457 = math.tanh %456 : vector<8x32xf32>
    %458 = arith.mulf %453, %457 : vector<8x32xf32>
    %459 = tpu.concatenate %458, %437 in 1 : vector<8x32xf32>, vector<8x32xf32> -> vector<8x64xf32>
    %460 = arith.truncf %459 : vector<8x64xf32> to vector<8x64xbf16>
    %cst_111 = arith.constant dense<0.000000e+00> : vector<8x128xf32>
    %461 = tpu.matmul %460, %3, %cst_111 {dimension_numbers = #tpu.dot_dimension_numbers<[1], [0], [0], [1], [0, 0, 1, 1], [], []>} : vector<8x64xbf16>, vector<64x128xbf16>, vector<8x128xf32> -> vector<8x128xf32>
    %462 = arith.addf %461, %9 : vector<8x128xf32>
    %463 = arith.negf %462 : vector<8x128xf32>
    %464 = math.exp %463 : vector<8x128xf32>
    %cst_112 = arith.constant 1.000000e+00 : f32
    %465 = vector.broadcast %cst_112 : f32 to vector<8x128xf32>
    %466 = arith.addf %465, %464 : vector<8x128xf32>
    %467 = arith.divf %465, %466 : vector<8x128xf32>
    %468 = vector.extract_strided_slice %467 {offsets = [0, 0], sizes = [8, 32], strides = [1, 1]} : vector<8x128xf32> to vector<8x32xf32>
    %469 = vector.extract_strided_slice %467 {offsets = [0, 32], sizes = [8, 32], strides = [1, 1]} : vector<8x128xf32> to vector<8x32xf32>
    %470 = vector.extract_strided_slice %467 {offsets = [0, 64], sizes = [8, 32], strides = [1, 1]} : vector<8x128xf32> to vector<8x32xf32>
    %cst_113 = arith.constant 2.000000e+00 : f32
    %471 = vector.broadcast %cst_113 : f32 to vector<8x32xf32>
    %472 = arith.mulf %471, %470 : vector<8x32xf32>
    %cst_114 = arith.constant 1.000000e+00 : f32
    %473 = vector.broadcast %cst_114 : f32 to vector<8x32xf32>
    %474 = arith.subf %472, %473 : vector<8x32xf32>
    %475 = vector.extract_strided_slice %467 {offsets = [0, 96], sizes = [8, 32], strides = [1, 1]} : vector<8x128xf32> to vector<8x32xf32>
    %476 = arith.mulf %469, %435 : vector<8x32xf32>
    %477 = arith.mulf %468, %474 : vector<8x32xf32>
    %478 = arith.addf %476, %477 : vector<8x32xf32>
    %479 = math.tanh %478 : vector<8x32xf32>
    %480 = arith.mulf %475, %479 : vector<8x32xf32>
    %481 = arith.truncf %458 : vector<8x32xf32> to vector<8x32xbf16>
    %cst_115 = arith.constant dense<0.000000e+00> : vector<8x128xf32>
    %482 = tpu.matmul %481, %2, %cst_115 {dimension_numbers = #tpu.dot_dimension_numbers<[1], [0], [0], [1], [0, 0, 1, 1], [], []>} : vector<8x32xbf16>, vector<32x128xbf16>, vector<8x128xf32> -> vector<8x128xf32>
    %483 = arith.addf %394, %482 : vector<8x128xf32>
    %484 = arith.negf %483 : vector<8x128xf32>
    %485 = math.exp %484 : vector<8x128xf32>
    %cst_116 = arith.constant 1.000000e+00 : f32
    %486 = vector.broadcast %cst_116 : f32 to vector<8x128xf32>
    %487 = arith.addf %486, %485 : vector<8x128xf32>
    %488 = arith.divf %486, %487 : vector<8x128xf32>
    %489 = vector.extract_strided_slice %488 {offsets = [0, 0], sizes = [8, 32], strides = [1, 1]} : vector<8x128xf32> to vector<8x32xf32>
    %490 = vector.extract_strided_slice %488 {offsets = [0, 32], sizes = [8, 32], strides = [1, 1]} : vector<8x128xf32> to vector<8x32xf32>
    %491 = vector.extract_strided_slice %488 {offsets = [0, 64], sizes = [8, 32], strides = [1, 1]} : vector<8x128xf32> to vector<8x32xf32>
    %cst_117 = arith.constant 2.000000e+00 : f32
    %492 = vector.broadcast %cst_117 : f32 to vector<8x32xf32>
    %493 = arith.mulf %492, %491 : vector<8x32xf32>
    %cst_118 = arith.constant 1.000000e+00 : f32
    %494 = vector.broadcast %cst_118 : f32 to vector<8x32xf32>
    %495 = arith.subf %493, %494 : vector<8x32xf32>
    %496 = vector.extract_strided_slice %488 {offsets = [0, 96], sizes = [8, 32], strides = [1, 1]} : vector<8x128xf32> to vector<8x32xf32>
    %497 = arith.mulf %490, %456 : vector<8x32xf32>
    %498 = arith.mulf %489, %495 : vector<8x32xf32>
    %499 = arith.addf %497, %498 : vector<8x32xf32>
    %500 = math.tanh %499 : vector<8x32xf32>
    %501 = arith.mulf %496, %500 : vector<8x32xf32>
    %502 = tpu.concatenate %501, %480 in 1 : vector<8x32xf32>, vector<8x32xf32> -> vector<8x64xf32>
    %503 = arith.truncf %502 : vector<8x64xf32> to vector<8x64xbf16>
    %cst_119 = arith.constant dense<0.000000e+00> : vector<8x128xf32>
    %504 = tpu.matmul %503, %3, %cst_119 {dimension_numbers = #tpu.dot_dimension_numbers<[1], [0], [0], [1], [0, 0, 1, 1], [], []>} : vector<8x64xbf16>, vector<64x128xbf16>, vector<8x128xf32> -> vector<8x128xf32>
    %505 = arith.addf %504, %9 : vector<8x128xf32>
    %506 = arith.negf %505 : vector<8x128xf32>
    %507 = math.exp %506 : vector<8x128xf32>
    %cst_120 = arith.constant 1.000000e+00 : f32
    %508 = vector.broadcast %cst_120 : f32 to vector<8x128xf32>
    %509 = arith.addf %508, %507 : vector<8x128xf32>
    %510 = arith.divf %508, %509 : vector<8x128xf32>
    %511 = vector.extract_strided_slice %510 {offsets = [0, 0], sizes = [8, 32], strides = [1, 1]} : vector<8x128xf32> to vector<8x32xf32>
    %512 = vector.extract_strided_slice %510 {offsets = [0, 32], sizes = [8, 32], strides = [1, 1]} : vector<8x128xf32> to vector<8x32xf32>
    %513 = vector.extract_strided_slice %510 {offsets = [0, 64], sizes = [8, 32], strides = [1, 1]} : vector<8x128xf32> to vector<8x32xf32>
    %cst_121 = arith.constant 2.000000e+00 : f32
    %514 = vector.broadcast %cst_121 : f32 to vector<8x32xf32>
    %515 = arith.mulf %514, %513 : vector<8x32xf32>
    %cst_122 = arith.constant 1.000000e+00 : f32
    %516 = vector.broadcast %cst_122 : f32 to vector<8x32xf32>
    %517 = arith.subf %515, %516 : vector<8x32xf32>
    %518 = vector.extract_strided_slice %510 {offsets = [0, 96], sizes = [8, 32], strides = [1, 1]} : vector<8x128xf32> to vector<8x32xf32>
    %519 = arith.mulf %512, %478 : vector<8x32xf32>
    %520 = arith.mulf %511, %517 : vector<8x32xf32>
    %521 = arith.addf %519, %520 : vector<8x32xf32>
    %522 = math.tanh %521 : vector<8x32xf32>
    %523 = arith.mulf %518, %522 : vector<8x32xf32>
    %524 = arith.truncf %501 : vector<8x32xf32> to vector<8x32xbf16>
    %cst_123 = arith.constant dense<0.000000e+00> : vector<8x128xf32>
    %525 = tpu.matmul %524, %2, %cst_123 {dimension_numbers = #tpu.dot_dimension_numbers<[1], [0], [0], [1], [0, 0, 1, 1], [], []>} : vector<8x32xbf16>, vector<32x128xbf16>, vector<8x128xf32> -> vector<8x128xf32>
    %526 = arith.addf %394, %525 : vector<8x128xf32>
    %527 = arith.negf %526 : vector<8x128xf32>
    %528 = math.exp %527 : vector<8x128xf32>
    %cst_124 = arith.constant 1.000000e+00 : f32
    %529 = vector.broadcast %cst_124 : f32 to vector<8x128xf32>
    %530 = arith.addf %529, %528 : vector<8x128xf32>
    %531 = arith.divf %529, %530 : vector<8x128xf32>
    %532 = vector.extract_strided_slice %531 {offsets = [0, 0], sizes = [8, 32], strides = [1, 1]} : vector<8x128xf32> to vector<8x32xf32>
    %533 = vector.extract_strided_slice %531 {offsets = [0, 32], sizes = [8, 32], strides = [1, 1]} : vector<8x128xf32> to vector<8x32xf32>
    %534 = vector.extract_strided_slice %531 {offsets = [0, 64], sizes = [8, 32], strides = [1, 1]} : vector<8x128xf32> to vector<8x32xf32>
    %cst_125 = arith.constant 2.000000e+00 : f32
    %535 = vector.broadcast %cst_125 : f32 to vector<8x32xf32>
    %536 = arith.mulf %535, %534 : vector<8x32xf32>
    %cst_126 = arith.constant 1.000000e+00 : f32
    %537 = vector.broadcast %cst_126 : f32 to vector<8x32xf32>
    %538 = arith.subf %536, %537 : vector<8x32xf32>
    %539 = vector.extract_strided_slice %531 {offsets = [0, 96], sizes = [8, 32], strides = [1, 1]} : vector<8x128xf32> to vector<8x32xf32>
    %540 = arith.mulf %533, %499 : vector<8x32xf32>
    %541 = arith.mulf %532, %538 : vector<8x32xf32>
    %542 = arith.addf %540, %541 : vector<8x32xf32>
    %543 = math.tanh %542 : vector<8x32xf32>
    %544 = arith.mulf %539, %543 : vector<8x32xf32>
    %545 = tpu.concatenate %544, %523 in 1 : vector<8x32xf32>, vector<8x32xf32> -> vector<8x64xf32>
    %546 = arith.truncf %545 : vector<8x64xf32> to vector<8x64xbf16>
    %cst_127 = arith.constant dense<0.000000e+00> : vector<8x128xf32>
    %547 = tpu.matmul %546, %3, %cst_127 {dimension_numbers = #tpu.dot_dimension_numbers<[1], [0], [0], [1], [0, 0, 1, 1], [], []>} : vector<8x64xbf16>, vector<64x128xbf16>, vector<8x128xf32> -> vector<8x128xf32>
    %548 = arith.addf %547, %9 : vector<8x128xf32>
    %549 = arith.negf %548 : vector<8x128xf32>
    %550 = math.exp %549 : vector<8x128xf32>
    %cst_128 = arith.constant 1.000000e+00 : f32
    %551 = vector.broadcast %cst_128 : f32 to vector<8x128xf32>
    %552 = arith.addf %551, %550 : vector<8x128xf32>
    %553 = arith.divf %551, %552 : vector<8x128xf32>
    %554 = vector.extract_strided_slice %553 {offsets = [0, 0], sizes = [8, 32], strides = [1, 1]} : vector<8x128xf32> to vector<8x32xf32>
    %555 = vector.extract_strided_slice %553 {offsets = [0, 32], sizes = [8, 32], strides = [1, 1]} : vector<8x128xf32> to vector<8x32xf32>
    %556 = vector.extract_strided_slice %553 {offsets = [0, 64], sizes = [8, 32], strides = [1, 1]} : vector<8x128xf32> to vector<8x32xf32>
    %cst_129 = arith.constant 2.000000e+00 : f32
    %557 = vector.broadcast %cst_129 : f32 to vector<8x32xf32>
    %558 = arith.mulf %557, %556 : vector<8x32xf32>
    %cst_130 = arith.constant 1.000000e+00 : f32
    %559 = vector.broadcast %cst_130 : f32 to vector<8x32xf32>
    %560 = arith.subf %558, %559 : vector<8x32xf32>
    %561 = vector.extract_strided_slice %553 {offsets = [0, 96], sizes = [8, 32], strides = [1, 1]} : vector<8x128xf32> to vector<8x32xf32>
    %562 = arith.mulf %555, %521 : vector<8x32xf32>
    %563 = arith.mulf %554, %560 : vector<8x32xf32>
    %564 = arith.addf %562, %563 : vector<8x32xf32>
    %565 = math.tanh %564 : vector<8x32xf32>
    %566 = arith.mulf %561, %565 : vector<8x32xf32>
    %567 = arith.truncf %544 : vector<8x32xf32> to vector<8x32xbf16>
    %cst_131 = arith.constant dense<0.000000e+00> : vector<8x128xf32>
    %568 = tpu.matmul %567, %2, %cst_131 {dimension_numbers = #tpu.dot_dimension_numbers<[1], [0], [0], [1], [0, 0, 1, 1], [], []>} : vector<8x32xbf16>, vector<32x128xbf16>, vector<8x128xf32> -> vector<8x128xf32>
    %569 = arith.addf %394, %568 : vector<8x128xf32>
    %570 = arith.negf %569 : vector<8x128xf32>
    %571 = math.exp %570 : vector<8x128xf32>
    %cst_132 = arith.constant 1.000000e+00 : f32
    %572 = vector.broadcast %cst_132 : f32 to vector<8x128xf32>
    %573 = arith.addf %572, %571 : vector<8x128xf32>
    %574 = arith.divf %572, %573 : vector<8x128xf32>
    %575 = vector.extract_strided_slice %574 {offsets = [0, 0], sizes = [8, 32], strides = [1, 1]} : vector<8x128xf32> to vector<8x32xf32>
    %576 = vector.extract_strided_slice %574 {offsets = [0, 32], sizes = [8, 32], strides = [1, 1]} : vector<8x128xf32> to vector<8x32xf32>
    %577 = vector.extract_strided_slice %574 {offsets = [0, 64], sizes = [8, 32], strides = [1, 1]} : vector<8x128xf32> to vector<8x32xf32>
    %cst_133 = arith.constant 2.000000e+00 : f32
    %578 = vector.broadcast %cst_133 : f32 to vector<8x32xf32>
    %579 = arith.mulf %578, %577 : vector<8x32xf32>
    %cst_134 = arith.constant 1.000000e+00 : f32
    %580 = vector.broadcast %cst_134 : f32 to vector<8x32xf32>
    %581 = arith.subf %579, %580 : vector<8x32xf32>
    %582 = vector.extract_strided_slice %574 {offsets = [0, 96], sizes = [8, 32], strides = [1, 1]} : vector<8x128xf32> to vector<8x32xf32>
    %583 = arith.mulf %576, %542 : vector<8x32xf32>
    %584 = arith.mulf %575, %581 : vector<8x32xf32>
    %585 = arith.addf %583, %584 : vector<8x32xf32>
    %586 = math.tanh %585 : vector<8x32xf32>
    %587 = arith.mulf %582, %586 : vector<8x32xf32>
    %588 = tpu.concatenate %587, %566 in 1 : vector<8x32xf32>, vector<8x32xf32> -> vector<8x64xf32>
    %589 = arith.truncf %588 : vector<8x64xf32> to vector<8x64xbf16>
    %cst_135 = arith.constant dense<0.000000e+00> : vector<8x128xf32>
    %590 = tpu.matmul %589, %3, %cst_135 {dimension_numbers = #tpu.dot_dimension_numbers<[1], [0], [0], [1], [0, 0, 1, 1], [], []>} : vector<8x64xbf16>, vector<64x128xbf16>, vector<8x128xf32> -> vector<8x128xf32>
    %591 = arith.addf %590, %9 : vector<8x128xf32>
    %592 = arith.negf %591 : vector<8x128xf32>
    %593 = math.exp %592 : vector<8x128xf32>
    %cst_136 = arith.constant 1.000000e+00 : f32
    %594 = vector.broadcast %cst_136 : f32 to vector<8x128xf32>
    %595 = arith.addf %594, %593 : vector<8x128xf32>
    %596 = arith.divf %594, %595 : vector<8x128xf32>
    %597 = vector.extract_strided_slice %596 {offsets = [0, 0], sizes = [8, 32], strides = [1, 1]} : vector<8x128xf32> to vector<8x32xf32>
    %598 = vector.extract_strided_slice %596 {offsets = [0, 32], sizes = [8, 32], strides = [1, 1]} : vector<8x128xf32> to vector<8x32xf32>
    %599 = vector.extract_strided_slice %596 {offsets = [0, 64], sizes = [8, 32], strides = [1, 1]} : vector<8x128xf32> to vector<8x32xf32>
    %cst_137 = arith.constant 2.000000e+00 : f32
    %600 = vector.broadcast %cst_137 : f32 to vector<8x32xf32>
    %601 = arith.mulf %600, %599 : vector<8x32xf32>
    %cst_138 = arith.constant 1.000000e+00 : f32
    %602 = vector.broadcast %cst_138 : f32 to vector<8x32xf32>
    %603 = arith.subf %601, %602 : vector<8x32xf32>
    %604 = vector.extract_strided_slice %596 {offsets = [0, 96], sizes = [8, 32], strides = [1, 1]} : vector<8x128xf32> to vector<8x32xf32>
    %605 = arith.mulf %598, %564 : vector<8x32xf32>
    %606 = arith.mulf %597, %603 : vector<8x32xf32>
    %607 = arith.addf %605, %606 : vector<8x32xf32>
    %608 = math.tanh %607 : vector<8x32xf32>
    %609 = arith.mulf %604, %608 : vector<8x32xf32>
    %610 = arith.truncf %587 : vector<8x32xf32> to vector<8x32xbf16>
    %cst_139 = arith.constant dense<0.000000e+00> : vector<8x128xf32>
    %611 = tpu.matmul %610, %2, %cst_139 {dimension_numbers = #tpu.dot_dimension_numbers<[1], [0], [0], [1], [0, 0, 1, 1], [], []>} : vector<8x32xbf16>, vector<32x128xbf16>, vector<8x128xf32> -> vector<8x128xf32>
    %612 = arith.addf %394, %611 : vector<8x128xf32>
    %613 = arith.negf %612 : vector<8x128xf32>
    %614 = math.exp %613 : vector<8x128xf32>
    %cst_140 = arith.constant 1.000000e+00 : f32
    %615 = vector.broadcast %cst_140 : f32 to vector<8x128xf32>
    %616 = arith.addf %615, %614 : vector<8x128xf32>
    %617 = arith.divf %615, %616 : vector<8x128xf32>
    %618 = vector.extract_strided_slice %617 {offsets = [0, 0], sizes = [8, 32], strides = [1, 1]} : vector<8x128xf32> to vector<8x32xf32>
    %619 = vector.extract_strided_slice %617 {offsets = [0, 32], sizes = [8, 32], strides = [1, 1]} : vector<8x128xf32> to vector<8x32xf32>
    %620 = vector.extract_strided_slice %617 {offsets = [0, 64], sizes = [8, 32], strides = [1, 1]} : vector<8x128xf32> to vector<8x32xf32>
    %cst_141 = arith.constant 2.000000e+00 : f32
    %621 = vector.broadcast %cst_141 : f32 to vector<8x32xf32>
    %622 = arith.mulf %621, %620 : vector<8x32xf32>
    %cst_142 = arith.constant 1.000000e+00 : f32
    %623 = vector.broadcast %cst_142 : f32 to vector<8x32xf32>
    %624 = arith.subf %622, %623 : vector<8x32xf32>
    %625 = vector.extract_strided_slice %617 {offsets = [0, 96], sizes = [8, 32], strides = [1, 1]} : vector<8x128xf32> to vector<8x32xf32>
    %626 = arith.mulf %619, %585 : vector<8x32xf32>
    %627 = arith.mulf %618, %624 : vector<8x32xf32>
    %628 = arith.addf %626, %627 : vector<8x32xf32>
    %629 = math.tanh %628 : vector<8x32xf32>
    %630 = arith.mulf %625, %629 : vector<8x32xf32>
    %631 = tpu.concatenate %630, %609 in 1 : vector<8x32xf32>, vector<8x32xf32> -> vector<8x64xf32>
    %632 = arith.truncf %631 : vector<8x64xf32> to vector<8x64xbf16>
    %cst_143 = arith.constant dense<0.000000e+00> : vector<8x128xf32>
    %633 = tpu.matmul %632, %3, %cst_143 {dimension_numbers = #tpu.dot_dimension_numbers<[1], [0], [0], [1], [0, 0, 1, 1], [], []>} : vector<8x64xbf16>, vector<64x128xbf16>, vector<8x128xf32> -> vector<8x128xf32>
    %634 = arith.addf %633, %9 : vector<8x128xf32>
    %635 = arith.negf %634 : vector<8x128xf32>
    %636 = math.exp %635 : vector<8x128xf32>
    %cst_144 = arith.constant 1.000000e+00 : f32
    %637 = vector.broadcast %cst_144 : f32 to vector<8x128xf32>
    %638 = arith.addf %637, %636 : vector<8x128xf32>
    %639 = arith.divf %637, %638 : vector<8x128xf32>
    %640 = vector.extract_strided_slice %639 {offsets = [0, 0], sizes = [8, 32], strides = [1, 1]} : vector<8x128xf32> to vector<8x32xf32>
    %641 = vector.extract_strided_slice %639 {offsets = [0, 32], sizes = [8, 32], strides = [1, 1]} : vector<8x128xf32> to vector<8x32xf32>
    %642 = vector.extract_strided_slice %639 {offsets = [0, 64], sizes = [8, 32], strides = [1, 1]} : vector<8x128xf32> to vector<8x32xf32>
    %cst_145 = arith.constant 2.000000e+00 : f32
    %643 = vector.broadcast %cst_145 : f32 to vector<8x32xf32>
    %644 = arith.mulf %643, %642 : vector<8x32xf32>
    %cst_146 = arith.constant 1.000000e+00 : f32
    %645 = vector.broadcast %cst_146 : f32 to vector<8x32xf32>
    %646 = arith.subf %644, %645 : vector<8x32xf32>
    %647 = vector.extract_strided_slice %639 {offsets = [0, 96], sizes = [8, 32], strides = [1, 1]} : vector<8x128xf32> to vector<8x32xf32>
    %648 = arith.mulf %641, %607 : vector<8x32xf32>
    %649 = arith.mulf %640, %646 : vector<8x32xf32>
    %650 = arith.addf %648, %649 : vector<8x32xf32>
    %651 = math.tanh %650 : vector<8x32xf32>
    %652 = arith.mulf %647, %651 : vector<8x32xf32>
    %653 = arith.truncf %630 : vector<8x32xf32> to vector<8x32xbf16>
    %cst_147 = arith.constant dense<0.000000e+00> : vector<8x128xf32>
    %654 = tpu.matmul %653, %2, %cst_147 {dimension_numbers = #tpu.dot_dimension_numbers<[1], [0], [0], [1], [0, 0, 1, 1], [], []>} : vector<8x32xbf16>, vector<32x128xbf16>, vector<8x128xf32> -> vector<8x128xf32>
    %655 = arith.addf %394, %654 : vector<8x128xf32>
    %656 = arith.negf %655 : vector<8x128xf32>
    %657 = math.exp %656 : vector<8x128xf32>
    %cst_148 = arith.constant 1.000000e+00 : f32
    %658 = vector.broadcast %cst_148 : f32 to vector<8x128xf32>
    %659 = arith.addf %658, %657 : vector<8x128xf32>
    %660 = arith.divf %658, %659 : vector<8x128xf32>
    %661 = vector.extract_strided_slice %660 {offsets = [0, 0], sizes = [8, 32], strides = [1, 1]} : vector<8x128xf32> to vector<8x32xf32>
    %662 = vector.extract_strided_slice %660 {offsets = [0, 32], sizes = [8, 32], strides = [1, 1]} : vector<8x128xf32> to vector<8x32xf32>
    %663 = vector.extract_strided_slice %660 {offsets = [0, 64], sizes = [8, 32], strides = [1, 1]} : vector<8x128xf32> to vector<8x32xf32>
    %cst_149 = arith.constant 2.000000e+00 : f32
    %664 = vector.broadcast %cst_149 : f32 to vector<8x32xf32>
    %665 = arith.mulf %664, %663 : vector<8x32xf32>
    %cst_150 = arith.constant 1.000000e+00 : f32
    %666 = vector.broadcast %cst_150 : f32 to vector<8x32xf32>
    %667 = arith.subf %665, %666 : vector<8x32xf32>
    %668 = vector.extract_strided_slice %660 {offsets = [0, 96], sizes = [8, 32], strides = [1, 1]} : vector<8x128xf32> to vector<8x32xf32>
    %669 = arith.mulf %662, %628 : vector<8x32xf32>
    %670 = arith.mulf %661, %667 : vector<8x32xf32>
    %671 = arith.addf %669, %670 : vector<8x32xf32>
    %672 = math.tanh %671 : vector<8x32xf32>
    %673 = arith.mulf %668, %672 : vector<8x32xf32>
    %674 = tpu.concatenate %673, %652 in 1 : vector<8x32xf32>, vector<8x32xf32> -> vector<8x64xf32>
    %675 = arith.truncf %674 : vector<8x64xf32> to vector<8x64xbf16>
    %cst_151 = arith.constant dense<0.000000e+00> : vector<8x128xf32>
    %676 = tpu.matmul %675, %3, %cst_151 {dimension_numbers = #tpu.dot_dimension_numbers<[1], [0], [0], [1], [0, 0, 1, 1], [], []>} : vector<8x64xbf16>, vector<64x128xbf16>, vector<8x128xf32> -> vector<8x128xf32>
    %677 = arith.addf %676, %9 : vector<8x128xf32>
    %678 = arith.negf %677 : vector<8x128xf32>
    %679 = math.exp %678 : vector<8x128xf32>
    %cst_152 = arith.constant 1.000000e+00 : f32
    %680 = vector.broadcast %cst_152 : f32 to vector<8x128xf32>
    %681 = arith.addf %680, %679 : vector<8x128xf32>
    %682 = arith.divf %680, %681 : vector<8x128xf32>
    %683 = vector.extract_strided_slice %682 {offsets = [0, 0], sizes = [8, 32], strides = [1, 1]} : vector<8x128xf32> to vector<8x32xf32>
    %684 = vector.extract_strided_slice %682 {offsets = [0, 32], sizes = [8, 32], strides = [1, 1]} : vector<8x128xf32> to vector<8x32xf32>
    %685 = vector.extract_strided_slice %682 {offsets = [0, 64], sizes = [8, 32], strides = [1, 1]} : vector<8x128xf32> to vector<8x32xf32>
    %cst_153 = arith.constant 2.000000e+00 : f32
    %686 = vector.broadcast %cst_153 : f32 to vector<8x32xf32>
    %687 = arith.mulf %686, %685 : vector<8x32xf32>
    %cst_154 = arith.constant 1.000000e+00 : f32
    %688 = vector.broadcast %cst_154 : f32 to vector<8x32xf32>
    %689 = arith.subf %687, %688 : vector<8x32xf32>
    %690 = vector.extract_strided_slice %682 {offsets = [0, 96], sizes = [8, 32], strides = [1, 1]} : vector<8x128xf32> to vector<8x32xf32>
    %691 = arith.mulf %684, %650 : vector<8x32xf32>
    %692 = arith.mulf %683, %689 : vector<8x32xf32>
    %693 = arith.addf %691, %692 : vector<8x32xf32>
    %694 = math.tanh %693 : vector<8x32xf32>
    %695 = arith.mulf %690, %694 : vector<8x32xf32>
    %696 = arith.truncf %673 : vector<8x32xf32> to vector<8x32xbf16>
    %cst_155 = arith.constant dense<0.000000e+00> : vector<8x128xf32>
    %697 = tpu.matmul %696, %2, %cst_155 {dimension_numbers = #tpu.dot_dimension_numbers<[1], [0], [0], [1], [0, 0, 1, 1], [], []>} : vector<8x32xbf16>, vector<32x128xbf16>, vector<8x128xf32> -> vector<8x128xf32>
    %698 = arith.addf %394, %697 : vector<8x128xf32>
    %699 = arith.negf %698 : vector<8x128xf32>
    %700 = math.exp %699 : vector<8x128xf32>
    %cst_156 = arith.constant 1.000000e+00 : f32
    %701 = vector.broadcast %cst_156 : f32 to vector<8x128xf32>
    %702 = arith.addf %701, %700 : vector<8x128xf32>
    %703 = arith.divf %701, %702 : vector<8x128xf32>
    %704 = vector.extract_strided_slice %703 {offsets = [0, 0], sizes = [8, 32], strides = [1, 1]} : vector<8x128xf32> to vector<8x32xf32>
    %705 = vector.extract_strided_slice %703 {offsets = [0, 32], sizes = [8, 32], strides = [1, 1]} : vector<8x128xf32> to vector<8x32xf32>
    %706 = vector.extract_strided_slice %703 {offsets = [0, 64], sizes = [8, 32], strides = [1, 1]} : vector<8x128xf32> to vector<8x32xf32>
    %cst_157 = arith.constant 2.000000e+00 : f32
    %707 = vector.broadcast %cst_157 : f32 to vector<8x32xf32>
    %708 = arith.mulf %707, %706 : vector<8x32xf32>
    %cst_158 = arith.constant 1.000000e+00 : f32
    %709 = vector.broadcast %cst_158 : f32 to vector<8x32xf32>
    %710 = arith.subf %708, %709 : vector<8x32xf32>
    %711 = vector.extract_strided_slice %703 {offsets = [0, 96], sizes = [8, 32], strides = [1, 1]} : vector<8x128xf32> to vector<8x32xf32>
    %712 = arith.mulf %705, %671 : vector<8x32xf32>
    %713 = arith.mulf %704, %710 : vector<8x32xf32>
    %714 = arith.addf %712, %713 : vector<8x32xf32>
    %715 = math.tanh %714 : vector<8x32xf32>
    %716 = arith.mulf %711, %715 : vector<8x32xf32>
    %717 = tpu.concatenate %716, %695 in 1 : vector<8x32xf32>, vector<8x32xf32> -> vector<8x64xf32>
    %718 = arith.truncf %717 : vector<8x64xf32> to vector<8x64xbf16>
    %cst_159 = arith.constant dense<0.000000e+00> : vector<8x128xf32>
    %719 = tpu.matmul %718, %3, %cst_159 {dimension_numbers = #tpu.dot_dimension_numbers<[1], [0], [0], [1], [0, 0, 1, 1], [], []>} : vector<8x64xbf16>, vector<64x128xbf16>, vector<8x128xf32> -> vector<8x128xf32>
    %720 = arith.addf %719, %9 : vector<8x128xf32>
    %721 = arith.negf %720 : vector<8x128xf32>
    %722 = math.exp %721 : vector<8x128xf32>
    %cst_160 = arith.constant 1.000000e+00 : f32
    %723 = vector.broadcast %cst_160 : f32 to vector<8x128xf32>
    %724 = arith.addf %723, %722 : vector<8x128xf32>
    %725 = arith.divf %723, %724 : vector<8x128xf32>
    %726 = vector.extract_strided_slice %725 {offsets = [0, 0], sizes = [8, 32], strides = [1, 1]} : vector<8x128xf32> to vector<8x32xf32>
    %727 = vector.extract_strided_slice %725 {offsets = [0, 32], sizes = [8, 32], strides = [1, 1]} : vector<8x128xf32> to vector<8x32xf32>
    %728 = vector.extract_strided_slice %725 {offsets = [0, 64], sizes = [8, 32], strides = [1, 1]} : vector<8x128xf32> to vector<8x32xf32>
    %cst_161 = arith.constant 2.000000e+00 : f32
    %729 = vector.broadcast %cst_161 : f32 to vector<8x32xf32>
    %730 = arith.mulf %729, %728 : vector<8x32xf32>
    %cst_162 = arith.constant 1.000000e+00 : f32
    %731 = vector.broadcast %cst_162 : f32 to vector<8x32xf32>
    %732 = arith.subf %730, %731 : vector<8x32xf32>
    %733 = vector.extract_strided_slice %725 {offsets = [0, 96], sizes = [8, 32], strides = [1, 1]} : vector<8x128xf32> to vector<8x32xf32>
    %734 = arith.mulf %727, %693 : vector<8x32xf32>
    %735 = arith.mulf %726, %732 : vector<8x32xf32>
    %736 = arith.addf %734, %735 : vector<8x32xf32>
    %737 = math.tanh %736 : vector<8x32xf32>
    %738 = arith.mulf %733, %737 : vector<8x32xf32>
    %739 = tpu.concatenate %437, %480, %523, %566, %609, %652, %695, %738 in 1 : vector<8x32xf32>, vector<8x32xf32>, vector<8x32xf32>, vector<8x32xf32>, vector<8x32xf32>, vector<8x32xf32>, vector<8x32xf32>, vector<8x32xf32> -> vector<8x256xf32>
    %740 = arith.truncf %739 : vector<8x256xf32> to vector<8x256xbf16>
    %c0_163 = arith.constant 0 : index
    %c0_164 = arith.constant 0 : index
    %741 = vector.load %arg16[%c0_163, %c0_164] : memref<256x128xbf16, #tpu.memory_space<vmem>>, vector<256x128xbf16>
    %cst_165 = arith.constant dense<0.000000e+00> : vector<8x128xf32>
    %742 = tpu.matmul %740, %741, %cst_165 {dimension_numbers = #tpu.dot_dimension_numbers<[1], [0], [0], [1], [0, 0, 1, 1], [], []>} : vector<8x256xbf16>, vector<256x128xbf16>, vector<8x128xf32> -> vector<8x128xf32>
    %c0_166 = arith.constant 0 : index
    %c0_167 = arith.constant 0 : index
    %743 = vector.load %arg17[%c0_166, %c0_167] : memref<1x128xf32, #tpu.memory_space<vmem>>, vector<1x128xf32>
    %744 = vector.shape_cast %743 : vector<1x128xf32> to vector<1x128xf32>
    %745 = vector.broadcast %744 : vector<1x128xf32> to vector<8x128xf32>
    %746 = arith.addf %742, %745 : vector<8x128xf32>
    %c0_168 = arith.constant 0 : index
    %c0_169 = arith.constant 0 : index
    %747 = vector.load %arg18[%c0_168, %c0_169] : memref<8x128xf32, #tpu.memory_space<vmem>>, vector<8x128xf32>
    tpu.vector_store %arg18[%c0_168, %c0_169], %746 {strides = array<i32>} : memref<8x128xf32, #tpu.memory_space<vmem>>, vector<8x128xf32>,
    return
  }
  func.func @transform_0(%arg0: i32) -> (i32, i32, i32) {
    %c0_i32 = arith.constant 0 : i32
    %c0_i32_0 = arith.constant 0 : i32
    %c0_i32_1 = arith.constant 0 : i32
    return %c0_i32, %arg0, %c0_i32_0 : i32, i32, i32
  }
  func.func @transform_1(%arg0: i32) -> (i32, i32) {
    %c0_i32 = arith.constant 0 : i32
    %c0_i32_0 = arith.constant 0 : i32
    %c0_i32_1 = arith.constant 0 : i32
    return %c0_i32, %c0_i32_0 : i32, i32
  }
  func.func @transform_2(%arg0: i32) -> (i32, i32) {
    %c0_i32 = arith.constant 0 : i32
    %c0_i32_0 = arith.constant 0 : i32
    %c0_i32_1 = arith.constant 0 : i32
    return %c0_i32, %c0_i32_0 : i32, i32
  }
  func.func @transform_3(%arg0: i32) -> (i32, i32) {
    %c0_i32 = arith.constant 0 : i32
    %c0_i32_0 = arith.constant 0 : i32
    %c0_i32_1 = arith.constant 0 : i32
    return %c0_i32, %c0_i32_0 : i32, i32
  }
  func.func @transform_4(%arg0: i32) -> (i32, i32) {
    %c0_i32 = arith.constant 0 : i32
    %c0_i32_0 = arith.constant 0 : i32
    %c0_i32_1 = arith.constant 0 : i32
    return %c0_i32, %c0_i32_0 : i32, i32
  }
  func.func @transform_5(%arg0: i32) -> (i32, i32) {
    %c0_i32 = arith.constant 0 : i32
    %c0_i32_0 = arith.constant 0 : i32
    %c0_i32_1 = arith.constant 0 : i32
    return %c0_i32, %c0_i32_0 : i32, i32
  }
  func.func @transform_6(%arg0: i32) -> (i32, i32) {
    %c0_i32 = arith.constant 0 : i32
    %c0_i32_0 = arith.constant 0 : i32
    %c0_i32_1 = arith.constant 0 : i32
    return %c0_i32, %c0_i32_0 : i32, i32
  }
  func.func @transform_7(%arg0: i32) -> (i32, i32) {
    %c0_i32 = arith.constant 0 : i32
    %c0_i32_0 = arith.constant 0 : i32
    %c0_i32_1 = arith.constant 0 : i32
    return %c0_i32, %c0_i32_0 : i32, i32
  }
  func.func @transform_8(%arg0: i32) -> (i32, i32) {
    %c0_i32 = arith.constant 0 : i32
    %c0_i32_0 = arith.constant 0 : i32
    %c0_i32_1 = arith.constant 0 : i32
    return %c0_i32, %c0_i32_0 : i32, i32
  }
  func.func @transform_9(%arg0: i32) -> (i32, i32) {
    %c0_i32 = arith.constant 0 : i32
    %c0_i32_0 = arith.constant 0 : i32
    %c0_i32_1 = arith.constant 0 : i32
    return %c0_i32, %c0_i32_0 : i32, i32
  }
  func.func @transform_10(%arg0: i32) -> (i32, i32) {
    %c0_i32 = arith.constant 0 : i32
    %c0_i32_0 = arith.constant 0 : i32
    %c0_i32_1 = arith.constant 0 : i32
    return %c0_i32, %c0_i32_0 : i32, i32
  }
  func.func @transform_11(%arg0: i32) -> (i32, i32) {
    %c0_i32 = arith.constant 0 : i32
    %c0_i32_0 = arith.constant 0 : i32
    %c0_i32_1 = arith.constant 0 : i32
    return %c0_i32, %c0_i32_0 : i32, i32
  }
  func.func @transform_12(%arg0: i32) -> (i32, i32) {
    %c0_i32 = arith.constant 0 : i32
    %c0_i32_0 = arith.constant 0 : i32
    %c0_i32_1 = arith.constant 0 : i32
    return %c0_i32, %c0_i32_0 : i32, i32
  }
  func.func @transform_13(%arg0: i32) -> (i32, i32) {
    %c0_i32 = arith.constant 0 : i32
    %c0_i32_0 = arith.constant 0 : i32
    %c0_i32_1 = arith.constant 0 : i32
    return %c0_i32, %c0_i32_0 : i32, i32
  }
  func.func @transform_14(%arg0: i32) -> (i32, i32) {
    %c0_i32 = arith.constant 0 : i32
    %c0_i32_0 = arith.constant 0 : i32
    %c0_i32_1 = arith.constant 0 : i32
    return %c0_i32, %c0_i32_0 : i32, i32
  }
  func.func @transform_15(%arg0: i32) -> (i32, i32) {
    %c0_i32 = arith.constant 0 : i32
    %c0_i32_0 = arith.constant 0 : i32
    %c0_i32_1 = arith.constant 0 : i32
    return %c0_i32, %c0_i32_0 : i32, i32
  }
  func.func @transform_16(%arg0: i32) -> (i32, i32) {
    %c0_i32 = arith.constant 0 : i32
    %c0_i32_0 = arith.constant 0 : i32
    %c0_i32_1 = arith.constant 0 : i32
    return %c0_i32, %c0_i32_0 : i32, i32
  }
  func.func @transform_17(%arg0: i32) -> (i32, i32) {
    %c0_i32 = arith.constant 0 : i32
    %c0_i32_0 = arith.constant 0 : i32
    return %arg0, %c0_i32 : i32, i32
  }
}

</mosaic_0001>

<bundles_post_ra>
// kernel: tpu_custom_call.1
= control target key start
LH: loop header
LB: loop body
LE: loop exit
PB: predicated region body
PF: predicated region fallthrough
CT: control target
= control target key end

     0   :  { %s6204_s0 = inlined_call_operand.hbm [shape: f32[8,16,16], index: 0, kind: input, shape index: {}]   ;;  %s6205_s1 = inlined_call_operand.vmem [shape: bf16[16,128], index: 1, kind: input, shape index: {}]   ;;  %s6206_s2 = inlined_call_operand.hbm [shape: bf16[32,128], index: 2, kind: input, shape index: {}]   ;;  %s6207_s3 = inlined_call_operand.vmem [shape: f32[1,128], index: 3, kind: input, shape index: {}]   ;;  %s6208_s4 = inlined_call_operand.hbm [shape: bf16[64,128], index: 4, kind: input, shape index: {}]   ;;  %s6209_s5 = inlined_call_operand.vmem [shape: f32[1,128], index: 5, kind: input, shape index: {}]   ;;  %s6210_s6 = inlined_call_operand.vmem [shape: bf16[32,16], index: 6, kind: input, shape index: {}]   ;;  %s6211_s7 = inlined_call_operand.vmem [shape: f32[1,16], index: 7, kind: input, shape index: {}]   ;;  %s6212_s8 = inlined_call_operand.hbm [shape: bf16[16,32], index: 8, kind: input, shape index: {}]   ;;  %s6213_s9 = inlined_call_operand.vmem [shape: f32[1,32], index: 9, kind: input, shape index: {}]   ;;  %s6214_s10 = inlined_call_operand.hbm [shape: bf16[32,128], index: 10, kind: input, shape index: {}]   ;;  %s6215_s11 = inlined_call_operand.hbm [shape: bf16[32,128], index: 11, kind: input, shape index: {}]   ;;  %s6216_s12 = inlined_call_operand.vmem [shape: f32[1,128], index: 12, kind: input, shape index: {}]   ;;  %s6217_s13 = inlined_call_operand.vmem [shape: bf16[64,128], index: 13, kind: input, shape index: {}]   ;;  %s6218_s14 = inlined_call_operand.vmem [shape: f32[1,128], index: 14, kind: input, shape index: {}]   ;;  %s6219_s15 = inlined_call_operand.hbm [shape: bf16[256,128], index: 15, kind: input, shape index: {}]   ;;  %s6220_s16 = inlined_call_operand.vmem [shape: f32[1,128], index: 16, kind: input, shape index: {}]   ;;  %s6221_s17 = inlined_call_operand.hbm [shape: f32[16,128], index: 17, kind: output, shape index: {}]  }
   0x1   :  { %6229 = sst [smem:[#allocation22_spill]] %s6204_s0 }
   0x2   :  { %6230 = sst [smem:[#allocation23_spill]] %s6205_s1 }
   0x3   :  { %6231 = sst [smem:[#allocation24_spill]] %s6206_s2 }
   0x4   :  { %6232 = sst [smem:[#allocation25_spill]] %s6208_s4 }
   0x5   :  { %6233 = sst [smem:[#allocation26_spill]] %s6212_s8 }
   0x6   :  { %6234 = sst [smem:[#allocation27_spill]] %s6214_s10 }
   0x7   :  { %6235 = sst [smem:[#allocation28_spill]] %s6215_s11 }
   0x8   :  { %6236 = sst [smem:[#allocation29_spill]] %s6219_s15 }
   0x9   :  { %6237 = sst [smem:[#allocation30_spill]] %s6220_s16 }
   0xa   :  { %6238 = sst [smem:[#allocation31_spill]] %s6221_s17 }
   0xb   :  { %22 = vsyncpa [#allocation3], 0 }
   0xc   :  { %24 = vsyncpa [#allocation3 + $0x1], 0 }
   0xd   :  { %25 = vsyncpa [#allocation6], 0 }
   0xe   :  { %26 = vsyncpa [#allocation9], 0 }
   0xf   :  { %27 = vsyncpa [#allocation12], 0 }
  0x10   :  { %28 = vsyncpa [#allocation4], 0 }
  0x11   :  { %30 = vsyncpa [#allocation4 + $0x1], 0  ;;  %s5213_s24 = smov 0   ;;  %s5215_s25 = smov 0  }
  0x12   :  { %s5217_s26 = smov 0   ;;  %s5219_s27 = smov 0  }
  0x13 LB: > { %6239 = sst [smem:[#allocation20_spill]] %s5098_s26  ;;  %s5104_s28 = smov [#allocation5]   ;;  %s5102_s27 = sphi %s5219_s27, %s6274_s27   ;;  %s5098_s26 = sphi %s5217_s26, %s6271_s26   ;;  %s5094_s25 = sphi %s5215_s25, %s6273_s25   ;;  %s5090_s24 = sphi %s5213_s24, %s6272_s24  }
  0x14   : > { %s444_s29 = sshll.u32 %s5104_s28, 4  ;;  %s5234_s0 = sadd.s32 4294967295, %s5102_s27   ;;  %s445_s29 = int_to_ptr.vmem [resolvable:$true] %s444_s29 }
  0x15   : > { %p3804_p0 = scmp.ge.s32.totalorder %s5102_s27, 1  ;;  %p6224_p1 = scmp.eq.s32.totalorder %s5234_s0, 0 }
  0x16   : > { %p429_p2 = scmp.lt.s32.totalorder %s5102_s27, 3  ;;  %s5105_s18 = smov [#allocation8]  }
  0x17   : > { %s482_s19 = sshll.u32 %s5105_s18, 4  ;;  %s5106_s20 = smov [#allocation11]   ;;  %s5252_s19 = int_to_ptr.vmem [resolvable:$true] %s482_s19 }
  0x18   : > { %p5239_p3 = pnand %p3804_p0, %p429_p2  ;;  %s511_s21 = sshll.u32 %s5106_s20, 4  ;;  %s5254_s21 = int_to_ptr.vmem [resolvable:$true] %s511_s21 }
  0x19   : > { %s4853_s23 = scalar_lea.vmem %s445_s29, 256  ;;  %p4861_p11 = scmp.lt.s32.totalorder %s445_s29, %s445_s29 }
  0x1a   : > { %s6240_s30 = scalar_select %p5239_p3, 1, 0 }
  0x1b   : > { %p4512_p5 = pneg %p5239_p3  ;;  %p4854_p8 = scmp.ne.s32.totalorder %s445_s29, %s4853_s23 }
  0x1c   : > { %p4862_p12 = scmp.lt.s32.totalorder %s4853_s23, %s4853_s23 }
  0x1d   : > { %p5248_p6 = pnand %p4512_p5, %p6224_p1 }
  0x1e   : > { %p4863_p13 = por %p4862_p12, %p4861_p11 }
  0x1f   : > { %p5258_p7 = pneg %p5248_p6 }
  0x21   : > { %p4856_p9 = pnand %p4854_p8, %p5258_p7 }
  0x23   : > { %p4857_p10 = pneg %p4856_p9 }
  0x25   : > { %p4864_p0 = pnand %p4863_p13, %p4857_p10 }
  0x27   : > { %4867 = shalt.err (!%p4864_p0)
}
  0x28   : > { %s5107_s28 = smov 64   ;;  %s5108_s18 = smov 4  }
  0x29   : > { %s6243_s2 = sld [smem:[#allocation24_spill]]  ;;  %s4879_s16 = scalar_lea.vmem %s5252_s19, 128 }
  0x2a   : > { %p4880_p2 = scmp.ne.s32.totalorder %s5252_s19, %s4879_s16  ;;  %p4887_p9 = scmp.lt.s32.totalorder %s5252_s19, %s5252_s19 }
  0x2b   : > { %p4888_p10 = scmp.lt.s32.totalorder %s4879_s16, %s4879_s16 }
  0x2c   : > { %p4882_p5 = pnand %p4880_p2, %p5258_p7 }
  0x2d   : > { %p4889_p11 = por %p4888_p10, %p4887_p9 }
  0x2e   : > { %p4883_p8 = pneg %p4882_p5 }
  0x2f   : > { %4515 = dma.hbm_to_vmem [thread:$0]  (!%p5248_p6), %s6243_s2, 256, %s445_s29, [#allocation6], %s5107_s28, %s5107_s28, %s5108_s18  }
  0x30   : > { %p4890_p12 = pnand %p4889_p11, %p4883_p8 }
  0x32   : > { %4893 = shalt.err (!%p4890_p12)
}
  0x33   : > { %s6244_s8 = sld [smem:[#allocation26_spill]]  ;;  %s4905_s29 = scalar_lea.vmem %s5254_s21, 256 }
  0x34   : > { %p4906_p13 = scmp.ne.s32.totalorder %s5254_s21, %s4905_s29  ;;  %p4913_p5 = scmp.lt.s32.totalorder %s5254_s21, %s5254_s21 }
  0x35   : > { %p4914_p8 = scmp.lt.s32.totalorder %s4905_s29, %s4905_s29 }
  0x36   : > { %p4908_p0 = pnand %p4906_p13, %p5258_p7 }
  0x37   : > { %p4915_p9 = por %p4914_p8, %p4913_p5 }
  0x38   : > { %p4909_p2 = pneg %p4908_p0 }
  0x39   : > { %4521 = dma.hbm_to_vmem [thread:$0]  (!%p5248_p6), %s6244_s8, 128, %s5252_s19, [#allocation9], %s5107_s28, %s5107_s28, %s5108_s18  }
  0x3a   : > { %p4916_p10 = pnand %p4915_p9, %p4909_p2 }
  0x3c   : > { %4919 = shalt.err (!%p4916_p10)
}
  0x3d   : > { %s6245_s11 = sld [smem:[#allocation28_spill]]  ;;  %s5109_s19 = smov [#allocation7]  }
  0x3e   : > { %s460_s23 = sshll.u32 %s5109_s19, 4  ;;  %s5110_s17 = smov [#allocation10]   ;;  %s461_s23 = int_to_ptr.vmem [resolvable:$true] %s460_s23 }
  0x3f   : > { %s498_s2 = sshll.u32 %s5110_s17, 4  ;;  %s4931_s29 = scalar_lea.vmem %s461_s23, 512  ;;  %s499_s2 = int_to_ptr.vmem [resolvable:$true] %s498_s2 }
  0x40   : > { %p4932_p11 = scmp.ne.s32.totalorder %s461_s23, %s4931_s29  ;;  %p4939_p0 = scmp.lt.s32.totalorder %s461_s23, %s461_s23 }
  0x41   : > { %p4940_p2 = scmp.lt.s32.totalorder %s4931_s29, %s4931_s29 }
  0x42   : > { %p4934_p12 = pnand %p4932_p11, %p5258_p7 }
  0x43   : > { %4527 = dma.hbm_to_vmem [thread:$0]  (!%p5248_p6), %s6245_s11, 256, %s5254_s21, [#allocation12], %s5107_s28, %s5107_s28, %s5108_s18  }
  0x44   : > { %p4935_p13 = pneg %p4934_p12  ;;  %p4941_p5 = por %p4940_p2, %p4939_p0 }
  0x46   : > { %p4942_p8 = pnand %p4941_p5, %p4935_p13 }
  0x48   : > { %4945 = shalt.err (!%p4942_p8)
}
  0x49   : > { %s6246_s4 = sld [smem:[#allocation25_spill]]  ;;  %s4957_s20 = scalar_lea.vmem %s499_s2, 256 }
  0x4a   : > { %p4958_p9 = scmp.ne.s32.totalorder %s499_s2, %s4957_s20  ;;  %p4965_p12 = scmp.lt.s32.totalorder %s499_s2, %s499_s2 }
  0x4b   : > { %p4966_p0 = scmp.lt.s32.totalorder %s4957_s20, %s4957_s20 }
  0x4c   : > { %p4960_p10 = pnand %p4958_p9, %p5258_p7 }
  0x4d   : > { %p4967_p13 = por %p4966_p0, %p4965_p12 }
  0x4e   : > { %p4961_p11 = pneg %p4960_p10 }
  0x4f   : > { %4518 = dma.hbm_to_vmem [thread:$0]  (!%p5248_p6), %s6246_s4, 512, %s461_s23, [#allocation6], %s5107_s28, %s5107_s28, %s5108_s18  }
  0x50   : > { %p4968_p2 = pnand %p4967_p13, %p4961_p11 }
  0x52   : > { %4971 = shalt.err (!%p4968_p2)
}
  0x53   : > { %s6247_s10 = sld [smem:[#allocation27_spill]]  ;;  %s5111_s23 = smov [#allocation13]  }
  0x54   : > { %s533_s29 = sshll.u32 %s5111_s23, 4  ;;  %s534_s29 = int_to_ptr.vmem [resolvable:$true] %s533_s29 }
  0x55   : > { %s4983_s21 = scalar_lea.vmem %s534_s29, 2048  ;;  %p4991_p10 = scmp.lt.s32.totalorder %s534_s29, %s534_s29 }
  0x56   : > { %p4984_p5 = scmp.ne.s32.totalorder %s534_s29, %s4983_s21  ;;  %p4992_p11 = scmp.lt.s32.totalorder %s4983_s21, %s4983_s21 }
  0x58   : > { %p4986_p8 = pnand %p4984_p5, %p5258_p7  ;;  %p4993_p12 = por %p4992_p11, %p4991_p10 }
  0x59   : > { %4524 = dma.hbm_to_vmem [thread:$0]  (!%p5248_p6), %s6247_s10, 256, %s499_s2, [#allocation9], %s5107_s28, %s5107_s28, %s5108_s18  }
  0x5a   : > { %p4987_p9 = pneg %p4986_p8 }
  0x5c   : > { %p4994_p0 = pnand %p4993_p12, %p4987_p9 }
  0x5e   : > { %4997 = shalt.err (!%p4994_p0)
}
  0x5f   : > { %s6248_s15 = sld [smem:[#allocation29_spill]]  ;;  %s3803_s1 = sadd.s32 4294967294, %s5102_s27  }
  0x60   : > { %s5334_s22 = sadd.s32 1, %s5102_s27   ;;  %s43_s19 = sadd.s32 1, %s5098_s26 }
  0x61   : > { %s40_s20 = ssub.s32 %s5102_s27, %s5334_s22  ;;  %p50_p13 = scmp.ne.s32.totalorder %s5098_s26, %s5094_s25 }
  0x62   : > { %p41_p7 = scmp.eq.s32.totalorder %s40_s20, 0  ;;  %p51_p2 = scmp.eq.s32.totalorder %s5102_s27, 0 }
  0x63   : > { %p56_p5 = scmp.ne.s32.totalorder %s5094_s25, %s5090_s24  ;;  %p416_p9 = scmp.eq.s32.totalorder %s5234_s0, 1 }
  0x64   : > { %s5345_s17 = scalar_select %p41_p7, %s5098_s26, %s43_s19  }
  0x65   : > { %4530 = dma.hbm_to_vmem [thread:$0]  (!%p5248_p6), %s6248_s15, 2048, %s534_s29, [#allocation12], %s5107_s28, %s5107_s28, %s5108_s18  }
  0x66   : > { %6249 = sst [smem:[#allocation21_spill]] %s5345_s17  ;;  %p5347_p8 = por %p51_p2, %p50_p13 }
  0x67   : > { %p5353_p6 = por %p6224_p1, %p56_p5  ;;  %p422_p10 = scmp.eq.s32.totalorder %s3803_s1, 1 }
  0x68   : > { %p4545_p11 = scmp.lt.s32.totalorder %s5102_s27, 2  ;;  %s550_s18 = sand.u32 1, %s5098_s26  }
  0x69   : > { %s6251_s28 = scalar_select %p5353_p6, 1, 0 }
  0x6a   : > { %p5360_p12 = por %p416_p9, %p50_p13  ;;  %p5364_p0 = por %p422_p10, %p56_p5 }
  0x6b   : > { %s3812_s16 = sshll.u32 %s550_s18, 6  ;;  %s3813_s2 = sshll.u32 %s5102_s27, 7 }
  0x6c   : > { %s6252_s29 = scalar_select %p5360_p12, 1, 0 }
  0x6d   : > { %s6253_s21 = scalar_select %p5364_p0, 1, 0 }
  0x6e   : > { %s6254_s4 = sld [smem:[#allocation22_spill]]  ;;  %s554_s1 = scalar_lea.vmem [#allocation2], %s3812_s16 }
  0x6f   : > { %s560_s10 = sshll.u32 %s554_s1, 4  ;;  %p5378_p7 = pnand %p4545_p11, %p5347_p8  ;;  %s5374_s10 = int_to_ptr.vmem [resolvable:$true] %s560_s10 }
  0x70   : > { %s5382_s15 = scalar_lea.sflag [#allocation3], %s550_s18 }
  0x71   : > { %p5000_p2 = pneg %p5378_p7 }
  0x74   : > { %s5372_s8 = scalar_lea.hbm %s6254_s4, %s3813_s2  ;;  %s5003_s16 = scalar_lea.hbm %s6254_s4, 2048 }
  0x75   : > { %s4998_s17 = scalar_lea.hbm %s5372_s8, 1024  ;;  %p5004_p8 = scmp.lt.s32.totalorder %s5372_s8, %s6254_s4 }
  0x76   : > { %p4999_p13 = scmp.ne.s32.totalorder %s5372_s8, %s4998_s17  ;;  %p5005_p10 = scmp.lt.s32.totalorder %s5003_s16, %s4998_s17 }
  0x78   : > { %p5001_p5 = pnand %p5000_p2, %p4999_p13  ;;  %p5006_p11 = por %p5005_p10, %p5004_p8 }
  0x7a   : > { %p5002_p9 = pneg %p5001_p5 }
  0x7c   : > { %p5007_p4 = pnand %p5006_p11, %p5002_p9 }
  0x7e   : > { %5010 = shalt.err (!%p5007_p4)
}
  0x7f   : > { %s5011_s23 = scalar_lea.vmem %s5374_s10, 1024  ;;  %s5112_s18 = smov [#allocation2]  }
  0x80   : > { %p5012_p1 = scmp.ne.s32.totalorder %s5374_s10, %s5011_s23  ;;  %s5016_s26 = sshll.u32 %s5112_s18, 4  ;;  %s5017_s26 = int_to_ptr.vmem [resolvable:$false] %s5016_s26 }
  0x81   : > { %s5018_s2 = scalar_lea.vmem %s5017_s26, 2048  ;;  %p5019_p5 = scmp.lt.s32.totalorder %s5374_s10, %s5017_s26 }
  0x82   : > { %p5014_p0 = pnand %p5012_p1, %p5000_p2  ;;  %p5020_p12 = scmp.lt.s32.totalorder %s5018_s2, %s5011_s23 }
  0x84   : > { %p5015_p13 = pneg %p5014_p0  ;;  %p5021_p6 = por %p5020_p12, %p5019_p5 }
  0x86   : > { %p5022_p3 = pnand %p5021_p6, %p5015_p13 }
  0x88   : > { %5025 = shalt.err (!%p5022_p3)
}
  0x89   : > { %s5113_s17 = smov 256   ;;  %s5114_s20 = smov 128  }
  0x8a   : > { %s5115_s16 = smov 8   ;;  %p6256_p1 = scmp.ne.s32.totalorder %s6240_s30, 0 }
  0x8b   : > { %4534 = dma.hbm_to_vmem [thread:$0]  (!%p5378_p7), %s5372_s8, 1024, %s5374_s10, %s5382_s15, %s5113_s17, %s5114_s20, %s5115_s16  }
  0x8c   : > { %572 = sbr.rel (%p6256_p1) target bundleno = 13543 (0x34e7), region = 88  ;;  %s5406_s19 = sand.u32 (!%p6256_p1), 1, %s5094_s25  }
  0x8d   : > { %s3815_s26 = sshll.u32 (!%p6256_p1), %s5406_s19, 6  ;;  %s575_s1 = scalar_lea.sflag (!%p6256_p1), [#allocation3], %s5406_s19 }
  0x8e   : > { %s5410_s23 = scalar_lea.vmem (!%p6256_p1), [#allocation2], %s3815_s26  ;;  %p6257_p3 = scmp.ne.s32.totalorder (!%p6256_p1), %s6251_s28, 0 }
  0x91   : > { %5069 = dma.done.wait (%p6257_p3), %s575_s1, 1024  }
  0x92   : > { %5071 = vsyncadd (%p6257_p3), %s575_s1, 4294966272  ;;  %p6258_p4 = scmp.eq.s32.totalorder %s5234_s0, 0 }
  0x94   : > { %5073 = dma.done.wait (%p6258_p4), [#allocation6], 768   ;;  %p6259_p6 = pmov %p6258_p4 }
  0x95   : > { %p6260_p12 = pmov %p6258_p4 }
  0x96   : > { %5075 = vsyncadd (%p6259_p6), [#allocation6], 4294966528 }
  0x97   : > { %5077 = dma.done.wait (%p6260_p12), [#allocation9], 384   ;;  %p6261_p0 = pmov %p6258_p4 }
  0x99   : > { %5079 = vsyncadd (%p6261_p0), [#allocation9], 4294966912  ;;  %p6262_p7 = pmov %p6261_p0 }
  0x9a   : > { %p6263_p2 = pmov %p6261_p0 }
  0x9b   : > { %5081 = dma.done.wait (%p6262_p7), [#allocation12], 2304  }
  0x9c   : > { %5083 = vsyncadd (%p6263_p2), [#allocation12], 4294964992  ;;  %v5116_v0 = vmov 0.0   ;;  %vm5117_vm0 = vmmov 0   ;;  %s6264_s11 = sld [smem:[#allocation23_spill]]  ;;  %v5434_v2 = vld [vmem:[#allocation5 + $0x8] sm:$0xff]  }
  0x9d   : > { %4142 = vmatprep.subr.bf16.mxu1 %v5116_v0  ;;  %4146 = vmatprep.mubr.msk.bf16.mxu1 %vm5117_vm0, %v5116_v0  ;;  %v692_v3 = vld [vmem:[%s5410_s23] sm:$0xff]  ;;  %v693_v4 = vld [vmem:[%s5410_s23 + $0x8] sm:$0xff]  ;;  %vm719_vm1 = vcmask 130048   ;;  %v694_v5 = vld [vmem:[%s5410_s23 + $0x10] sm:$0xff]  ;;  %v5118_v10 = vmov 0   ;;  %s5119_s28 = smov 64  }
  0x9e   : > { %4143 = vmatpush3.bf16.msra.mxu1 %v5434_v2  ;;  %v700_v6 = vpack.c.bf16 %v693_v4, %v692_v3  ;;  %v695_v7 = vld [vmem:[%s5410_s23 + $0x18] sm:$0xff]  ;;  %v5442_v9 = vld [vmem:[#allocation5] sm:$0xff]   ;;  %s5120_s18 = smov 32   ;;  %v5465_v31 = vld [vmem:[#allocation7 + $0x18] sm:$0xff]   ;;  %vm809_vm2 = vcmask 261120   ;;  %vm909_vm3 = vcmask 523264  }
  0x9f   : > { %4144 = vmatprep.subr.bf16.mxu1 %v5116_v0  ;;  %v701_v8 = vpack.c.bf16 %v695_v7, %v694_v5  ;;  %v5457_v12 = vld [vmem:[%s6207_s3] ss:$0 sm:$0xff]  ;;  %v697_v33 = vld [vmem:[%s5410_s23 + $0x28] sm:$0xff]  ;;  %v698_v35 = vld [vmem:[%s5410_s23 + $0x30] sm:$0xff]  ;;  %vm3479_vm4 = vcmask 785408   ;;  %s6265_s26 = sld [smem:[#allocation30_spill]] }
  0xa0   : > { %4134 = vmatprep.mubr.msk.bf16.mxu0 %vm719_vm1, %v700_v6  ;;  %v696_v32 = vld [vmem:[%s5410_s23 + $0x20] sm:$0xff]  ;;  %v699_v36 = vld [vmem:[%s5410_s23 + $0x38] sm:$0xff]  ;;  %v5489_v41 = vld [vmem:[#allocation7] sm:$0xff]   ;;  %s3966_s1 = sshll.u32 %s5234_s0, 7  ;;  %s6266_s15 = sld [smem:[#allocation31_spill]] }
  0xa1   : > { %v702_v34 = vpack.c.bf16 %v697_v33, %v696_v32  ;;  %v703_v37 = vpack.c.bf16 %v699_v36, %v698_v35  ;;  %v5472_v38 = vld [vmem:[#allocation7 + $0x10] sm:$0xff]   ;;  %v5482_v39 = vld [vmem:[#allocation7 + $0x8] sm:$0xff]   ;;  %s3663_s2 = scalar_lea.sflag [#allocation4], %s5406_s19  ;;  %p6267_p8 = scmp.ne.s32.totalorder %s6252_s29, 0 }
  0xa2   : > { %v4612_v1 = vld [vmem:[%s6264_s11] sm:$0xff]   ;;  %4145 = vmatpush3.bf16.msra.mxu1 %v5442_v9  ;;  %s5122_s0 = smov [#allocation14]  }
  0xa3   : > { %4132 = vmatprep.subr.bf16.mxu0 %v4612_v1  ;;  %4170 = vmatprep.subr.bf16.mxu1 %v5116_v0  ;;  %v5528_v55 = vld [vmem:[%s6209_s5] ss:$0 sm:$0xff] }
  0xa4   : > { %4133 = vmatpush3.bf16.msra.mxu0 %v4612_v1 }
  0xa5   : > { %4150 = vmatprep.subr.bf16.mxu0 %v5116_v0  ;;  %4147 = vmatmul.mubr.bf16.vlgmr.msra.gmra.mxu1 %v5118_v10 }
  0xa6   : > { %4178 = vmatprep.mubr.msk.bf16.mxu1 %vm5117_vm0, %v5116_v0  ;;  %4171 = vmatpush3.bf16.msra.mxu1 %v5465_v31  ;;  %s6167_s30 = scalar_lea.hbm %s6266_s15, %s3966_s1 }
  0xa7   : > { %4135 = vmatmul.mubr.msk.bf16.vlgmr.msra.gmra.mxu0 %vm719_vm1, %v701_v8  ;;  %4172 = vmatprep.subr.bf16.mxu1 %v5116_v0 }
  0xa8   : > { %4151 = vmatpush3.bf16.msra.mxu0 %v5465_v31  ;;  %4138 = vmatprep.mubr.msk.bf16.mxu0 %vm719_vm1, %v702_v34 }
  0xa9   : > { %4152 = vmatprep.subr.bf16.mxu0 %v5116_v0 }
  0xaa   : > { %4173 = vmatpush3.bf16.msra.mxu1 %v5472_v38 }
  0xab   : > { %4174 = vmatprep.subr.bf16.mxu1 %v5116_v0 }
  0xac   : > { %4153 = vmatpush3.bf16.msra.mxu0 %v5472_v38 }
  0xad   : > { %4154 = vmatprep.subr.bf16.mxu0 %v5116_v0 }
  0xae   : > { %4175 = vmatpush3.bf16.msra.mxu1 %v5482_v39 }
  0xaf   : > { %4139 = vmatmul.mubr.msk.bf16.gmra.mxu0 %vm719_vm1, %v703_v37  ;;  %4176 = vmatprep.subr.bf16.mxu1 %v5116_v0 }
  0xb0   : > { %4158 = vmatprep.mubr.msk.bf16.mxu0 %vm5117_vm0, %v5116_v0  ;;  %4155 = vmatpush3.bf16.msra.mxu0 %v5482_v39 }
  0xb1   : > { %4156 = vmatprep.subr.bf16.mxu0 %v5116_v0 }
  0xb2   : > { %4177 = vmatpush3.bf16.msra.mxu1 %v5489_v41 }
  0xb3   : > { %4202 = vmatprep.subr.bf16.mxu1 %v5116_v0 }
  0xb4   : > { %4157 = vmatpush3.bf16.msra.mxu0 %v5489_v41 }
  0xb5   : > { %4162 = vmatprep.subr.bf16.mxu0 %v5116_v0 }
 0x165   : > { %v847_v15 = vpop.f32.mrf.mxu1 }
 0x167   : > { %v5452_v11 = vpop.f32.mrf.mxu0  ;;  %v4148_v17 = vpop.f32.mrf.mxu1 }
 0x169   : > { %v766_v13 = vpop.f32.mrf.mxu0  ;;  %v850_v19 = vpop.f32.mrf.mxu1 }
 0x16a   : > { %v767_v14 = vadd.f32 %v5457_v12, %v766_v13 }
 0x16b   : > { %v4149_v20 = vpop.f32.mrf.mxu1  ;;  %v5515_v49 = vpop.f32.mrf.mxu0 }
 0x16c   : > { %v853_v16 = vadd.f32 %v847_v15, %v767_v14 }
 0x16d   : > { %v769_v50 = vpop.f32.mrf.mxu0 }
 0x16e   : > { %v3833_v18 = vmul.f32 -1.442695, %v853_v16  ;;  %v770_v62 = vadd.f32 %v5457_v12, %v769_v50 }
 0x16f   : > { %v5517_v51 = vpop.f32.mrf.mxu0 }
 0x170   : > { %4646 = vpow2.f32 %v3833_v18 }
 0x171   : > { %v5519_v52 = vpop.f32.mrf.mxu0 }
 0x173   : > { %v5521_v53 = vpop.f32.mrf.mxu0 }
 0x175   : > { %v5523_v54 = vpop.f32.mrf.mxu0 }
 0x17d   : > { %v4647_v21 = vpop.eup %4646 }
 0x17e   : > { %v857_v22 = vadd.f32 1.0, %v4647_v21 }
 0x180   : > { %4648 = vrcp.f32 %v857_v22 }
 0x18d   : > { %v4649_v23 = vpop.eup %4648 }
 0x18e   : > { %v860_v24 = vmul.f32 2.0, %v4649_v23  ;;  %v862_v28 = vmul.f32 0.0, %v4649_v23 }
 0x190   : > { %v3834_v25 = vadd.f32 -1.0, %v860_v24 }
 0x192   : > { %864 = vrot.lane.b32.xlu0 %v3834_v25, %s5119_s28 }
 0x204   : > { %v865_v26 = vpop.permute.xlu0 %864 }
 0x205   : > { %v867_v27 = vmul.f32 %v4649_v23, %v865_v26 }
 0x207   : > { %869 = vrot.lane.b32.xlu0 %v867_v27, %s5120_s18 }
 0x279   : > { %v870_v29 = vpop.permute.xlu0 %869 }
 0x27a   : > { %v5462_v30 = vadd.f32 %v870_v29, %v862_v28 }
 0x27c   : > { %4650 = vtanh.f32 %v5462_v30 }
 0x289   : > { %v4651_v40 = vpop.eup %4650 }
 0x28a   : > { %875 = vrot.lane.b32.xlu1 %v4651_v40, %s5119_s28 }
 0x2fc   : > { %v876_v42 = vpop.permute.xlu1 %875 }
 0x2fd   : > { %v878_v43 = vmul.f32 %v4649_v23, %v876_v42 }
 0x2ff   : > { %v978_v44 = vpack.c.bf16 %v878_v43, %v878_v43  ;;  %880 = vrot.lane.b32.xlu1 %v878_v43, %s5120_s18 }
 0x301   : > { %980 = vrot.lane.b32.xlu0 %v978_v44, %s5120_s18 }
 0x371   : > { %v881_v45 = vpop.permute.xlu1 %880 }
 0x372   : > { %v883_v46 = vsel %vm809_vm2, %v881_v45, 0.0 }
 0x373   : > { %v884_v47 = vpack.c.bf16 %v883_v46, %v883_v46  ;;  %v981_v48 = vpop.permute.xlu0 %980 }
 0x375   : > { %4159 = vmatmul.mubr.msk.bf16.vlgmr.msra.gmra.mxu0 %vm909_vm3, %v884_v47  ;;  %v775_v47 = vadd.f32 %v5452_v11, %v5457_v12 }
 0x376   : > { %4163 = vmatpush3.bf16.msra.mxu0 %v5434_v2  ;;  %4166 = vmatprep.mubr.msk.bf16.mxu0 %vm5117_vm0, %v5116_v0 }
 0x377   : > { %4164 = vmatprep.subr.bf16.mxu0 %v5116_v0 }
 0x37a   : > { %4165 = vmatpush3.bf16.msra.mxu0 %v5442_v9 }
 0x37b   : > { %4182 = vmatprep.subr.bf16.mxu0 %v5116_v0 }
 0x37d   : > { %4167 = vmatmul.mubr.msk.bf16.vlgmr.msra.gmra.mxu0 %vm809_vm2, %v981_v48 }
 0x37e   : > { %4183 = vmatpush3.bf16.msra.mxu0 %v5434_v2  ;;  %4186 = vmatprep.mubr.msk.bf16.mxu0 %vm5117_vm0, %v5116_v0 }
 0x37f   : > { %4184 = vmatprep.subr.bf16.mxu0 %v5116_v0 }
 0x382   : > { %4185 = vmatpush3.bf16.msra.mxu0 %v5442_v9 }
 0x383   : > { %4190 = vmatprep.subr.bf16.mxu0 %v5116_v0 }
 0x435   : > { %v947_v56 = vpop.f32.mrf.mxu0 }
 0x436   : > { %v948_v57 = vadd.f32 %v5528_v55, %v947_v56 }
 0x437   : > { %v4160_v58 = vpop.f32.mrf.mxu0 }
 0x438   : > { %v3840_v59 = vmul.f32 -1.442695, %v948_v57 }
 0x439   : > { %v950_v60 = vpop.f32.mrf.mxu0 }
 0x43a   : > { %4652 = vpow2.f32 %v3840_v59 }
 0x43b   : > { %v4161_v61 = vpop.f32.mrf.mxu0 }
 0x43d   : > { %v1019_v63 = vpop.f32.mrf.mxu0 }
 0x43e   : > { %v1025_v1 = vadd.f32 %v1019_v63, %v770_v62 }
 0x43f   : > { %v4168_v3 = vpop.f32.mrf.mxu0 }
 0x440   : > { %v3843_v4 = vmul.f32 -1.442695, %v1025_v1 }
 0x441   : > { %v1022_v5 = vpop.f32.mrf.mxu0 }
 0x442   : > { %4654 = vpow2.f32 %v3843_v4 }
 0x443   : > { %v4169_v6 = vpop.f32.mrf.mxu0 }
 0x447   : > { %v4653_v7 = vpop.eup %4652 }
 0x448   : > { %v956_v8 = vadd.f32 1.0, %v4653_v7 }
 0x44a   : > { %4656 = vrcp.f32 %v956_v8 }
 0x44f   : > { %v4655_v13 = vpop.eup %4654 }
 0x450   : > { %v1029_v14 = vadd.f32 1.0, %v4655_v13 }
 0x452   : > { %4658 = vrcp.f32 %v1029_v14 }
 0x457   : > { %v4657_v15 = vpop.eup %4656 }
 0x458   : > { %v959_v16 = vmul.f32 2.0, %v4657_v15  ;;  %v961_v25 = vmul.f32 0.0, %v4657_v15 }
 0x45a   : > { %v3841_v17 = vadd.f32 -1.0, %v959_v16 }
 0x45c   : > { %963 = vrot.lane.b32.xlu1 %v3841_v17, %s5119_s28 }
 0x45f   : > { %v4659_v18 = vpop.eup %4658 }
 0x460   : > { %v1032_v19 = vmul.f32 2.0, %v4659_v18  ;;  %v1034_v28 = vmul.f32 %v4659_v18, %v5462_v30 }
 0x462   : > { %v3844_v20 = vadd.f32 -1.0, %v1032_v19 }
 0x464   : > { %1036 = vrot.lane.b32.xlu0 %v3844_v20, %s5119_s28 }
 0x4ce   : > { %v964_v21 = vpop.permute.xlu1 %963 }
 0x4cf   : > { %v966_v22 = vmul.f32 %v4657_v15, %v964_v21 }
 0x4d1   : > { %968 = vrot.lane.b32.xlu1 %v966_v22, %s5120_s18 }
 0x4d6   : > { %v1037_v23 = vpop.permute.xlu0 %1036 }
 0x4d7   : > { %v1039_v24 = vmul.f32 %v4659_v18, %v1037_v23 }
 0x4d9   : > { %1041 = vrot.lane.b32.xlu0 %v1039_v24, %s5120_s18 }
 0x543   : > { %v969_v26 = vpop.permute.xlu1 %968 }
 0x544   : > { %v5536_v27 = vadd.f32 %v969_v26, %v961_v25 }
 0x546   : > { %4660 = vtanh.f32 %v5536_v27 }
 0x54b   : > { %v1042_v29 = vpop.permute.xlu0 %1041 }
 0x54c   : > { %v5540_v32 = vadd.f32 %v1042_v29, %v1034_v28 }
 0x54e   : > { %4662 = vtanh.f32 %v5540_v32 }
 0x553   : > { %v4661_v33 = vpop.eup %4660 }
 0x554   : > { %974 = vrot.lane.b32.xlu1 %v4661_v33, %s5119_s28 }
 0x55b   : > { %v4663_v34 = vpop.eup %4662 }
 0x55c   : > { %1047 = vrot.lane.b32.xlu0 %v4663_v34, %s5119_s28 }
 0x5c6   : > { %v975_v35 = vpop.permute.xlu1 %974 }
 0x5c7   : > { %v977_v36 = vmul.f32 %v4657_v15, %v975_v35 }
 0x5c9   : > { %1056 = vrot.lane.b32.xlu0 %v977_v36, %s5119_s28 }
 0x5ce   : > { %v1048_v37 = vpop.permute.xlu0 %1047 }
 0x5cf   : > { %v1050_v40 = vmul.f32 %v4659_v18, %v1048_v37 }
 0x5d1   : > { %1052 = vrot.lane.b32.xlu1 %v1050_v40, %s5120_s18  ;;  %v1129_v30 = vpack.c.bf16 %v1050_v40, %v1050_v40 }
 0x5d5   : > { %1131 = vrot.lane.b32.xlu1 %v1129_v30, %s5120_s18 }
 0x63b   : > { %v1057_v42 = vpop.permute.xlu0 %1056 }
 0x643   : > { %v1053_v43 = vpop.permute.xlu1 %1052 }
 0x644   : > { %v1059_v44 = vsel %vm809_vm2, %v1053_v43, %v1057_v42  ;;  %v778_v43 = vadd.f32 %v5515_v49, %v5457_v12 }
 0x645   : > { %v1060_v45 = vpack.c.bf16 %v1059_v44, %v1059_v44 }
 0x647   : > { %v1132_v46 = vpop.permute.xlu1 %1131  ;;  %4179 = vmatmul.mubr.msk.bf16.vlgmr.msra.gmra.mxu1 %vm909_vm3, %v1060_v45 }
 0x648   : > { %4187 = vmatmul.mubr.msk.bf16.vlgmr.msra.gmra.mxu0 %vm809_vm2, %v1132_v46  ;;  %4203 = vmatpush3.bf16.msra.mxu1 %v5434_v2 }
 0x649   : > { %4191 = vmatpush3.bf16.msra.mxu0 %v5465_v31  ;;  %4204 = vmatprep.subr.bf16.mxu1 %v5116_v0 }
 0x64a   : > { %4192 = vmatprep.subr.bf16.mxu0 %v5116_v0  ;;  %4198 = vmatprep.mubr.msk.bf16.mxu0 %vm5117_vm0, %v5116_v0 }
 0x64b   : > { %4206 = vmatprep.mubr.msk.bf16.mxu1 %vm5117_vm0, %v5116_v0 }
 0x64c   : > { %4205 = vmatpush3.bf16.msra.mxu1 %v5442_v9 }
 0x64d   : > { %4193 = vmatpush3.bf16.msra.mxu0 %v5472_v38  ;;  %4210 = vmatprep.subr.bf16.mxu1 %v5116_v0 }
 0x64e   : > { %4194 = vmatprep.subr.bf16.mxu0 %v5116_v0 }
 0x651   : > { %4195 = vmatpush3.bf16.msra.mxu0 %v5482_v39 }
 0x652   : > { %4196 = vmatprep.subr.bf16.mxu0 %v5116_v0 }
 0x655   : > { %4197 = vmatpush3.bf16.msra.mxu0 %v5489_v41 }
 0x656   : > { %4222 = vmatprep.subr.bf16.mxu0 %v5116_v0 }
 0x707   : > { %v1098_v48 = vpop.f32.mrf.mxu1 }
 0x708   : > { %v1099_v50 = vadd.f32 %v5528_v55, %v1098_v48  ;;  %v1170_v56 = vpop.f32.mrf.mxu0 }
 0x709   : > { %v1176_v57 = vadd.f32 %v1170_v56, %v775_v47  ;;  %v4180_v58 = vpop.f32.mrf.mxu1 }
 0x70a   : > { %v3846_v59 = vmul.f32 -1.442695, %v1099_v50  ;;  %v4188_v60 = vpop.f32.mrf.mxu0 }
 0x70b   : > { %v3849_v61 = vmul.f32 -1.442695, %v1176_v57  ;;  %v1101_v62 = vpop.f32.mrf.mxu1 }
 0x70c   : > { %4664 = vpow2.f32 %v3846_v59  ;;  %v1173_v63 = vpop.f32.mrf.mxu0 }
 0x70d   : > { %4666 = vpow2.f32 %v3849_v61  ;;  %v4181_v1 = vpop.f32.mrf.mxu1 }
 0x70e   : > { %v4189_v3 = vpop.f32.mrf.mxu0 }
 0x719   : > { %v4665_v4 = vpop.eup %4664 }
 0x71a   : > { %v4667_v5 = vpop.eup %4666  ;;  %v1107_v6 = vadd.f32 1.0, %v4665_v4 }
 0x71b   : > { %v1180_v7 = vadd.f32 1.0, %v4667_v5 }
 0x71c   : > { %4668 = vrcp.f32 %v1107_v6 }
 0x71d   : > { %4670 = vrcp.f32 %v1180_v7 }
 0x729   : > { %v4669_v11 = vpop.eup %4668 }
 0x72a   : > { %v4671_v8 = vpop.eup %4670  ;;  %v1110_v13 = vmul.f32 2.0, %v4669_v11  ;;  %v1112_v21 = vmul.f32 %v4669_v11, %v5536_v27 }
 0x72b   : > { %v1183_v14 = vmul.f32 2.0, %v4671_v8  ;;  %v1185_v23 = vmul.f32 %v4671_v8, %v5540_v32 }
 0x72c   : > { %v3847_v15 = vadd.f32 -1.0, %v1110_v13 }
 0x72d   : > { %v3850_v16 = vadd.f32 -1.0, %v1183_v14 }
 0x72e   : > { %1114 = vrot.lane.b32.xlu0 %v3847_v15, %s5119_s28 }
 0x72f   : > { %1187 = vrot.lane.b32.xlu1 %v3850_v16, %s5119_s28 }
 0x7a0   : > { %v1115_v17 = vpop.permute.xlu0 %1114 }
 0x7a1   : > { %v1117_v18 = vmul.f32 %v4669_v11, %v1115_v17  ;;  %v1188_v19 = vpop.permute.xlu1 %1187 }
 0x7a2   : > { %v1190_v20 = vmul.f32 %v4671_v8, %v1188_v19 }
 0x7a3   : > { %1119 = vrot.lane.b32.xlu0 %v1117_v18, %s5120_s18 }
 0x7a4   : > { %1192 = vrot.lane.b32.xlu1 %v1190_v20, %s5120_s18 }
 0x815   : > { %v1120_v22 = vpop.permute.xlu0 %1119 }
 0x816   : > { %v5576_v24 = vadd.f32 %v1120_v22, %v1112_v21  ;;  %v1193_v25 = vpop.permute.xlu1 %1192 }
 0x817   : > { %v5578_v26 = vadd.f32 %v1193_v25, %v1185_v23 }
 0x818   : > { %4672 = vtanh.f32 %v5576_v24 }
 0x819   : > { %4674 = vtanh.f32 %v5578_v26 }
 0x825   : > { %v4673_v28 = vpop.eup %4672 }
 0x826   : > { %v4675_v29 = vpop.eup %4674  ;;  %1125 = vrot.lane.b32.xlu0 %v4673_v28, %s5119_s28 }
 0x827   : > { %1198 = vrot.lane.b32.xlu1 %v4675_v29, %s5119_s28 }
 0x898   : > { %v1126_v33 = vpop.permute.xlu0 %1125 }
 0x899   : > { %v1128_v27 = vmul.f32 %v4669_v11, %v1126_v33  ;;  %v1199_v34 = vpop.permute.xlu1 %1198 }
 0x89a   : > { %v1201_v35 = vmul.f32 %v4671_v8, %v1199_v34 }
 0x89b   : > { %1207 = vrot.lane.b32.xlu1 %v1128_v27, %s5119_s28 }
 0x89c   : > { %1203 = vrot.lane.b32.xlu0 %v1201_v35, %s5120_s18  ;;  %v1280_v32 = vpack.c.bf16 %v1201_v35, %v1201_v35 }
 0x8a0   : > { %1282 = vrot.lane.b32.xlu0 %v1280_v32, %s5120_s18 }
 0x90d   : > { %v1208_v36 = vpop.permute.xlu1 %1207 }
 0x90e   : > { %v1204_v37 = vpop.permute.xlu0 %1203 }
 0x90f   : > { %v1210_v40 = vsel %vm809_vm2, %v1204_v37, %v1208_v36  ;;  %v783_v36 = vadd.f32 %v5457_v12, %v5519_v52 }
 0x910   : > { %v1211_v30 = vpack.c.bf16 %v1210_v40, %v1210_v40 }
 0x912   : > { %4199 = vmatmul.mubr.msk.bf16.vlgmr.msra.gmra.mxu0 %vm909_vm3, %v1211_v30  ;;  %v1283_v42 = vpop.permute.xlu0 %1282 }
 0x913   : > { %4207 = vmatmul.mubr.msk.bf16.vlgmr.msra.gmra.mxu1 %vm809_vm2, %v1283_v42  ;;  %4223 = vmatpush3.bf16.msra.mxu0 %v5434_v2 }
 0x914   : > { %4211 = vmatpush3.bf16.msra.mxu1 %v5465_v31  ;;  %4224 = vmatprep.subr.bf16.mxu0 %v5116_v0 }
 0x915   : > { %4212 = vmatprep.subr.bf16.mxu1 %v5116_v0  ;;  %4218 = vmatprep.mubr.msk.bf16.mxu1 %vm5117_vm0, %v5116_v0 }
 0x916   : > { %4226 = vmatprep.mubr.msk.bf16.mxu0 %vm5117_vm0, %v5116_v0 }
 0x917   : > { %4225 = vmatpush3.bf16.msra.mxu0 %v5442_v9 }
 0x918   : > { %4213 = vmatpush3.bf16.msra.mxu1 %v5472_v38  ;;  %4230 = vmatprep.subr.bf16.mxu0 %v5116_v0 }
 0x919   : > { %4214 = vmatprep.subr.bf16.mxu1 %v5116_v0 }
 0x91c   : > { %4215 = vmatpush3.bf16.msra.mxu1 %v5482_v39 }
 0x91d   : > { %4216 = vmatprep.subr.bf16.mxu1 %v5116_v0 }
 0x920   : > { %4217 = vmatpush3.bf16.msra.mxu1 %v5489_v41 }
 0x921   : > { %4242 = vmatprep.subr.bf16.mxu1 %v5116_v0 }
 0x9d2   : > { %v1249_v44 = vpop.f32.mrf.mxu0 }
 0x9d3   : > { %v1250_v45 = vadd.f32 %v5528_v55, %v1249_v44  ;;  %v1321_v46 = vpop.f32.mrf.mxu1 }
 0x9d4   : > { %v1327_v47 = vadd.f32 %v1321_v46, %v778_v43  ;;  %v4200_v48 = vpop.f32.mrf.mxu0 }
 0x9d5   : > { %v3852_v50 = vmul.f32 -1.442695, %v1250_v45  ;;  %v4208_v56 = vpop.f32.mrf.mxu1 }
 0x9d6   : > { %v3855_v57 = vmul.f32 -1.442695, %v1327_v47  ;;  %v1252_v58 = vpop.f32.mrf.mxu0 }
 0x9d7   : > { %4676 = vpow2.f32 %v3852_v50  ;;  %v1324_v59 = vpop.f32.mrf.mxu1 }
 0x9d8   : > { %4678 = vpow2.f32 %v3855_v57  ;;  %v4201_v60 = vpop.f32.mrf.mxu0 }
 0x9d9   : > { %v4209_v61 = vpop.f32.mrf.mxu1 }
 0x9e4   : > { %v4677_v62 = vpop.eup %4676 }
 0x9e5   : > { %v4679_v63 = vpop.eup %4678  ;;  %v1258_v1 = vadd.f32 1.0, %v4677_v62 }
 0x9e6   : > { %v1331_v3 = vadd.f32 1.0, %v4679_v63 }
 0x9e7   : > { %4680 = vrcp.f32 %v1258_v1 }
 0x9e8   : > { %4682 = vrcp.f32 %v1331_v3 }
 0x9f4   : > { %v4681_v49 = vpop.eup %4680 }
 0x9f5   : > { %v4683_v4 = vpop.eup %4682  ;;  %v1261_v5 = vmul.f32 2.0, %v4681_v49  ;;  %v1263_v16 = vmul.f32 %v4681_v49, %v5576_v24 }
 0x9f6   : > { %v1334_v6 = vmul.f32 2.0, %v4683_v4  ;;  %v1336_v18 = vmul.f32 %v4683_v4, %v5578_v26 }
 0x9f7   : > { %v3853_v7 = vadd.f32 -1.0, %v1261_v5 }
 0x9f8   : > { %v3856_v11 = vadd.f32 -1.0, %v1334_v6 }
 0x9f9   : > { %1265 = vrot.lane.b32.xlu1 %v3853_v7, %s5119_s28 }
 0x9fa   : > { %1338 = vrot.lane.b32.xlu0 %v3856_v11, %s5119_s28 }
 0xa6b   : > { %v1266_v8 = vpop.permute.xlu1 %1265 }
 0xa6c   : > { %v1268_v13 = vmul.f32 %v4681_v49, %v1266_v8  ;;  %v1339_v14 = vpop.permute.xlu0 %1338 }
 0xa6d   : > { %v1341_v15 = vmul.f32 %v4683_v4, %v1339_v14 }
 0xa6e   : > { %1270 = vrot.lane.b32.xlu1 %v1268_v13, %s5120_s18 }
 0xa6f   : > { %1343 = vrot.lane.b32.xlu0 %v1341_v15, %s5120_s18 }
 0xae0   : > { %v1271_v17 = vpop.permute.xlu1 %1270 }
 0xae1   : > { %v5615_v19 = vadd.f32 %v1271_v17, %v1263_v16  ;;  %v1344_v20 = vpop.permute.xlu0 %1343 }
 0xae2   : > { %v5617_v21 = vadd.f32 %v1344_v20, %v1336_v18 }
 0xae3   : > { %4684 = vtanh.f32 %v5615_v19 }
 0xae4   : > { %4686 = vtanh.f32 %v5617_v21 }
 0xaf0   : > { %v4685_v22 = vpop.eup %4684 }
 0xaf1   : > { %v4687_v23 = vpop.eup %4686  ;;  %1276 = vrot.lane.b32.xlu1 %v4685_v22, %s5119_s28 }
 0xaf2   : > { %1349 = vrot.lane.b32.xlu0 %v4687_v23, %s5119_s28 }
 0xb63   : > { %v1277_v25 = vpop.permute.xlu1 %1276 }
 0xb64   : > { %v1279_v24 = vmul.f32 %v4681_v49, %v1277_v25  ;;  %v1350_v28 = vpop.permute.xlu0 %1349 }
 0xb65   : > { %v1352_v29 = vmul.f32 %v4683_v4, %v1350_v28 }
 0xb66   : > { %1358 = vrot.lane.b32.xlu0 %v1279_v24, %s5119_s28 }
 0xb67   : > { %1354 = vrot.lane.b32.xlu1 %v1352_v29, %s5120_s18  ;;  %v1431_v26 = vpack.c.bf16 %v1352_v29, %v1352_v29 }
 0xb6b   : > { %1433 = vrot.lane.b32.xlu1 %v1431_v26, %s5120_s18 }
 0xbd8   : > { %v1359_v33 = vpop.permute.xlu0 %1358 }
 0xbd9   : > { %v1355_v27 = vpop.permute.xlu1 %1354 }
 0xbda   : > { %v1361_v34 = vsel %vm809_vm2, %v1355_v27, %v1359_v33 }
 0xbdb   : > { %v1362_v35 = vpack.c.bf16 %v1361_v34, %v1361_v34 }
 0xbdd   : > { %v1434_v32 = vpop.permute.xlu1 %1433  ;;  %4219 = vmatmul.mubr.msk.bf16.vlgmr.msra.gmra.mxu1 %vm909_vm3, %v1362_v35 }
 0xbde   : > { %4227 = vmatmul.mubr.msk.bf16.vlgmr.msra.gmra.mxu0 %vm809_vm2, %v1434_v32  ;;  %4243 = vmatpush3.bf16.msra.mxu1 %v5434_v2 }
 0xbdf   : > { %4231 = vmatpush3.bf16.msra.mxu0 %v5465_v31  ;;  %4244 = vmatprep.subr.bf16.mxu1 %v5116_v0 }
 0xbe0   : > { %4232 = vmatprep.subr.bf16.mxu0 %v5116_v0  ;;  %4238 = vmatprep.mubr.msk.bf16.mxu0 %vm5117_vm0, %v5116_v0 }
 0xbe1   : > { %4246 = vmatprep.mubr.msk.bf16.mxu1 %vm5117_vm0, %v5116_v0 }
 0xbe2   : > { %4245 = vmatpush3.bf16.msra.mxu1 %v5442_v9 }
 0xbe3   : > { %4233 = vmatpush3.bf16.msra.mxu0 %v5472_v38  ;;  %4250 = vmatprep.subr.bf16.mxu1 %v5116_v0 }
 0xbe4   : > { %4234 = vmatprep.subr.bf16.mxu0 %v5116_v0 }
 0xbe7   : > { %4235 = vmatpush3.bf16.msra.mxu0 %v5482_v39 }
 0xbe8   : > { %4236 = vmatprep.subr.bf16.mxu0 %v5116_v0 }
 0xbeb   : > { %4237 = vmatpush3.bf16.msra.mxu0 %v5489_v41 }
 0xbec   : > { %4262 = vmatprep.subr.bf16.mxu0 %v5116_v0 }
 0xc9d   : > { %v1400_v37 = vpop.f32.mrf.mxu1 }
 0xc9e   : > { %v1401_v40 = vadd.f32 %v5528_v55, %v1400_v37  ;;  %v1472_v30 = vpop.f32.mrf.mxu0 }
 0xc9f   : > { %v1478_v42 = vadd.f32 %v1472_v30, %v783_v36  ;;  %v4220_v43 = vpop.f32.mrf.mxu1 }
 0xca0   : > { %v3858_v44 = vmul.f32 -1.442695, %v1401_v40  ;;  %v4228_v45 = vpop.f32.mrf.mxu0 }
 0xca1   : > { %v3861_v46 = vmul.f32 -1.442695, %v1478_v42  ;;  %v1403_v47 = vpop.f32.mrf.mxu1 }
 0xca2   : > { %4688 = vpow2.f32 %v3858_v44  ;;  %v1475_v48 = vpop.f32.mrf.mxu0 }
 0xca3   : > { %4690 = vpow2.f32 %v3861_v46  ;;  %v4221_v50 = vpop.f32.mrf.mxu1 }
 0xca4   : > { %v4229_v56 = vpop.f32.mrf.mxu0 }
 0xcaf   : > { %v4689_v57 = vpop.eup %4688 }
 0xcb0   : > { %v4691_v58 = vpop.eup %4690  ;;  %v1409_v59 = vadd.f32 1.0, %v4689_v57 }
 0xcb1   : > { %v1482_v60 = vadd.f32 1.0, %v4691_v58 }
 0xcb2   : > { %4692 = vrcp.f32 %v1409_v59 }
 0xcb3   : > { %4694 = vrcp.f32 %v1482_v60 }
 0xcbf   : > { %v4693_v52 = vpop.eup %4692 }
 0xcc0   : > { %v4695_v61 = vpop.eup %4694  ;;  %v1412_v62 = vmul.f32 2.0, %v4693_v52  ;;  %v1414_v7 = vmul.f32 %v4693_v52, %v5615_v19 }
 0xcc1   : > { %v1485_v63 = vmul.f32 2.0, %v4695_v61  ;;  %v1487_v8 = vmul.f32 %v4695_v61, %v5617_v21 }
 0xcc2   : > { %v3859_v1 = vadd.f32 -1.0, %v1412_v62 }
 0xcc3   : > { %v3862_v3 = vadd.f32 -1.0, %v1485_v63 }
 0xcc4   : > { %1416 = vrot.lane.b32.xlu0 %v3859_v1, %s5119_s28 }
 0xcc5   : > { %1489 = vrot.lane.b32.xlu1 %v3862_v3, %s5119_s28 }
 0xd36   : > { %v1417_v49 = vpop.permute.xlu0 %1416 }
 0xd37   : > { %v1419_v4 = vmul.f32 %v4693_v52, %v1417_v49  ;;  %v1490_v5 = vpop.permute.xlu1 %1489 }
 0xd38   : > { %v1492_v6 = vmul.f32 %v4695_v61, %v1490_v5 }
 0xd39   : > { %1421 = vrot.lane.b32.xlu0 %v1419_v4, %s5120_s18 }
 0xd3a   : > { %1494 = vrot.lane.b32.xlu1 %v1492_v6, %s5120_s18 }
 0xdab   : > { %v1422_v11 = vpop.permute.xlu0 %1421 }
 0xdac   : > { %v5654_v13 = vadd.f32 %v1422_v11, %v1414_v7  ;;  %v1495_v14 = vpop.permute.xlu1 %1494 }
 0xdad   : > { %v5656_v15 = vadd.f32 %v1495_v14, %v1487_v8 }
 0xdae   : > { %4696 = vtanh.f32 %v5654_v13 }
 0xdaf   : > { %4698 = vtanh.f32 %v5656_v15 }
 0xdbb   : > { %v4697_v16 = vpop.eup %4696 }
 0xdbc   : > { %v4699_v17 = vpop.eup %4698  ;;  %1427 = vrot.lane.b32.xlu0 %v4697_v16, %s5119_s28 }
 0xdbd   : > { %1500 = vrot.lane.b32.xlu1 %v4699_v17, %s5119_s28 }
 0xe2e   : > { %v1428_v18 = vpop.permute.xlu0 %1427 }
 0xe2f   : > { %v1430_v19 = vmul.f32 %v4693_v52, %v1428_v18  ;;  %v1501_v20 = vpop.permute.xlu1 %1500 }
 0xe30   : > { %v1503_v22 = vmul.f32 %v4695_v61, %v1501_v20  ;;  %v4839_v20 = vld [vmem:[#allocation5] sm:$0xff]  }
 0xe31   : > { %1509 = vrot.lane.b32.xlu1 %v1430_v19, %s5119_s28  ;;  %v4838_v19 = vld [vmem:[#allocation5 + $0x8] sm:$0xff]  }
 0xe32   : > { %1505 = vrot.lane.b32.xlu0 %v1503_v22, %s5120_s18  ;;  %v1582_v21 = vpack.c.bf16 %v1503_v22, %v1503_v22  ;;  %v791_v22 = vadd.f32 %v5517_v51, %v5457_v12 }
 0xe36   : > { %1584 = vrot.lane.b32.xlu0 %v1582_v21, %s5120_s18 }
 0xea3   : > { %v1510_v23 = vpop.permute.xlu1 %1509 }
 0xea4   : > { %v1506_v25 = vpop.permute.xlu0 %1505 }
 0xea5   : > { %v1512_v24 = vsel %vm809_vm2, %v1506_v25, %v1510_v23 }
 0xea6   : > { %v1513_v28 = vpack.c.bf16 %v1512_v24, %v1512_v24 }
 0xea8   : > { %4239 = vmatmul.mubr.msk.bf16.vlgmr.msra.gmra.mxu0 %vm909_vm3, %v1513_v28  ;;  %v1585_v29 = vpop.permute.xlu0 %1584 }
 0xea9   : > { %4247 = vmatmul.mubr.msk.bf16.vlgmr.msra.gmra.mxu1 %vm809_vm2, %v1585_v29  ;;  %4263 = vmatpush3.bf16.msra.mxu0 %v5434_v2  ;;  %v786_v2 = vadd.f32 %v5457_v12, %v5523_v54 }
 0xeaa   : > { %4251 = vmatpush3.bf16.msra.mxu1 %v5465_v31  ;;  %4264 = vmatprep.subr.bf16.mxu0 %v5116_v0 }
 0xeab   : > { %4252 = vmatprep.subr.bf16.mxu1 %v5116_v0  ;;  %4258 = vmatprep.mubr.msk.bf16.mxu1 %vm5117_vm0, %v5116_v0 }
 0xeac   : > { %4266 = vmatprep.mubr.msk.bf16.mxu0 %vm5117_vm0, %v5116_v0 }
 0xead   : > { %4265 = vmatpush3.bf16.msra.mxu0 %v5442_v9 }
 0xeae   : > { %4253 = vmatpush3.bf16.msra.mxu1 %v5472_v38  ;;  %4270 = vmatprep.subr.bf16.mxu0 %v5116_v0 }
 0xeaf   : > { %4254 = vmatprep.subr.bf16.mxu1 %v5116_v0 }
 0xeb2   : > { %4255 = vmatpush3.bf16.msra.mxu1 %v5482_v39 }
 0xeb3   : > { %4256 = vmatprep.subr.bf16.mxu1 %v5116_v0 }
 0xeb6   : > { %4257 = vmatpush3.bf16.msra.mxu1 %v5489_v41 }
 0xeb7   : > { %4282 = vmatprep.subr.bf16.mxu1 %v5116_v0 }
 0xf68   : > { %v1551_v26 = vpop.f32.mrf.mxu0 }
 0xf69   : > { %v1552_v9 = vadd.f32 %v5528_v55, %v1551_v26  ;;  %v1623_v33 = vpop.f32.mrf.mxu1 }
 0xf6a   : > { %v1629_v27 = vadd.f32 %v1623_v33, %v786_v2  ;;  %v4240_v34 = vpop.f32.mrf.mxu0 }
 0xf6b   : > { %v3864_v35 = vmul.f32 -1.442695, %v1552_v9  ;;  %v4248_v32 = vpop.f32.mrf.mxu1 }
 0xf6c   : > { %v3867_v36 = vmul.f32 -1.442695, %v1629_v27  ;;  %v1554_v37 = vpop.f32.mrf.mxu0 }
 0xf6d   : > { %4700 = vpow2.f32 %v3864_v35  ;;  %v1626_v40 = vpop.f32.mrf.mxu1 }
 0xf6e   : > { %4702 = vpow2.f32 %v3867_v36  ;;  %v4241_v30 = vpop.f32.mrf.mxu0 }
 0xf6f   : > { %v4249_v42 = vpop.f32.mrf.mxu1 }
 0xf7a   : > { %v4701_v43 = vpop.eup %4700 }
 0xf7b   : > { %v4703_v44 = vpop.eup %4702  ;;  %v1560_v45 = vadd.f32 1.0, %v4701_v43 }
 0xf7c   : > { %v1633_v46 = vadd.f32 1.0, %v4703_v44 }
 0xf7d   : > { %4704 = vrcp.f32 %v1560_v45 }
 0xf7e   : > { %4706 = vrcp.f32 %v1633_v46 }
 0xf8a   : > { %v4705_v54 = vpop.eup %4704 }
 0xf8b   : > { %v4707_v47 = vpop.eup %4706  ;;  %v1563_v48 = vmul.f32 2.0, %v4705_v54  ;;  %v1565_v61 = vmul.f32 %v4705_v54, %v5654_v13 }
 0xf8c   : > { %v1636_v50 = vmul.f32 2.0, %v4707_v47  ;;  %v1638_v63 = vmul.f32 %v4707_v47, %v5656_v15 }
 0xf8d   : > { %v3865_v56 = vadd.f32 -1.0, %v1563_v48 }
 0xf8e   : > { %v3868_v57 = vadd.f32 -1.0, %v1636_v50 }
 0xf8f   : > { %1567 = vrot.lane.b32.xlu1 %v3865_v56, %s5119_s28 }
 0xf90   : > { %1640 = vrot.lane.b32.xlu0 %v3868_v57, %s5119_s28 }
0x1001   : > { %v1568_v58 = vpop.permute.xlu1 %1567 }
0x1002   : > { %v1570_v59 = vmul.f32 %v4705_v54, %v1568_v58  ;;  %v1641_v60 = vpop.permute.xlu0 %1640 }
0x1003   : > { %v1643_v52 = vmul.f32 %v4707_v47, %v1641_v60 }
0x1004   : > { %1572 = vrot.lane.b32.xlu1 %v1570_v59, %s5120_s18 }
0x1005   : > { %1645 = vrot.lane.b32.xlu0 %v1643_v52, %s5120_s18 }
0x1076   : > { %v1573_v62 = vpop.permute.xlu1 %1572 }
0x1077   : > { %v5693_v1 = vadd.f32 %v1573_v62, %v1565_v61  ;;  %v1646_v3 = vpop.permute.xlu0 %1645 }
0x1078   : > { %v5695_v49 = vadd.f32 %v1646_v3, %v1638_v63 }
0x1079   : > { %4708 = vtanh.f32 %v5693_v1 }
0x107a   : > { %4710 = vtanh.f32 %v5695_v49 }
0x1086   : > { %v4709_v4 = vpop.eup %4708 }
0x1087   : > { %v4711_v5 = vpop.eup %4710  ;;  %1578 = vrot.lane.b32.xlu1 %v4709_v4, %s5119_s28 }
0x1088   : > { %1651 = vrot.lane.b32.xlu0 %v4711_v5, %s5119_s28 }
0x10f9   : > { %v1579_v6 = vpop.permute.xlu1 %1578 }
0x10fa   : > { %v1581_v7 = vmul.f32 %v4705_v54, %v1579_v6  ;;  %v1652_v11 = vpop.permute.xlu0 %1651 }
0x10fb   : > { %v1654_v8 = vmul.f32 %v4707_v47, %v1652_v11 }
0x10fc   : > { %1660 = vrot.lane.b32.xlu0 %v1581_v7, %s5119_s28 }
0x10fd   : > { %1656 = vrot.lane.b32.xlu1 %v1654_v8, %s5120_s18  ;;  %v1733_v13 = vpack.c.bf16 %v1654_v8, %v1654_v8 }
0x1101   : > { %1735 = vrot.lane.b32.xlu1 %v1733_v13, %s5120_s18 }
0x116e   : > { %v1661_v14 = vpop.permute.xlu0 %1660 }
0x116f   : > { %v1657_v15 = vpop.permute.xlu1 %1656 }
0x1170   : > { %v1663_v16 = vsel %vm809_vm2, %v1657_v15, %v1661_v14 }
0x1171   : > { %v1664_v17 = vpack.c.bf16 %v1663_v16, %v1663_v16 }
0x1173   : > { %v1736_v18 = vpop.permute.xlu1 %1735  ;;  %4259 = vmatmul.mubr.msk.bf16.vlgmr.msra.gmra.mxu1 %vm909_vm3, %v1664_v17 }
0x1174   : > { %4267 = vmatmul.mubr.msk.bf16.vlgmr.msra.gmra.mxu0 %vm809_vm2, %v1736_v18  ;;  %4283 = vmatpush3.bf16.msra.mxu1 %v4838_v19 }
0x1175   : > { %4271 = vmatpush3.bf16.msra.mxu0 %v5465_v31  ;;  %4284 = vmatprep.subr.bf16.mxu1 %v5116_v0 }
0x1176   : > { %4272 = vmatprep.subr.bf16.mxu0 %v5116_v0  ;;  %4278 = vmatprep.mubr.msk.bf16.mxu0 %vm5117_vm0, %v5116_v0 }
0x1177   : > { %4286 = vmatprep.mubr.msk.bf16.mxu1 %vm5117_vm0, %v5116_v0 }
0x1178   : > { %4285 = vmatpush3.bf16.msra.mxu1 %v4839_v20 }
0x1179   : > { %4273 = vmatpush3.bf16.msra.mxu0 %v5472_v38  ;;  %4290 = vmatprep.subr.bf16.mxu1 %v5116_v0 }
0x117a   : > { %4274 = vmatprep.subr.bf16.mxu0 %v5116_v0 }
0x117d   : > { %4275 = vmatpush3.bf16.msra.mxu0 %v5482_v39 }
0x117e   : > { %4276 = vmatprep.subr.bf16.mxu0 %v5116_v0 }
0x1181   : > { %4277 = vmatpush3.bf16.msra.mxu0 %v5489_v41 }
0x1182   : > { %4302 = vmatprep.subr.bf16.mxu0 %v5116_v0 }
0x1233   : > { %v1702_v21 = vpop.f32.mrf.mxu1 }
0x1234   : > { %v1703_v23 = vadd.f32 %v5528_v55, %v1702_v21  ;;  %v1774_v25 = vpop.f32.mrf.mxu0 }
0x1235   : > { %v1780_v24 = vadd.f32 %v1774_v25, %v791_v22  ;;  %v4260_v28 = vpop.f32.mrf.mxu1 }
0x1236   : > { %v3870_v29 = vmul.f32 -1.442695, %v1703_v23  ;;  %v4268_v2 = vpop.f32.mrf.mxu0 }
0x1237   : > { %v3873_v26 = vmul.f32 -1.442695, %v1780_v24  ;;  %v1705_v9 = vpop.f32.mrf.mxu1 }
0x1238   : > { %4712 = vpow2.f32 %v3870_v29  ;;  %v1777_v33 = vpop.f32.mrf.mxu0 }
0x1239   : > { %4714 = vpow2.f32 %v3873_v26  ;;  %v4261_v27 = vpop.f32.mrf.mxu1 }
0x123a   : > { %v4269_v34 = vpop.f32.mrf.mxu0 }
0x1245   : > { %v4713_v35 = vpop.eup %4712 }
0x1246   : > { %v4715_v32 = vpop.eup %4714  ;;  %v1711_v36 = vadd.f32 1.0, %v4713_v35 }
0x1247   : > { %v1784_v37 = vadd.f32 1.0, %v4715_v32 }
0x1248   : > { %4716 = vrcp.f32 %v1711_v36 }
0x1249   : > { %4718 = vrcp.f32 %v1784_v37 }
0x1255   : > { %v4717_v12 = vpop.eup %4716 }
0x1256   : > { %v4719_v51 = vpop.eup %4718  ;;  %v1714_v40 = vmul.f32 2.0, %v4717_v12  ;;  %v1716_v47 = vmul.f32 %v4717_v12, %v5693_v1 }
0x1257   : > { %v1787_v30 = vmul.f32 2.0, %v4719_v51  ;;  %v1789_v50 = vmul.f32 %v4719_v51, %v5695_v49 }
0x1258   : > { %v3871_v42 = vadd.f32 -1.0, %v1714_v40 }
0x1259   : > { %v3874_v43 = vadd.f32 -1.0, %v1787_v30 }
0x125a   : > { %1718 = vrot.lane.b32.xlu0 %v3871_v42, %s5119_s28 }
0x125b   : > { %1791 = vrot.lane.b32.xlu1 %v3874_v43, %s5119_s28 }
0x12cc   : > { %v1719_v44 = vpop.permute.xlu0 %1718 }
0x12cd   : > { %v1721_v45 = vmul.f32 %v4717_v12, %v1719_v44  ;;  %v1792_v46 = vpop.permute.xlu1 %1791 }
0x12ce   : > { %v1794_v54 = vmul.f32 %v4719_v51, %v1792_v46 }
0x12cf   : > { %1723 = vrot.lane.b32.xlu0 %v1721_v45, %s5120_s18 }
0x12d0   : > { %1796 = vrot.lane.b32.xlu1 %v1794_v54, %s5120_s18 }
0x1341   : > { %v1724_v48 = vpop.permute.xlu0 %1723 }
0x1342   : > { %v5730_v56 = vadd.f32 %v1724_v48, %v1716_v47  ;;  %v1797_v57 = vpop.permute.xlu1 %1796  ;;  %v4841_v48 = vld [vmem:[%s6209_s5] ss:$0 sm:$0xff] }
0x1343   : > { %v5732_v58 = vadd.f32 %v1797_v57, %v1789_v50 }
0x1344   : > { %4720 = vtanh.f32 %v5730_v56 }
0x1345   : > { %4722 = vtanh.f32 %v5732_v58 }
0x1351   : > { %v4721_v59 = vpop.eup %4720 }
0x1352   : > { %v4723_v60 = vpop.eup %4722  ;;  %1729 = vrot.lane.b32.xlu0 %v4721_v59, %s5119_s28 }
0x1353   : > { %1802 = vrot.lane.b32.xlu1 %v4723_v60, %s5119_s28 }
0x13c4   : > { %v1730_v52 = vpop.permute.xlu0 %1729 }
0x13c5   : > { %v1732_v61 = vmul.f32 %v4717_v12, %v1730_v52  ;;  %v1803_v62 = vpop.permute.xlu1 %1802 }
0x13c6   : > { %v1805_v63 = vmul.f32 %v4719_v51, %v1803_v62 }
0x13c7   : > { %1811 = vrot.lane.b32.xlu1 %v1732_v61, %s5119_s28 }
0x13c8   : > { %1807 = vrot.lane.b32.xlu0 %v1805_v63, %s5120_s18  ;;  %v1884_v1 = vpack.c.bf16 %v1805_v63, %v1805_v63 }
0x13cc   : > { %1886 = vrot.lane.b32.xlu0 %v1884_v1, %s5120_s18 }
0x1439   : > { %v1812_v3 = vpop.permute.xlu1 %1811 }
0x143a   : > { %v1808_v49 = vpop.permute.xlu0 %1807 }
0x143b   : > { %v1814_v4 = vsel %vm809_vm2, %v1808_v49, %v1812_v3 }
0x143c   : > { %v1815_v5 = vpack.c.bf16 %v1814_v4, %v1814_v4 }
0x143e   : > { %4279 = vmatmul.mubr.msk.bf16.vlgmr.msra.gmra.mxu0 %vm909_vm3, %v1815_v5  ;;  %v1887_v6 = vpop.permute.xlu0 %1886 }
0x143f   : > { %4287 = vmatmul.mubr.msk.bf16.vlgmr.msra.gmra.mxu1 %vm809_vm2, %v1887_v6  ;;  %4306 = vmatprep.mubr.msk.bf16.mxu0 %vm5117_vm0, %v5116_v0  ;;  %v4619_v6 = vld [vmem:[%s6210_s6 + $0x8] sm:$0xff]  }
0x1440   : > { %4291 = vmatpush3.bf16.msra.mxu1 %v5465_v31  ;;  %4298 = vmatprep.mubr.msk.bf16.mxu1 %vm5117_vm0, %v5116_v0  ;;  %v4840_v31 = vld [vmem:[%s6207_s3] ss:$0 sm:$0xff] }
0x1441   : > { %4292 = vmatprep.subr.bf16.mxu1 %v5116_v0  ;;  %v794_v7 = vadd.f32 %v4840_v31, %v5521_v53  ;;  %4303 = vmatpush3.bf16.msra.mxu0 %v4619_v6  ;;  %v4620_v31 = vld [vmem:[%s6210_s6] sm:$0xff]  }
0x1442   : > { %4304 = vmatprep.subr.bf16.mxu0 %v5116_v0 }
0x1444   : > { %4293 = vmatpush3.bf16.msra.mxu1 %v5472_v38 }
0x1445   : > { %4294 = vmatprep.subr.bf16.mxu1 %v5116_v0  ;;  %4305 = vmatpush3.bf16.msra.mxu0 %v4620_v31 }
0x1446   : > { %4310 = vmatprep.subr.bf16.mxu0 %v5116_v0 }
0x1448   : > { %4295 = vmatpush3.bf16.msra.mxu1 %v5482_v39 }
0x1449   : > { %4296 = vmatprep.subr.bf16.mxu1 %v5116_v0 }
0x144c   : > { %4297 = vmatpush3.bf16.msra.mxu1 %v5489_v41 }
0x144d   : > { %4316 = vmatprep.subr.bf16.mxu1 %v5116_v0 }
0x14fe   : > { %v1853_v11 = vpop.f32.mrf.mxu0 }
0x14ff   : > { %v1854_v8 = vadd.f32 %v5528_v55, %v1853_v11  ;;  %v1925_v38 = vpop.f32.mrf.mxu1 }
0x1500   : > { %v1931_v13 = vadd.f32 %v1925_v38, %v794_v7  ;;  %v4280_v14 = vpop.f32.mrf.mxu0 }
0x1501   : > { %v3876_v15 = vmul.f32 -1.442695, %v1854_v8  ;;  %v4288_v39 = vpop.f32.mrf.mxu1 }
0x1502   : > { %v3879_v16 = vmul.f32 -1.442695, %v1931_v13  ;;  %v1856_v17 = vpop.f32.mrf.mxu0  ;;  %v4621_v13 = vld [vmem:[#allocation8] sm:$0xff]   ;;  %v3884_v39 = vld [vmem:[%s6211_s7] ss:$0 sm:$0xff] }
0x1503   : > { %4724 = vpow2.f32 %v3876_v15  ;;  %v1928_v41 = vpop.f32.mrf.mxu1  ;;  %v4623_v15 = vld [vmem:[#allocation10 + $0x8] sm:$0xff]  }
0x1504   : > { %4726 = vpow2.f32 %v3879_v16  ;;  %v4281_v18 = vpop.f32.mrf.mxu0 }
0x1505   : > { %v4289_v19 = vpop.f32.mrf.mxu1 }
0x1510   : > { %v4725_v20 = vpop.eup %4724 }
0x1511   : > { %v4727_v22 = vpop.eup %4726  ;;  %v1862_v21 = vadd.f32 1.0, %v4725_v20  ;;  %v5798_v20 = vld [vmem:[#allocation11 + $0x8] sm:$0xff]  }
0x1512   : > { %v1935_v23 = vadd.f32 1.0, %v4727_v22 }
0x1513   : > { %4728 = vrcp.f32 %v1862_v21 }
0x1514   : > { %4730 = vrcp.f32 %v1935_v23  ;;  %v5802_v23 = vld [vmem:[#allocation11] sm:$0xff]  }
0x1520   : > { %v4729_v53 = vpop.eup %4728 }
0x1521   : > { %v4731_v55 = vpop.eup %4730  ;;  %v1865_v25 = vmul.f32 2.0, %v4729_v53  ;;  %v1867_v27 = vmul.f32 %v4729_v53, %v5730_v56 }
0x1522   : > { %v1938_v24 = vmul.f32 2.0, %v4731_v55  ;;  %v1940_v35 = vmul.f32 %v4731_v55, %v5732_v58 }
0x1523   : > { %v3877_v28 = vadd.f32 -1.0, %v1865_v25 }
0x1524   : > { %v3880_v29 = vadd.f32 -1.0, %v1938_v24 }
0x1525   : > { %1869 = vrot.lane.b32.xlu1 %v3877_v28, %s5119_s28 }
0x1526   : > { %1942 = vrot.lane.b32.xlu0 %v3880_v29, %s5119_s28 }
0x1597   : > { %v1870_v2 = vpop.permute.xlu1 %1869 }
0x1598   : > { %v1872_v26 = vmul.f32 %v4729_v53, %v1870_v2  ;;  %v1943_v9 = vpop.permute.xlu0 %1942 }
0x1599   : > { %v1945_v33 = vmul.f32 %v4731_v55, %v1943_v9 }
0x159a   : > { %1874 = vrot.lane.b32.xlu1 %v1872_v26, %s5120_s18 }
0x159b   : > { %1947 = vrot.lane.b32.xlu0 %v1945_v33, %s5120_s18 }
0x160c   : > { %v1875_v34 = vpop.permute.xlu1 %1874 }
0x160d   : > { %v1877_v32 = vadd.f32 %v1875_v34, %v1867_v27  ;;  %v1948_v36 = vpop.permute.xlu0 %1947  ;;  %v3891_v34 = vld [vmem:[%s6216_s12] ss:$0 sm:$0xff] }
0x160e   : > { %v1950_v37 = vadd.f32 %v1948_v36, %v1940_v35 }
0x160f   : > { %4732 = vtanh.f32 %v1877_v32 }
0x1610   : > { %4734 = vtanh.f32 %v1950_v37 }
0x161c   : > { %v4733_v12 = vpop.eup %4732 }
0x161d   : > { %v4735_v51 = vpop.eup %4734  ;;  %1880 = vrot.lane.b32.xlu1 %v4733_v12, %s5119_s28 }
0x161e   : > { %1953 = vrot.lane.b32.xlu0 %v4735_v51, %s5119_s28 }
0x168f   : > { %v1881_v40 = vpop.permute.xlu1 %1880 }
0x1690   : > { %v1883_v30 = vmul.f32 %v4729_v53, %v1881_v40  ;;  %v1954_v42 = vpop.permute.xlu0 %1953  ;;  %v4625_v53 = vld [vmem:[#allocation10] sm:$0xff]  }
0x1691   : > { %v1956_v43 = vmul.f32 %v4731_v55, %v1954_v42  ;;  %v3888_v55 = vld [vmem:[%s6213_s9] ss:$0 sm:$0xff] }
0x1692   : > { %1962 = vrot.lane.b32.xlu0 %v1883_v30, %s5119_s28 }
0x1693   : > { %1958 = vrot.lane.b32.xlu1 %v1956_v43, %s5120_s18 }
0x1704   : > { %v1963_v44 = vpop.permute.xlu0 %1962 }
0x1705   : > { %v1959_v45 = vpop.permute.xlu1 %1958 }
0x1706   : > { %v1965_v46 = vsel %vm809_vm2, %v1959_v45, %v1963_v44 }
0x1707   : > { %v1966_v54 = vpack.c.bf16 %v1965_v46, %v1965_v46 }
0x1709   : > { %4299 = vmatmul.mubr.msk.bf16.vlgmr.msra.gmra.mxu1 %vm909_vm3, %v1966_v54 }
0x170a   : > { %4320 = vmatprep.mubr.msk.bf16.mxu1 %vm5117_vm0, %v5116_v0  ;;  %4317 = vmatpush3.bf16.msra.mxu1 %v4623_v15 }
0x170b   : > { %4318 = vmatprep.subr.bf16.mxu1 %v5116_v0 }
0x170e   : > { %4319 = vmatpush3.bf16.msra.mxu1 %v4625_v53 }
0x170f   : > { %4332 = vmatprep.subr.bf16.mxu1 %v5116_v0 }
0x17c9   : > { %v2004_v47 = vpop.f32.mrf.mxu1 }
0x17ca   : > { %v2005_v50 = vadd.f32 %v4841_v48, %v2004_v47 }
0x17cb   : > { %v4300_v56 = vpop.f32.mrf.mxu1 }
0x17cc   : > { %v3882_v57 = vmul.f32 -1.442695, %v2005_v50  ;;  %v5837_v56 = vld [vmem:[%s6217_s13 + $0x18] sm:$0xff]  }
0x17cd   : > { %v2007_v58 = vpop.f32.mrf.mxu1 }
0x17ce   : > { %4736 = vpow2.f32 %v3882_v57  ;;  %v5843_v57 = vld [vmem:[%s6217_s13 + $0x10] sm:$0xff]   ;;  %v5850_v58 = vld [vmem:[%s6217_s13 + $0x8] sm:$0xff]  }
0x17cf   : > { %v4301_v59 = vpop.f32.mrf.mxu1 }
0x17db   : > { %v4737_v60 = vpop.eup %4736 }
0x17dc   : > { %v2013_v52 = vadd.f32 1.0, %v4737_v60  ;;  %v5859_v60 = vld [vmem:[%s6217_s13] sm:$0xff]  }
0x17de   : > { %4738 = vrcp.f32 %v2013_v52 }
0x17eb   : > { %v4739_v61 = vpop.eup %4738 }
0x17ec   : > { %v2016_v62 = vmul.f32 2.0, %v4739_v61  ;;  %v2018_v49 = vmul.f32 %v4739_v61, %v1877_v32 }
0x17ee   : > { %v3883_v63 = vadd.f32 -1.0, %v2016_v62 }
0x17f0   : > { %2020 = vrot.lane.b32.xlu1 %v3883_v63, %s5119_s28 }
0x1862   : > { %v2021_v1 = vpop.permute.xlu1 %2020 }
0x1863   : > { %v2023_v3 = vmul.f32 %v4739_v61, %v2021_v1 }
0x1865   : > { %2025 = vrot.lane.b32.xlu0 %v2023_v3, %s5120_s18 }
0x18d7   : > { %v2026_v4 = vpop.permute.xlu0 %2025 }
0x18d8   : > { %v2028_v5 = vadd.f32 %v2026_v4, %v2018_v49  ;;  %v5887_v4 = vld [vmem:[%s6218_s14] ss:$0 sm:$0xff] }
0x18da   : > { %4740 = vtanh.f32 %v2028_v5 }
0x18e7   : > { %v4741_v7 = vpop.eup %4740 }
0x18e8   : > { %2031 = vrot.lane.b32.xlu1 %v4741_v7, %s5119_s28 }
0x195a   : > { %v2032_v11 = vpop.permute.xlu1 %2031 }
0x195b   : > { %v2034_v8 = vmul.f32 %v4739_v61, %v2032_v11 }
0x195d   : > { %v2035_v38 = vpack.c.bf16 %v2034_v8, %v2034_v8 }
0x195f   : > { %2048 = vrot.lane.b32.xlu0 %v2035_v38, %s5120_s18 }
0x19d1   : > { %v2049_v14 = vpop.permute.xlu0 %2048 }
0x19d2   : > { %4307 = vmatmul.mubr.msk.bf16.vlgmr.msra.gmra.mxu0 %vm809_vm2, %v2049_v14 }
0x19d3   : > { %4311 = vmatpush3.bf16.msra.mxu0 %v4621_v13  ;;  %4312 = vmatprep.mubr.msk.bf16.mxu0 %vm5117_vm0, %v5116_v0 }
0x19d4   : > { %4324 = vmatprep.subr.bf16.mxu0 %v5116_v0 }
0x1a92   : > { %v2099_v16 = vpop.f32.mrf.mxu0 }
0x1a93   : > { %v2100_v17 = vadd.f32 %v3884_v39, %v2099_v16 }
0x1a94   : > { %v4308_v41 = vpop.f32.mrf.mxu0 }
0x1a95   : > { %v2105_v18 = vmax.f32 %v2100_v17, 0.0 }
0x1a96   : > { %v2102_v19 = vpop.f32.mrf.mxu0 }
0x1a97   : > { %v2106_v22 = vpack.c.bf16 %v2105_v18, %v2105_v18 }
0x1a98   : > { %v4309_v21 = vpop.f32.mrf.mxu0 }
0x1a99   : > { %4313 = vmatmul.mubr.msk.bf16.vlgmr.msra.gmra.mxu0 %vm719_vm1, %v2106_v22 }
0x1a9a   : > { %4325 = vmatpush3.bf16.msra.mxu0 %v5798_v20  ;;  %4328 = vmatprep.mubr.msk.bf16.mxu0 %vm5117_vm0, %v5116_v0 }
0x1a9b   : > { %4326 = vmatprep.subr.bf16.mxu0 %v5116_v0 }
0x1a9e   : > { %4327 = vmatpush3.bf16.msra.mxu0 %v5802_v23 }
0x1a9f   : > { %4344 = vmatprep.subr.bf16.mxu0 %v5116_v0 }
0x1aa1   : > { %4329 = vmatmul.mubr.bf16.vlgmr.msra.gmra.mxu0 %v5118_v10 }
0x1aa2   : > { %4345 = vmatpush3.bf16.msra.mxu0 %v5798_v20  ;;  %4348 = vmatprep.mubr.msk.bf16.mxu0 %vm5117_vm0, %v5116_v0 }
0x1aa3   : > { %4346 = vmatprep.subr.bf16.mxu0 %v5116_v0 }
0x1aa6   : > { %4347 = vmatpush3.bf16.msra.mxu0 %v5802_v23 }
0x1aa7   : > { %4352 = vmatprep.subr.bf16.mxu0 %v5116_v0 }
0x1b59   : > { %v2159_v10 = vpop.f32.mrf.mxu0 }
0x1b5a   : > { %v2160_v25 = vadd.f32 %v3888_v55, %v2159_v10 }
0x1b5b   : > { %v4314_v24 = vpop.f32.mrf.mxu0 }
0x1b5c   : > { %v2165_v28 = vpack.c.bf16 %v2160_v25, %v2160_v25 }
0x1b5d   : > { %v2162_v29 = vpop.f32.mrf.mxu0 }
0x1b5e   : > { %4321 = vmatmul.mubr.msk.bf16.vlgmr.msra.gmra.mxu1 %vm809_vm2, %v2165_v28 }
0x1b5f   : > { %v4315_v2 = vpop.f32.mrf.mxu0  ;;  %4340 = vmatprep.mubr.msk.bf16.mxu1 %vm5117_vm0, %v5116_v0  ;;  %4333 = vmatpush3.bf16.msra.mxu1 %v5837_v56 }
0x1b60   : > { %4334 = vmatprep.subr.bf16.mxu1 %v5116_v0 }
0x1b61   : > { %v2278_v26 = vpop.f32.mrf.mxu0 }
0x1b63   : > { %v4330_v9 = vpop.f32.mrf.mxu0  ;;  %4335 = vmatpush3.bf16.msra.mxu1 %v5843_v57 }
0x1b64   : > { %4336 = vmatprep.subr.bf16.mxu1 %v5116_v0 }
0x1b65   : > { %v2281_v33 = vpop.f32.mrf.mxu0 }
0x1b67   : > { %v4331_v27 = vpop.f32.mrf.mxu0  ;;  %4337 = vmatpush3.bf16.msra.mxu1 %v5850_v58 }
0x1b68   : > { %4338 = vmatprep.subr.bf16.mxu1 %v5116_v0 }
0x1b6b   : > { %4339 = vmatpush3.bf16.msra.mxu1 %v5859_v60 }
0x1b6c   : > { %4364 = vmatprep.subr.bf16.mxu1 %v5116_v0 }
0x1c1e   : > { %v2226_v35 = vpop.f32.mrf.mxu1 }
0x1c1f   : > { %v5826_v32 = vadd.f32 %v3891_v34, %v2226_v35 }
0x1c20   : > { %v4322_v36 = vpop.f32.mrf.mxu1 }
0x1c21   : > { %v2284_v37 = vadd.f32 %v2278_v26, %v5826_v32 }
0x1c22   : > { %v2229_v12 = vpop.f32.mrf.mxu1 }
0x1c23   : > { %v3897_v51 = vmul.f32 -1.442695, %v2284_v37 }
0x1c24   : > { %v4323_v40 = vpop.f32.mrf.mxu1 }
0x1c25   : > { %4742 = vpow2.f32 %v3897_v51 }
0x1c32   : > { %v4743_v30 = vpop.eup %4742 }
0x1c33   : > { %v2288_v42 = vadd.f32 1.0, %v4743_v30 }
0x1c35   : > { %4744 = vrcp.f32 %v2288_v42 }
0x1c42   : > { %v4745_v43 = vpop.eup %4744 }
0x1c43   : > { %v2291_v44 = vmul.f32 2.0, %v4745_v43  ;;  %v2293_v47 = vmul.f32 0.0, %v4745_v43 }
0x1c45   : > { %v3898_v45 = vadd.f32 -1.0, %v2291_v44 }
0x1c47   : > { %2295 = vrot.lane.b32.xlu1 %v3898_v45, %s5119_s28 }
0x1cb9   : > { %v2296_v46 = vpop.permute.xlu1 %2295 }
0x1cba   : > { %v2298_v54 = vmul.f32 %v4745_v43, %v2296_v46 }
0x1cbc   : > { %2300 = vrot.lane.b32.xlu0 %v2298_v54, %s5120_s18 }
0x1d2e   : > { %v2301_v48 = vpop.permute.xlu0 %2300 }
0x1d2f   : > { %v5831_v50 = vadd.f32 %v2301_v48, %v2293_v47 }
0x1d31   : > { %4746 = vtanh.f32 %v5831_v50 }
0x1d3e   : > { %v4747_v59 = vpop.eup %4746 }
0x1d3f   : > { %2306 = vrot.lane.b32.xlu1 %v4747_v59, %s5119_s28 }
0x1db1   : > { %v2307_v52 = vpop.permute.xlu1 %2306 }
0x1db2   : > { %v2309_v61 = vmul.f32 %v4745_v43, %v2307_v52 }
0x1db4   : > { %v2408_v62 = vpack.c.bf16 %v2309_v61, %v2309_v61  ;;  %2311 = vrot.lane.b32.xlu0 %v2309_v61, %s5120_s18 }
0x1db6   : > { %2410 = vrot.lane.b32.xlu1 %v2408_v62, %s5120_s18 }
0x1e26   : > { %v2312_v63 = vpop.permute.xlu0 %2311 }
0x1e27   : > { %v2314_v1 = vsel %vm809_vm2, %v2312_v63, 0.0 }
0x1e28   : > { %v2315_v3 = vpack.c.bf16 %v2314_v1, %v2314_v1  ;;  %v2411_v49 = vpop.permute.xlu1 %2410 }
0x1e29   : > { %4349 = vmatmul.mubr.msk.bf16.vlgmr.msra.gmra.mxu0 %vm809_vm2, %v2411_v49 }
0x1e2a   : > { %4341 = vmatmul.mubr.msk.bf16.vlgmr.msra.gmra.mxu1 %vm909_vm3, %v2315_v3  ;;  %4353 = vmatpush3.bf16.msra.mxu0 %v5837_v56 }
0x1e2b   : > { %4354 = vmatprep.subr.bf16.mxu0 %v5116_v0  ;;  %4365 = vmatpush3.bf16.msra.mxu1 %v5798_v20 }
0x1e2c   : > { %4366 = vmatprep.subr.bf16.mxu1 %v5116_v0  ;;  %4360 = vmatprep.mubr.msk.bf16.mxu0 %vm5117_vm0, %v5116_v0 }
0x1e2d   : > { %4368 = vmatprep.mubr.msk.bf16.mxu1 %vm5117_vm0, %v5116_v0 }
0x1e2e   : > { %4355 = vmatpush3.bf16.msra.mxu0 %v5843_v57 }
0x1e2f   : > { %4356 = vmatprep.subr.bf16.mxu0 %v5116_v0  ;;  %4367 = vmatpush3.bf16.msra.mxu1 %v5802_v23 }
0x1e30   : > { %4372 = vmatprep.subr.bf16.mxu1 %v5116_v0 }
0x1e32   : > { %4357 = vmatpush3.bf16.msra.mxu0 %v5850_v58 }
0x1e33   : > { %4358 = vmatprep.subr.bf16.mxu0 %v5116_v0 }
0x1e36   : > { %4359 = vmatpush3.bf16.msra.mxu0 %v5859_v60 }
0x1e37   : > { %4384 = vmatprep.subr.bf16.mxu0 %v5116_v0 }
0x1ee9   : > { %v2449_v5 = vpop.f32.mrf.mxu0 }
0x1eea   : > { %v2455_v6 = vadd.f32 %v2449_v5, %v5826_v32  ;;  %v2377_v31 = vpop.f32.mrf.mxu1 }
0x1eeb   : > { %v2378_v7 = vadd.f32 %v5887_v4, %v2377_v31  ;;  %v4350_v11 = vpop.f32.mrf.mxu0 }
0x1eec   : > { %v3907_v8 = vmul.f32 -1.442695, %v2455_v6  ;;  %v4342_v38 = vpop.f32.mrf.mxu1 }
0x1eed   : > { %v3904_v13 = vmul.f32 -1.442695, %v2378_v7  ;;  %v2452_v14 = vpop.f32.mrf.mxu0 }
0x1eee   : > { %4748 = vpow2.f32 %v3907_v8  ;;  %v2380_v15 = vpop.f32.mrf.mxu1 }
0x1eef   : > { %4750 = vpow2.f32 %v3904_v13  ;;  %v4351_v39 = vpop.f32.mrf.mxu0 }
0x1ef0   : > { %v4343_v16 = vpop.f32.mrf.mxu1 }
0x1efb   : > { %v4749_v17 = vpop.eup %4748 }
0x1efc   : > { %v4751_v41 = vpop.eup %4750  ;;  %v2459_v18 = vadd.f32 1.0, %v4749_v17 }
0x1efd   : > { %v2386_v19 = vadd.f32 1.0, %v4751_v41 }
0x1efe   : > { %4752 = vrcp.f32 %v2459_v18 }
0x1eff   : > { %4754 = vrcp.f32 %v2386_v19 }
0x1f0b   : > { %v4753_v22 = vpop.eup %4752 }
0x1f0c   : > { %v4755_v21 = vpop.eup %4754  ;;  %v2462_v53 = vmul.f32 2.0, %v4753_v22  ;;  %v2464_v26 = vmul.f32 %v4753_v22, %v5831_v50 }
0x1f0d   : > { %v2389_v55 = vmul.f32 2.0, %v4755_v21  ;;  %v2391_v33 = vmul.f32 0.0, %v4755_v21 }
0x1f0e   : > { %v3908_v10 = vadd.f32 -1.0, %v2462_v53 }
0x1f0f   : > { %v3905_v25 = vadd.f32 -1.0, %v2389_v55 }
0x1f10   : > { %2466 = vrot.lane.b32.xlu1 %v3908_v10, %s5119_s28 }
0x1f11   : > { %2393 = vrot.lane.b32.xlu0 %v3905_v25, %s5119_s28 }
0x1f82   : > { %v2467_v24 = vpop.permute.xlu1 %2466 }
0x1f83   : > { %v2469_v28 = vmul.f32 %v4753_v22, %v2467_v24  ;;  %v2394_v29 = vpop.permute.xlu0 %2393 }
0x1f84   : > { %v2396_v2 = vmul.f32 %v4755_v21, %v2394_v29 }
0x1f85   : > { %2471 = vrot.lane.b32.xlu1 %v2469_v28, %s5120_s18 }
0x1f86   : > { %2398 = vrot.lane.b32.xlu0 %v2396_v2, %s5120_s18 }
0x1ff7   : > { %v2472_v9 = vpop.permute.xlu1 %2471 }
0x1ff8   : > { %v5896_v27 = vadd.f32 %v2472_v9, %v2464_v26  ;;  %v2399_v34 = vpop.permute.xlu0 %2398 }
0x1ff9   : > { %v5898_v35 = vadd.f32 %v2399_v34, %v2391_v33 }
0x1ffa   : > { %4756 = vtanh.f32 %v5896_v27 }
0x1ffb   : > { %4758 = vtanh.f32 %v5898_v35 }
0x2007   : > { %v4757_v36 = vpop.eup %4756 }
0x2008   : > { %v4759_v37 = vpop.eup %4758  ;;  %2477 = vrot.lane.b32.xlu1 %v4757_v36, %s5119_s28 }
0x2009   : > { %2404 = vrot.lane.b32.xlu0 %v4759_v37, %s5119_s28 }
0x207a   : > { %v2478_v12 = vpop.permute.xlu1 %2477 }
0x207b   : > { %v2480_v51 = vmul.f32 %v4753_v22, %v2478_v12  ;;  %v2405_v40 = vpop.permute.xlu0 %2404 }
0x207c   : > { %v5904_v30 = vmul.f32 %v4755_v21, %v2405_v40 }
0x207d   : > { %2482 = vrot.lane.b32.xlu0 %v2480_v51, %s5120_s18  ;;  %v2559_v42 = vpack.c.bf16 %v2480_v51, %v2480_v51 }
0x207e   : > { %2486 = vrot.lane.b32.xlu1 %v5904_v30, %s5119_s28 }
0x2081   : > { %2561 = vrot.lane.b32.xlu0 %v2559_v42, %s5120_s18 }
0x20ef   : > { %v2483_v43 = vpop.permute.xlu0 %2482 }
0x20f0   : > { %v2487_v44 = vpop.permute.xlu1 %2486 }
0x20f1   : > { %v2489_v45 = vsel %vm809_vm2, %v2483_v43, %v2487_v44 }
0x20f2   : > { %v2490_v46 = vpack.c.bf16 %v2489_v45, %v2489_v45 }
0x20f3   : > { %v2562_v54 = vpop.permute.xlu0 %2561 }
0x20f4   : > { %4361 = vmatmul.mubr.msk.bf16.vlgmr.msra.gmra.mxu0 %vm909_vm3, %v2490_v46  ;;  %4369 = vmatmul.mubr.msk.bf16.vlgmr.msra.gmra.mxu1 %vm809_vm2, %v2562_v54 }
0x20f5   : > { %4373 = vmatpush3.bf16.msra.mxu1 %v5837_v56  ;;  %4385 = vmatpush3.bf16.msra.mxu0 %v5798_v20 }
0x20f6   : > { %4374 = vmatprep.subr.bf16.mxu1 %v5116_v0  ;;  %4386 = vmatprep.subr.bf16.mxu0 %v5116_v0 }
0x20f7   : > { %4380 = vmatprep.mubr.msk.bf16.mxu1 %vm5117_vm0, %v5116_v0  ;;  %4388 = vmatprep.mubr.msk.bf16.mxu0 %vm5117_vm0, %v5116_v0 }
0x20f9   : > { %4375 = vmatpush3.bf16.msra.mxu1 %v5843_v57  ;;  %4387 = vmatpush3.bf16.msra.mxu0 %v5802_v23 }
0x20fa   : > { %4376 = vmatprep.subr.bf16.mxu1 %v5116_v0  ;;  %4392 = vmatprep.subr.bf16.mxu0 %v5116_v0 }
0x20fd   : > { %4377 = vmatpush3.bf16.msra.mxu1 %v5850_v58 }
0x20fe   : > { %4378 = vmatprep.subr.bf16.mxu1 %v5116_v0 }
0x2101   : > { %4379 = vmatpush3.bf16.msra.mxu1 %v5859_v60 }
0x2102   : > { %4404 = vmatprep.subr.bf16.mxu1 %v5116_v0 }
0x21b4   : > { %v2528_v47 = vpop.f32.mrf.mxu0  ;;  %v2600_v48 = vpop.f32.mrf.mxu1 }
0x21b5   : > { %v2529_v50 = vadd.f32 %v5887_v4, %v2528_v47  ;;  %v2606_v59 = vadd.f32 %v2600_v48, %v5826_v32 }
0x21b6   : > { %v4362_v52 = vpop.f32.mrf.mxu0  ;;  %v4370_v61 = vpop.f32.mrf.mxu1 }
0x21b7   : > { %v3910_v62 = vmul.f32 -1.442695, %v2529_v50  ;;  %v3913_v63 = vmul.f32 -1.442695, %v2606_v59 }
0x21b8   : > { %v2531_v1 = vpop.f32.mrf.mxu0  ;;  %v2603_v3 = vpop.f32.mrf.mxu1 }
0x21b9   : > { %4760 = vpow2.f32 %v3910_v62 }
0x21ba   : > { %4762 = vpow2.f32 %v3913_v63  ;;  %v4363_v49 = vpop.f32.mrf.mxu0  ;;  %v4371_v5 = vpop.f32.mrf.mxu1 }
0x21c6   : > { %v4761_v6 = vpop.eup %4760 }
0x21c7   : > { %v4763_v31 = vpop.eup %4762  ;;  %v2537_v7 = vadd.f32 1.0, %v4761_v6 }
0x21c8   : > { %v2610_v11 = vadd.f32 1.0, %v4763_v31 }
0x21c9   : > { %4764 = vrcp.f32 %v2537_v7 }
0x21ca   : > { %4766 = vrcp.f32 %v2610_v11 }
0x21d6   : > { %v4765_v8 = vpop.eup %4764 }
0x21d7   : > { %v4767_v38 = vpop.eup %4766  ;;  %v2540_v13 = vmul.f32 2.0, %v4765_v8  ;;  %v2542_v19 = vmul.f32 %v4765_v8, %v5898_v35 }
0x21d8   : > { %v2613_v14 = vmul.f32 2.0, %v4767_v38  ;;  %v2615_v21 = vmul.f32 %v4767_v38, %v5896_v27 }
0x21d9   : > { %v3911_v15 = vadd.f32 -1.0, %v2540_v13 }
0x21da   : > { %v3914_v39 = vadd.f32 -1.0, %v2613_v14 }
0x21db   : > { %2544 = vrot.lane.b32.xlu1 %v3911_v15, %s5119_s28 }
0x21dc   : > { %2617 = vrot.lane.b32.xlu0 %v3914_v39, %s5119_s28 }
0x224d   : > { %v2545_v16 = vpop.permute.xlu1 %2544 }
0x224e   : > { %v2547_v17 = vmul.f32 %v4765_v8, %v2545_v16  ;;  %v2618_v41 = vpop.permute.xlu0 %2617 }
0x224f   : > { %v2620_v18 = vmul.f32 %v4767_v38, %v2618_v41 }
0x2250   : > { %2549 = vrot.lane.b32.xlu1 %v2547_v17, %s5120_s18 }
0x2251   : > { %2622 = vrot.lane.b32.xlu0 %v2620_v18, %s5120_s18 }
0x22c2   : > { %v2550_v22 = vpop.permute.xlu1 %2549 }
0x22c3   : > { %v5937_v53 = vadd.f32 %v2550_v22, %v2542_v19  ;;  %v2623_v55 = vpop.permute.xlu0 %2622 }
0x22c4   : > { %v5939_v10 = vadd.f32 %v2623_v55, %v2615_v21 }
0x22c5   : > { %4768 = vtanh.f32 %v5937_v53 }
0x22c6   : > { %4770 = vtanh.f32 %v5939_v10 }
0x22d2   : > { %v4769_v25 = vpop.eup %4768 }
0x22d3   : > { %v4771_v24 = vpop.eup %4770  ;;  %2555 = vrot.lane.b32.xlu1 %v4769_v25, %s5119_s28 }
0x22d4   : > { %2628 = vrot.lane.b32.xlu0 %v4771_v24, %s5119_s28 }
0x2345   : > { %v2556_v28 = vpop.permute.xlu1 %2555 }
0x2346   : > { %v2558_v29 = vmul.f32 %v4765_v8, %v2556_v28  ;;  %v2629_v2 = vpop.permute.xlu0 %2628 }
0x2347   : > { %v2631_v26 = vmul.f32 %v4767_v38, %v2629_v2 }
0x2348   : > { %2637 = vrot.lane.b32.xlu0 %v2558_v29, %s5119_s28 }
0x2349   : > { %2633 = vrot.lane.b32.xlu1 %v2631_v26, %s5120_s18  ;;  %v2710_v9 = vpack.c.bf16 %v2631_v26, %v2631_v26 }
0x234d   : > { %2712 = vrot.lane.b32.xlu1 %v2710_v9, %s5120_s18 }
0x23ba   : > { %v5948_v33 = vpop.permute.xlu0 %2637 }
0x23bb   : > { %v2634_v27 = vpop.permute.xlu1 %2633 }
0x23bc   : > { %v2640_v34 = vsel %vm809_vm2, %v2634_v27, %v5948_v33 }
0x23bd   : > { %v2641_v35 = vpack.c.bf16 %v2640_v34, %v2640_v34 }
0x23bf   : > { %v2713_v36 = vpop.permute.xlu1 %2712  ;;  %4381 = vmatmul.mubr.msk.bf16.vlgmr.msra.gmra.mxu1 %vm909_vm3, %v2641_v35 }
0x23c0   : > { %4389 = vmatmul.mubr.msk.bf16.vlgmr.msra.gmra.mxu0 %vm809_vm2, %v2713_v36  ;;  %4405 = vmatpush3.bf16.msra.mxu1 %v5798_v20 }
0x23c1   : > { %4393 = vmatpush3.bf16.msra.mxu0 %v5837_v56  ;;  %4406 = vmatprep.subr.bf16.mxu1 %v5116_v0 }
0x23c2   : > { %4394 = vmatprep.subr.bf16.mxu0 %v5116_v0  ;;  %4400 = vmatprep.mubr.msk.bf16.mxu0 %vm5117_vm0, %v5116_v0 }
0x23c3   : > { %4408 = vmatprep.mubr.msk.bf16.mxu1 %vm5117_vm0, %v5116_v0 }
0x23c4   : > { %4407 = vmatpush3.bf16.msra.mxu1 %v5802_v23 }
0x23c5   : > { %4395 = vmatpush3.bf16.msra.mxu0 %v5843_v57  ;;  %4412 = vmatprep.subr.bf16.mxu1 %v5116_v0 }
0x23c6   : > { %4396 = vmatprep.subr.bf16.mxu0 %v5116_v0 }
0x23c9   : > { %4397 = vmatpush3.bf16.msra.mxu0 %v5850_v58 }
0x23ca   : > { %4398 = vmatprep.subr.bf16.mxu0 %v5116_v0 }
0x23cd   : > { %4399 = vmatpush3.bf16.msra.mxu0 %v5859_v60 }
0x23ce   : > { %4424 = vmatprep.subr.bf16.mxu0 %v5116_v0 }
0x247f   : > { %v2679_v37 = vpop.f32.mrf.mxu1 }
0x2480   : > { %v2680_v12 = vadd.f32 %v5887_v4, %v2679_v37  ;;  %v2751_v51 = vpop.f32.mrf.mxu0 }
0x2481   : > { %v2757_v40 = vadd.f32 %v2751_v51, %v5826_v32  ;;  %v4382_v42 = vpop.f32.mrf.mxu1 }
0x2482   : > { %v3916_v43 = vmul.f32 -1.442695, %v2680_v12  ;;  %v4390_v44 = vpop.f32.mrf.mxu0 }
0x2483   : > { %v3919_v45 = vmul.f32 -1.442695, %v2757_v40  ;;  %v2682_v46 = vpop.f32.mrf.mxu1 }
0x2484   : > { %4772 = vpow2.f32 %v3916_v43  ;;  %v2754_v54 = vpop.f32.mrf.mxu0 }
0x2485   : > { %4774 = vpow2.f32 %v3919_v45  ;;  %v4383_v47 = vpop.f32.mrf.mxu1 }
0x2486   : > { %v4391_v48 = vpop.f32.mrf.mxu0 }
0x2491   : > { %v4773_v50 = vpop.eup %4772 }
0x2492   : > { %v4775_v59 = vpop.eup %4774  ;;  %v2688_v52 = vadd.f32 1.0, %v4773_v50 }
0x2493   : > { %v2761_v61 = vadd.f32 1.0, %v4775_v59 }
0x2494   : > { %4776 = vrcp.f32 %v2688_v52 }
0x2495   : > { %4778 = vrcp.f32 %v2761_v61 }
0x24a1   : > { %v4777_v62 = vpop.eup %4776 }
0x24a2   : > { %v4779_v63 = vpop.eup %4778  ;;  %v2691_v1 = vmul.f32 2.0, %v4777_v62  ;;  %v2693_v8 = vmul.f32 %v4777_v62, %v5937_v53 }
0x24a3   : > { %v2764_v3 = vmul.f32 2.0, %v4779_v63  ;;  %v2766_v13 = vmul.f32 %v4779_v63, %v5939_v10 }
0x24a4   : > { %v3917_v49 = vadd.f32 -1.0, %v2691_v1 }
0x24a5   : > { %v3920_v5 = vadd.f32 -1.0, %v2764_v3 }
0x24a6   : > { %2695 = vrot.lane.b32.xlu0 %v3917_v49, %s5119_s28 }
0x24a7   : > { %2768 = vrot.lane.b32.xlu1 %v3920_v5, %s5119_s28 }
0x2518   : > { %v2696_v6 = vpop.permute.xlu0 %2695 }
0x2519   : > { %v2698_v31 = vmul.f32 %v4777_v62, %v2696_v6  ;;  %v2769_v7 = vpop.permute.xlu1 %2768 }
0x251a   : > { %v2771_v11 = vmul.f32 %v4779_v63, %v2769_v7 }
0x251b   : > { %2700 = vrot.lane.b32.xlu0 %v2698_v31, %s5120_s18 }
0x251c   : > { %2773 = vrot.lane.b32.xlu1 %v2771_v11, %s5120_s18 }
0x258d   : > { %v2701_v38 = vpop.permute.xlu0 %2700 }
0x258e   : > { %v5978_v14 = vadd.f32 %v2701_v38, %v2693_v8  ;;  %v2774_v15 = vpop.permute.xlu1 %2773 }
0x258f   : > { %v5980_v39 = vadd.f32 %v2774_v15, %v2766_v13 }
0x2590   : > { %4780 = vtanh.f32 %v5978_v14 }
0x2591   : > { %4782 = vtanh.f32 %v5980_v39 }
0x259d   : > { %v4781_v16 = vpop.eup %4780 }
0x259e   : > { %v4783_v17 = vpop.eup %4782  ;;  %2706 = vrot.lane.b32.xlu0 %v4781_v16, %s5119_s28 }
0x259f   : > { %2779 = vrot.lane.b32.xlu1 %v4783_v17, %s5119_s28 }
0x2610   : > { %v2707_v41 = vpop.permute.xlu0 %2706 }
0x2611   : > { %v5986_v18 = vmul.f32 %v4777_v62, %v2707_v41  ;;  %v2780_v19 = vpop.permute.xlu1 %2779 }
0x2612   : > { %v2782_v22 = vmul.f32 %v4779_v63, %v2780_v19 }
0x2613   : > { %2788 = vrot.lane.b32.xlu1 %v5986_v18, %s5119_s28 }
0x2614   : > { %2784 = vrot.lane.b32.xlu0 %v2782_v22, %s5120_s18  ;;  %v2861_v21 = vpack.c.bf16 %v2782_v22, %v2782_v22 }
0x2618   : > { %2863 = vrot.lane.b32.xlu0 %v2861_v21, %s5120_s18 }
0x2685   : > { %v2789_v53 = vpop.permute.xlu1 %2788 }
0x2686   : > { %v2785_v55 = vpop.permute.xlu0 %2784 }
0x2687   : > { %v2791_v10 = vsel %vm809_vm2, %v2785_v55, %v2789_v53 }
0x2688   : > { %v2792_v25 = vpack.c.bf16 %v2791_v10, %v2791_v10 }
0x268a   : > { %4401 = vmatmul.mubr.msk.bf16.vlgmr.msra.gmra.mxu0 %vm909_vm3, %v2792_v25  ;;  %v2864_v24 = vpop.permute.xlu0 %2863 }
0x268b   : > { %4409 = vmatmul.mubr.msk.bf16.vlgmr.msra.gmra.mxu1 %vm809_vm2, %v2864_v24  ;;  %4425 = vmatpush3.bf16.msra.mxu0 %v5798_v20 }
0x268c   : > { %4413 = vmatpush3.bf16.msra.mxu1 %v5837_v56  ;;  %4426 = vmatprep.subr.bf16.mxu0 %v5116_v0 }
0x268d   : > { %4414 = vmatprep.subr.bf16.mxu1 %v5116_v0  ;;  %4420 = vmatprep.mubr.msk.bf16.mxu1 %vm5117_vm0, %v5116_v0 }
0x268e   : > { %4428 = vmatprep.mubr.msk.bf16.mxu0 %vm5117_vm0, %v5116_v0 }
0x268f   : > { %4427 = vmatpush3.bf16.msra.mxu0 %v5802_v23 }
0x2690   : > { %4415 = vmatpush3.bf16.msra.mxu1 %v5843_v57  ;;  %4432 = vmatprep.subr.bf16.mxu0 %v5116_v0 }
0x2691   : > { %4416 = vmatprep.subr.bf16.mxu1 %v5116_v0 }
0x2694   : > { %4417 = vmatpush3.bf16.msra.mxu1 %v5850_v58 }
0x2695   : > { %4418 = vmatprep.subr.bf16.mxu1 %v5116_v0 }
0x2698   : > { %4419 = vmatpush3.bf16.msra.mxu1 %v5859_v60 }
0x2699   : > { %4444 = vmatprep.subr.bf16.mxu1 %v5116_v0 }
0x274a   : > { %v2830_v28 = vpop.f32.mrf.mxu0 }
0x274b   : > { %v2831_v29 = vadd.f32 %v5887_v4, %v2830_v28  ;;  %v2902_v2 = vpop.f32.mrf.mxu1 }
0x274c   : > { %v2908_v26 = vadd.f32 %v2902_v2, %v5826_v32  ;;  %v4402_v9 = vpop.f32.mrf.mxu0 }
0x274d   : > { %v3922_v27 = vmul.f32 -1.442695, %v2831_v29  ;;  %v4410_v34 = vpop.f32.mrf.mxu1 }
0x274e   : > { %v3925_v35 = vmul.f32 -1.442695, %v2908_v26  ;;  %v2833_v36 = vpop.f32.mrf.mxu0 }
0x274f   : > { %4784 = vpow2.f32 %v3922_v27  ;;  %v2905_v37 = vpop.f32.mrf.mxu1 }
0x2750   : > { %4786 = vpow2.f32 %v3925_v35  ;;  %v4403_v12 = vpop.f32.mrf.mxu0 }
0x2751   : > { %v4411_v51 = vpop.f32.mrf.mxu1 }
0x275c   : > { %v4785_v40 = vpop.eup %4784 }
0x275d   : > { %v4787_v42 = vpop.eup %4786  ;;  %v2839_v43 = vadd.f32 1.0, %v4785_v40 }
0x275e   : > { %v2912_v44 = vadd.f32 1.0, %v4787_v42 }
0x275f   : > { %4788 = vrcp.f32 %v2839_v43 }
0x2760   : > { %4790 = vrcp.f32 %v2912_v44 }
0x276c   : > { %v4789_v45 = vpop.eup %4788 }
0x276d   : > { %v4791_v46 = vpop.eup %4790  ;;  %v2842_v54 = vmul.f32 2.0, %v4789_v45  ;;  %v2844_v63 = vmul.f32 %v4789_v45, %v5978_v14 }
0x276e   : > { %v2915_v47 = vmul.f32 2.0, %v4791_v46  ;;  %v2917_v3 = vmul.f32 %v4791_v46, %v5980_v39 }
0x276f   : > { %v3923_v48 = vadd.f32 -1.0, %v2842_v54 }
0x2770   : > { %v3926_v50 = vadd.f32 -1.0, %v2915_v47 }
0x2771   : > { %2846 = vrot.lane.b32.xlu1 %v3923_v48, %s5119_s28 }
0x2772   : > { %2919 = vrot.lane.b32.xlu0 %v3926_v50, %s5119_s28 }
0x27e3   : > { %v2847_v59 = vpop.permute.xlu1 %2846 }
0x27e4   : > { %v2849_v52 = vmul.f32 %v4789_v45, %v2847_v59  ;;  %v2920_v61 = vpop.permute.xlu0 %2919 }
0x27e5   : > { %v2922_v62 = vmul.f32 %v4791_v46, %v2920_v61 }
0x27e6   : > { %2851 = vrot.lane.b32.xlu1 %v2849_v52, %s5120_s18 }
0x27e7   : > { %2924 = vrot.lane.b32.xlu0 %v2922_v62, %s5120_s18 }
0x2858   : > { %v2852_v1 = vpop.permute.xlu1 %2851 }
0x2859   : > { %v6019_v49 = vadd.f32 %v2852_v1, %v2844_v63  ;;  %v2925_v5 = vpop.permute.xlu0 %2924 }
0x285a   : > { %v6021_v6 = vadd.f32 %v2925_v5, %v2917_v3 }
0x285b   : > { %4792 = vtanh.f32 %v6019_v49 }
0x285c   : > { %4794 = vtanh.f32 %v6021_v6 }
0x2868   : > { %v4793_v31 = vpop.eup %4792 }
0x2869   : > { %v4795_v7 = vpop.eup %4794  ;;  %2857 = vrot.lane.b32.xlu1 %v4793_v31, %s5119_s28 }
0x286a   : > { %2930 = vrot.lane.b32.xlu0 %v4795_v7, %s5119_s28 }
0x28db   : > { %v2858_v11 = vpop.permute.xlu1 %2857 }
0x28dc   : > { %v6027_v8 = vmul.f32 %v4789_v45, %v2858_v11  ;;  %v2931_v38 = vpop.permute.xlu0 %2930 }
0x28dd   : > { %v2933_v13 = vmul.f32 %v4791_v46, %v2931_v38 }
0x28de   : > { %2939 = vrot.lane.b32.xlu0 %v6027_v8, %s5119_s28 }
0x28df   : > { %2935 = vrot.lane.b32.xlu1 %v2933_v13, %s5120_s18  ;;  %v3012_v14 = vpack.c.bf16 %v2933_v13, %v2933_v13 }
0x28e3   : > { %3014 = vrot.lane.b32.xlu1 %v3012_v14, %s5120_s18 }
0x2950   : > { %v2940_v15 = vpop.permute.xlu0 %2939 }
0x2951   : > { %v2936_v39 = vpop.permute.xlu1 %2935 }
0x2952   : > { %v2942_v16 = vsel %vm809_vm2, %v2936_v39, %v2940_v15 }
0x2953   : > { %v2943_v17 = vpack.c.bf16 %v2942_v16, %v2942_v16 }
0x2955   : > { %v3015_v41 = vpop.permute.xlu1 %3014  ;;  %4421 = vmatmul.mubr.msk.bf16.vlgmr.msra.gmra.mxu1 %vm909_vm3, %v2943_v17 }
0x2956   : > { %4429 = vmatmul.mubr.msk.bf16.vlgmr.msra.gmra.mxu0 %vm809_vm2, %v3015_v41  ;;  %4445 = vmatpush3.bf16.msra.mxu1 %v5798_v20 }
0x2957   : > { %4433 = vmatpush3.bf16.msra.mxu0 %v5837_v56  ;;  %4446 = vmatprep.subr.bf16.mxu1 %v5116_v0 }
0x2958   : > { %4434 = vmatprep.subr.bf16.mxu0 %v5116_v0  ;;  %4440 = vmatprep.mubr.msk.bf16.mxu0 %vm5117_vm0, %v5116_v0 }
0x2959   : > { %4448 = vmatprep.mubr.msk.bf16.mxu1 %vm5117_vm0, %v5116_v0 }
0x295a   : > { %4447 = vmatpush3.bf16.msra.mxu1 %v5802_v23 }
0x295b   : > { %4435 = vmatpush3.bf16.msra.mxu0 %v5843_v57  ;;  %4452 = vmatprep.subr.bf16.mxu1 %v5116_v0 }
0x295c   : > { %4436 = vmatprep.subr.bf16.mxu0 %v5116_v0 }
0x295f   : > { %4437 = vmatpush3.bf16.msra.mxu0 %v5850_v58 }
0x2960   : > { %4438 = vmatprep.subr.bf16.mxu0 %v5116_v0 }
0x2963   : > { %4439 = vmatpush3.bf16.msra.mxu0 %v5859_v60 }
0x2964   : > { %4464 = vmatprep.subr.bf16.mxu0 %v5116_v0 }
0x2a15   : > { %v2981_v19 = vpop.f32.mrf.mxu1 }
0x2a16   : > { %v2982_v22 = vadd.f32 %v5887_v4, %v2981_v19  ;;  %v3053_v21 = vpop.f32.mrf.mxu0 }
0x2a17   : > { %v3059_v53 = vadd.f32 %v3053_v21, %v5826_v32  ;;  %v4422_v55 = vpop.f32.mrf.mxu1 }
0x2a18   : > { %v3928_v10 = vmul.f32 -1.442695, %v2982_v22  ;;  %v4430_v25 = vpop.f32.mrf.mxu0 }
0x2a19   : > { %v3931_v24 = vmul.f32 -1.442695, %v3059_v53  ;;  %v2984_v28 = vpop.f32.mrf.mxu1 }
0x2a1a   : > { %4796 = vpow2.f32 %v3928_v10  ;;  %v3056_v29 = vpop.f32.mrf.mxu0 }
0x2a1b   : > { %4798 = vpow2.f32 %v3931_v24  ;;  %v4423_v2 = vpop.f32.mrf.mxu1 }
0x2a1c   : > { %v4431_v26 = vpop.f32.mrf.mxu0 }
0x2a27   : > { %v4797_v9 = vpop.eup %4796 }
0x2a28   : > { %v4799_v27 = vpop.eup %4798  ;;  %v2990_v34 = vadd.f32 1.0, %v4797_v9 }
0x2a29   : > { %v3063_v35 = vadd.f32 1.0, %v4799_v27 }
0x2a2a   : > { %4800 = vrcp.f32 %v2990_v34 }
0x2a2b   : > { %4802 = vrcp.f32 %v3063_v35 }
0x2a37   : > { %v4801_v36 = vpop.eup %4800 }
0x2a38   : > { %v4803_v37 = vpop.eup %4802  ;;  %v2993_v12 = vmul.f32 2.0, %v4801_v36  ;;  %v2995_v54 = vmul.f32 %v4801_v36, %v6019_v49 }
0x2a39   : > { %v3066_v51 = vmul.f32 2.0, %v4803_v37  ;;  %v3068_v48 = vmul.f32 %v4803_v37, %v6021_v6 }
0x2a3a   : > { %v3929_v40 = vadd.f32 -1.0, %v2993_v12 }
0x2a3b   : > { %v3932_v42 = vadd.f32 -1.0, %v3066_v51 }
0x2a3c   : > { %2997 = vrot.lane.b32.xlu0 %v3929_v40, %s5119_s28 }
0x2a3d   : > { %3070 = vrot.lane.b32.xlu1 %v3932_v42, %s5119_s28 }
0x2aae   : > { %v2998_v43 = vpop.permute.xlu0 %2997 }
0x2aaf   : > { %v3000_v44 = vmul.f32 %v4801_v36, %v2998_v43  ;;  %v3071_v45 = vpop.permute.xlu1 %3070 }
0x2ab0   : > { %v3073_v46 = vmul.f32 %v4803_v37, %v3071_v45 }
0x2ab1   : > { %3002 = vrot.lane.b32.xlu0 %v3000_v44, %s5120_s18 }
0x2ab2   : > { %3075 = vrot.lane.b32.xlu1 %v3073_v46, %s5120_s18 }
0x2b23   : > { %v3003_v47 = vpop.permute.xlu0 %3002 }
0x2b24   : > { %v6060_v50 = vadd.f32 %v3003_v47, %v2995_v54  ;;  %v3076_v59 = vpop.permute.xlu1 %3075 }
0x2b25   : > { %v6062_v52 = vadd.f32 %v3076_v59, %v3068_v48 }
0x2b26   : > { %4804 = vtanh.f32 %v6060_v50 }
0x2b27   : > { %4806 = vtanh.f32 %v6062_v52 }
0x2b33   : > { %v4805_v61 = vpop.eup %4804 }
0x2b34   : > { %v4807_v62 = vpop.eup %4806  ;;  %3008 = vrot.lane.b32.xlu0 %v4805_v61, %s5119_s28 }
0x2b35   : > { %3081 = vrot.lane.b32.xlu1 %v4807_v62, %s5119_s28 }
0x2ba6   : > { %v3009_v63 = vpop.permute.xlu0 %3008 }
0x2ba7   : > { %v6068_v1 = vmul.f32 %v4801_v36, %v3009_v63  ;;  %v3082_v3 = vpop.permute.xlu1 %3081 }
0x2ba8   : > { %v3084_v49 = vmul.f32 %v4803_v37, %v3082_v3 }
0x2ba9   : > { %3090 = vrot.lane.b32.xlu1 %v6068_v1, %s5119_s28 }
0x2baa   : > { %3086 = vrot.lane.b32.xlu0 %v3084_v49, %s5120_s18  ;;  %v3163_v5 = vpack.c.bf16 %v3084_v49, %v3084_v49 }
0x2bae   : > { %3165 = vrot.lane.b32.xlu0 %v3163_v5, %s5120_s18 }
0x2c1b   : > { %v3091_v6 = vpop.permute.xlu1 %3090 }
0x2c1c   : > { %v3087_v31 = vpop.permute.xlu0 %3086 }
0x2c1d   : > { %v3093_v7 = vsel %vm809_vm2, %v3087_v31, %v3091_v6 }
0x2c1e   : > { %v3094_v11 = vpack.c.bf16 %v3093_v7, %v3093_v7 }
0x2c20   : > { %4441 = vmatmul.mubr.msk.bf16.vlgmr.msra.gmra.mxu0 %vm909_vm3, %v3094_v11  ;;  %v3166_v38 = vpop.permute.xlu0 %3165 }
0x2c21   : > { %4449 = vmatmul.mubr.msk.bf16.vlgmr.msra.gmra.mxu1 %vm809_vm2, %v3166_v38  ;;  %4465 = vmatpush3.bf16.msra.mxu0 %v5798_v20 }
0x2c22   : > { %4453 = vmatpush3.bf16.msra.mxu1 %v5837_v56  ;;  %4466 = vmatprep.subr.bf16.mxu0 %v5116_v0 }
0x2c23   : > { %4454 = vmatprep.subr.bf16.mxu1 %v5116_v0  ;;  %4460 = vmatprep.mubr.msk.bf16.mxu1 %vm5117_vm0, %v5116_v0 }
0x2c24   : > { %4468 = vmatprep.mubr.msk.bf16.mxu0 %vm5117_vm0, %v5116_v0 }
0x2c25   : > { %4467 = vmatpush3.bf16.msra.mxu0 %v5802_v23 }
0x2c26   : > { %4455 = vmatpush3.bf16.msra.mxu1 %v5843_v57  ;;  %4472 = vmatprep.subr.bf16.mxu0 %v5116_v0 }
0x2c27   : > { %4456 = vmatprep.subr.bf16.mxu1 %v5116_v0 }
0x2c2a   : > { %4457 = vmatpush3.bf16.msra.mxu1 %v5850_v58 }
0x2c2b   : > { %4458 = vmatprep.subr.bf16.mxu1 %v5116_v0 }
0x2c2e   : > { %4459 = vmatpush3.bf16.msra.mxu1 %v5859_v60 }
0x2ce0   : > { %v3132_v20 = vpop.f32.mrf.mxu0 }
0x2ce1   : > { %v3133_v13 = vadd.f32 %v5887_v4, %v3132_v20  ;;  %v3204_v14 = vpop.f32.mrf.mxu1 }
0x2ce2   : > { %v3210_v15 = vadd.f32 %v3204_v14, %v5826_v32  ;;  %v4442_v39 = vpop.f32.mrf.mxu0 }
0x2ce3   : > { %v3934_v23 = vmul.f32 -1.442695, %v3133_v13  ;;  %v4450_v16 = vpop.f32.mrf.mxu1 }
0x2ce4   : > { %v3937_v17 = vmul.f32 -1.442695, %v3210_v15  ;;  %v3135_v41 = vpop.f32.mrf.mxu0 }
0x2ce5   : > { %4808 = vpow2.f32 %v3934_v23  ;;  %v3207_v19 = vpop.f32.mrf.mxu1 }
0x2ce6   : > { %4810 = vpow2.f32 %v3937_v17  ;;  %v4443_v22 = vpop.f32.mrf.mxu0 }
0x2ce7   : > { %v4451_v21 = vpop.f32.mrf.mxu1 }
0x2cf2   : > { %v4809_v53 = vpop.eup %4808 }
0x2cf3   : > { %v4811_v55 = vpop.eup %4810  ;;  %v3141_v10 = vadd.f32 1.0, %v4809_v53 }
0x2cf4   : > { %v3214_v25 = vadd.f32 1.0, %v4811_v55 }
0x2cf5   : > { %4812 = vrcp.f32 %v3141_v10 }
0x2cf6   : > { %4814 = vrcp.f32 %v3214_v25 }
0x2d02   : > { %v4813_v24 = vpop.eup %4812 }
0x2d03   : > { %v4815_v28 = vpop.eup %4814  ;;  %v3144_v29 = vmul.f32 2.0, %v4813_v24  ;;  %v3146_v37 = vmul.f32 %v4813_v24, %v6060_v50 }
0x2d04   : > { %v3217_v2 = vmul.f32 2.0, %v4815_v28  ;;  %v3219_v51 = vmul.f32 %v4815_v28, %v6062_v52 }
0x2d05   : > { %v3935_v26 = vadd.f32 -1.0, %v3144_v29 }
0x2d06   : > { %v3938_v9 = vadd.f32 -1.0, %v3217_v2 }
0x2d07   : > { %3148 = vrot.lane.b32.xlu1 %v3935_v26, %s5119_s28 }
0x2d08   : > { %3221 = vrot.lane.b32.xlu0 %v3938_v9, %s5119_s28 }
0x2d79   : > { %v3149_v27 = vpop.permute.xlu1 %3148 }
0x2d7a   : > { %v3151_v34 = vmul.f32 %v4813_v24, %v3149_v27  ;;  %v3222_v35 = vpop.permute.xlu0 %3221 }
0x2d7b   : > { %v3224_v36 = vmul.f32 %v4815_v28, %v3222_v35 }
0x2d7c   : > { %3153 = vrot.lane.b32.xlu1 %v3151_v34, %s5120_s18 }
0x2d7d   : > { %3226 = vrot.lane.b32.xlu0 %v3224_v36, %s5120_s18 }
0x2dee   : > { %v3154_v12 = vpop.permute.xlu1 %3153 }
0x2def   : > { %v6100_v40 = vadd.f32 %v3154_v12, %v3146_v37  ;;  %v3227_v42 = vpop.permute.xlu0 %3226 }
0x2df0   : > { %v6102_v43 = vadd.f32 %v3227_v42, %v3219_v51 }
0x2df1   : > { %4816 = vtanh.f32 %v6100_v40 }
0x2df2   : > { %4818 = vtanh.f32 %v6102_v43 }
0x2dfe   : > { %v4817_v44 = vpop.eup %4816 }
0x2dff   : > { %v4819_v45 = vpop.eup %4818  ;;  %3159 = vrot.lane.b32.xlu1 %v4817_v44, %s5119_s28 }
0x2e00   : > { %3232 = vrot.lane.b32.xlu0 %v4819_v45, %s5119_s28 }
0x2e71   : > { %v3160_v46 = vpop.permute.xlu1 %3159 }
0x2e72   : > { %v3162_v54 = vmul.f32 %v4813_v24, %v3160_v46  ;;  %v3233_v47 = vpop.permute.xlu0 %3232 }
0x2e73   : > { %v3235_v48 = vmul.f32 %v4815_v28, %v3233_v47 }
0x2e74   : > { %3241 = vrot.lane.b32.xlu0 %v3162_v54, %s5119_s28 }
0x2e75   : > { %3237 = vrot.lane.b32.xlu1 %v3235_v48, %s5120_s18  ;;  %v3314_v50 = vpack.c.bf16 %v3235_v48, %v3235_v48 }
0x2e79   : > { %3316 = vrot.lane.b32.xlu1 %v3314_v50, %s5120_s18 }
0x2ee6   : > { %v6111_v59 = vpop.permute.xlu0 %3241 }
0x2ee7   : > { %v3238_v52 = vpop.permute.xlu1 %3237 }
0x2ee8   : > { %v3244_v61 = vsel %vm809_vm2, %v3238_v52, %v6111_v59 }
0x2ee9   : > { %v3245_v62 = vpack.c.bf16 %v3244_v61, %v3244_v61 }
0x2eeb   : > { %v3317_v63 = vpop.permute.xlu1 %3316  ;;  %4461 = vmatmul.mubr.msk.bf16.vlgmr.msra.gmra.mxu1 %vm909_vm3, %v3245_v62  ;;  %v4630_v62 = vld [vmem:[#allocation13 + $0x78] sm:$0xff]  }
0x2eec   : > { %4469 = vmatmul.mubr.msk.bf16.vlgmr.msra.gmra.mxu0 %vm809_vm2, %v3317_v63  ;;  %v4631_v63 = vld [vmem:[#allocation13 + $0x38] sm:$0xff]   ;;  %4110 = vmatprep.subr.bf16.mxu1 %v4630_v62 }
0x2eed   : > { %4473 = vmatpush3.bf16.msra.mxu0 %v5837_v56  ;;  %4480 = vmatprep.mubr.msk.bf16.mxu0 %vm5117_vm0, %v5116_v0 }
0x2eee   : > { %4474 = vmatprep.subr.bf16.mxu0 %v5116_v0  ;;  %4111 = vmatpush3.bf16.msra.mxu1 %v4631_v63 }
0x2ef1   : > { %4475 = vmatpush3.bf16.msra.mxu0 %v5843_v57 }
0x2ef2   : > { %4476 = vmatprep.subr.bf16.mxu0 %v5116_v0 }
0x2ef5   : > { %4477 = vmatpush3.bf16.msra.mxu0 %v5850_v58 }
0x2ef6   : > { %4478 = vmatprep.subr.bf16.mxu0 %v5116_v0 }
0x2ef9   : > { %4479 = vmatpush3.bf16.msra.mxu0 %v5859_v60 }
0x2fab   : > { %v3283_v3 = vpop.f32.mrf.mxu1 }
0x2fac   : > { %v3284_v49 = vadd.f32 %v5887_v4, %v3283_v3  ;;  %v3355_v5 = vpop.f32.mrf.mxu0  ;;  %v4632_v3 = vld [vmem:[#allocation13 + $0x70] sm:$0xff]  }
0x2fad   : > { %v3361_v56 = vadd.f32 %v3355_v5, %v5826_v32  ;;  %v4462_v6 = vpop.f32.mrf.mxu1  ;;  %4112 = vmatprep.subr.bf16.mxu1 %v4632_v3  ;;  %v4634_v5 = vld [vmem:[#allocation13 + $0x68] sm:$0xff]  }
0x2fae   : > { %v3940_v31 = vmul.f32 -1.442695, %v3284_v49  ;;  %v4470_v7 = vpop.f32.mrf.mxu0  ;;  %v4633_v49 = vld [vmem:[#allocation13 + $0x30] sm:$0xff]   ;;  %v4636_v6 = vld [vmem:[#allocation13 + $0x60] sm:$0xff]  }
0x2faf   : > { %v3943_v11 = vmul.f32 -1.442695, %v3361_v56  ;;  %v3286_v38 = vpop.f32.mrf.mxu1  ;;  %4113 = vmatpush3.bf16.msra.mxu1 %v4633_v49  ;;  %v4635_v56 = vld [vmem:[#allocation13 + $0x28] sm:$0xff]   ;;  %v4638_v7 = vld [vmem:[#allocation13 + $0x58] sm:$0xff]  }
0x2fb0   : > { %4820 = vpow2.f32 %v3940_v31  ;;  %v3358_v57 = vpop.f32.mrf.mxu0  ;;  %4114 = vmatprep.subr.bf16.mxu1 %v4634_v5  ;;  %v4637_v31 = vld [vmem:[#allocation13 + $0x20] sm:$0xff]  }
0x2fb1   : > { %4822 = vpow2.f32 %v3943_v11  ;;  %v4463_v20 = vpop.f32.mrf.mxu1 }
0x2fb2   : > { %v4471_v58 = vpop.f32.mrf.mxu0  ;;  %v4641_v20 = vld [vmem:[#allocation13 + $0x10] sm:$0xff]  }
0x2fb3   : > { %4115 = vmatpush3.bf16.msra.mxu1 %v4635_v56  ;;  %v4642_v58 = vld [vmem:[#allocation13 + $0x48] sm:$0xff]  }
0x2fb4   : > { %4116 = vmatprep.subr.bf16.mxu1 %v4636_v6 }
0x2fb7   : > { %4117 = vmatpush3.bf16.msra.mxu1 %v4637_v31 }
0x2fb8   : > { %4118 = vmatprep.subr.bf16.mxu1 %v4638_v7 }
0x2fbd   : > { %v4821_v13 = vpop.eup %4820 }
0x2fbe   : > { %v4823_v0 = vpop.eup %4822  ;;  %v3292_v14 = vadd.f32 1.0, %v4821_v13  ;;  %v4643_v13 = vld [vmem:[#allocation13 + $0x8] sm:$0xff]  }
0x2fbf   : > { %v3365_v60 = vadd.f32 1.0, %v4823_v0  ;;  %v4644_v0 = vld [vmem:[#allocation13 + $0x40] sm:$0xff]  }
0x2fc0   : > { %4824 = vrcp.f32 %v3292_v14  ;;  %v4645_v14 = vld [vmem:[#allocation13] sm:$0xff]  }
0x2fc1   : > { %4826 = vrcp.f32 %v3365_v60 }
0x2fcd   : > { %v4825_v15 = vpop.eup %4824 }
0x2fce   : > { %v4827_v39 = vpop.eup %4826  ;;  %v3295_v23 = vmul.f32 2.0, %v4825_v15  ;;  %v3297_v53 = vmul.f32 %v4825_v15, %v6100_v40 }
0x2fcf   : > { %v3368_v32 = vmul.f32 2.0, %v4827_v39  ;;  %v3370_v10 = vmul.f32 %v4827_v39, %v6102_v43 }
0x2fd0   : > { %v3941_v16 = vadd.f32 -1.0, %v3295_v23 }
0x2fd1   : > { %v3944_v17 = vadd.f32 -1.0, %v3368_v32 }
0x2fd2   : > { %3299 = vrot.lane.b32.xlu0 %v3941_v16, %s5119_s28 }
0x2fd3   : > { %3372 = vrot.lane.b32.xlu1 %v3944_v17, %s5119_s28 }
0x3044   : > { %v3300_v41 = vpop.permute.xlu0 %3299 }
0x3045   : > { %v3302_v19 = vmul.f32 %v4825_v15, %v3300_v41  ;;  %v3373_v22 = vpop.permute.xlu1 %3372 }
0x3046   : > { %v3375_v21 = vmul.f32 %v4827_v39, %v3373_v22 }
0x3047   : > { %3304 = vrot.lane.b32.xlu0 %v3302_v19, %s5120_s18 }
0x3048   : > { %3377 = vrot.lane.b32.xlu1 %v3375_v21, %s5120_s18 }
0x30b9   : > { %v3305_v55 = vpop.permute.xlu0 %3304 }
0x30ba   : > { %v3307_v25 = vadd.f32 %v3305_v55, %v3297_v53  ;;  %v3378_v24 = vpop.permute.xlu1 %3377 }
0x30bb   : > { %v3380_v28 = vadd.f32 %v3378_v24, %v3370_v10 }
0x30bc   : > { %4828 = vtanh.f32 %v3307_v25 }
0x30bd   : > { %4830 = vtanh.f32 %v3380_v28 }
0x30c9   : > { %v4829_v29 = vpop.eup %4828 }
0x30ca   : > { %v4831_v2 = vpop.eup %4830  ;;  %3310 = vrot.lane.b32.xlu0 %v4829_v29, %s5119_s28 }
0x30cb   : > { %3383 = vrot.lane.b32.xlu1 %v4831_v2, %s5119_s28 }
0x313c   : > { %v3311_v26 = vpop.permute.xlu0 %3310 }
0x313d   : > { %v6136_v9 = vmul.f32 %v4825_v15, %v3311_v26  ;;  %v3384_v27 = vpop.permute.xlu1 %3383 }
0x313e   : > { %v3386_v34 = vmul.f32 %v4827_v39, %v3384_v27 }
0x313f   : > { %3392 = vrot.lane.b32.xlu1 %v6136_v9, %s5119_s28  ;;  %v4607_v15 = vpack.i.bf16 %v5986_v18, %v6136_v9 }
0x3140   : > { %3388 = vrot.lane.b32.xlu0 %v3386_v34, %s5120_s18 }
0x31b1   : > { %v3393_v35 = vpop.permute.xlu1 %3392 }
0x31b2   : > { %v3389_v36 = vpop.permute.xlu0 %3388 }
0x31b3   : > { %v3395_v37 = vsel %vm809_vm2, %v3389_v36, %v3393_v35 }
0x31b4   : > { %v3396_v12 = vpack.c.bf16 %v3395_v37, %v3395_v37 }
0x31b6   : > { %4481 = vmatmul.mubr.msk.bf16.vlgmr.msra.gmra.mxu0 %vm909_vm3, %v3396_v12 }
0x3276   : > { %v3434_v51 = vpop.f32.mrf.mxu0 }
0x3277   : > { %v3435_v40 = vadd.f32 %v5887_v4, %v3434_v51  ;;  %v4602_v4 = vpack.i.bf16 %v5904_v30, %v6068_v1  ;;  %v4639_v30 = vld [vmem:[#allocation13 + $0x18] sm:$0xff]   ;;  %v4640_v1 = vld [vmem:[#allocation13 + $0x50] sm:$0xff]  }
0x3278   : > { %v4482_v42 = vpop.f32.mrf.mxu0  ;;  %4119 = vmatpush3.bf16.msra.mxu1 %v4639_v30 }
0x3279   : > { %v3946_v43 = vmul.f32 -1.442695, %v3435_v40  ;;  %4120 = vmatprep.subr.bf16.mxu1 %v4640_v1 }
0x327a   : > { %v3437_v44 = vpop.f32.mrf.mxu0 }
0x327b   : > { %4832 = vpow2.f32 %v3946_v43 }
0x327c   : > { %v4483_v45 = vpop.f32.mrf.mxu0  ;;  %4121 = vmatpush3.bf16.msra.mxu1 %v4641_v20 }
0x327d   : > { %4122 = vmatprep.subr.bf16.mxu1 %v4642_v58 }
0x3280   : > { %4123 = vmatpush3.bf16.msra.mxu1 %v4643_v13 }
0x3281   : > { %4124 = vmatprep.subr.bf16.mxu1 %v4644_v0 }
0x3284   : > { %4125 = vmatpush3.bf16.msra.mxu1 %v4645_v14 }
0x3288   : > { %v4833_v46 = vpop.eup %4832 }
0x3289   : > { %v3443_v54 = vadd.f32 1.0, %v4833_v46 }
0x328b   : > { %4834 = vrcp.f32 %v3443_v54 }
0x3298   : > { %v4835_v47 = vpop.eup %4834 }
0x3299   : > { %v3446_v48 = vmul.f32 2.0, %v4835_v47  ;;  %v3448_v11 = vmul.f32 %v4835_v47, %v3307_v25 }
0x329b   : > { %v3947_v50 = vadd.f32 -1.0, %v3446_v48 }
0x329d   : > { %3450 = vrot.lane.b32.xlu0 %v3947_v50, %s5119_s28 }
0x330f   : > { %v3451_v52 = vpop.permute.xlu0 %3450 }
0x3310   : > { %v3453_v61 = vmul.f32 %v4835_v47, %v3451_v52 }
0x3312   : > { %3455 = vrot.lane.b32.xlu1 %v3453_v61, %s5120_s18 }
0x3316   : > { %4603 = vrot.lane.b32.xlu1 %v4602_v4, %s5120_s18  ;;  %s5121_s18 = smov 96  }
0x3384   : > { %v3456_v38 = vpop.permute.xlu1 %3455 }
0x3385   : > { %v3458_v57 = vadd.f32 %v3456_v38, %v3448_v11 }
0x3387   : > { %4836 = vtanh.f32 %v3458_v57 }
0x3388   : > { %v4604_v39 = vpop.permute.xlu1 %4603 }
0x3389   : > { %v4606_v32 = vunpack.i.h.bf16 %v4604_v39  ;;  %v4605_v16 = vunpack.i.l.bf16 %v4604_v39 }
0x338b   : > { %v3477_v22 = vsel %vm809_vm2, %v4606_v32, %v5948_v33  ;;  %v3481_v21 = vsel %vm809_vm2, %v4605_v16, %v6111_v59  ;;  %v3948_v33 = vld [vmem:[%s6265_s26] ss:$0 sm:$0xff] }
0x3394   : > { %v4837_v60 = vpop.eup %4836 }
0x3395   : > { %3461 = vrot.lane.b32.xlu0 %v4837_v60, %s5119_s28  ;;  %s3822_s28 = sshll.u32 %s5406_s19, 3 }
0x3396   : > { %s652_s23 = scalar_lea.vmem [#allocation14], %s3822_s28 }
0x3397   : > { %s3676_s8 = sshll.u32 %s652_s23, 4  ;;  %s3677_s8 = int_to_ptr.vmem [resolvable:$true] %s3676_s8 }
0x3398   : > { %s5026_s17 = scalar_lea.vmem %s3677_s8, 128 }
0x3399   : > { %4608 = vrot.lane.b32.xlu0 %v4607_v15, %s5121_s18  ;;  %p5027_p9 = scmp.ne.s32.totalorder %s3677_s8, %s5026_s17  ;;  %s5030_s18 = sshll.u32 %s5122_s0, 4  ;;  %s5031_s18 = int_to_ptr.vmem [resolvable:$false] %s5030_s18 }
0x339a   : > { %s5032_s28 = scalar_lea.vmem %s5031_s18, 256  ;;  %p5033_p13 = scmp.lt.s32.totalorder %s3677_s8, %s5031_s18 }
0x339b   : > { %p5028_p10 = pnand %p5027_p9, %p6267_p8  ;;  %p5034_p5 = scmp.lt.s32.totalorder %s5032_s28, %s5026_s17 }
0x339d   : > { %p5029_p11 = pneg %p5028_p10  ;;  %p5035_p1 = por %p5034_p5, %p5033_p13 }
0x339f   : > { %p5036_p3 = pnand %p5035_p1, %p5029_p11 }
0x3407   : > { %v3462_v23 = vpop.permute.xlu0 %3461 }
0x3408   : > { %v3464_v53 = vmul.f32 %v4835_v47, %v3462_v23 }
0x340b   : > { %v4609_v17 = vpop.permute.xlu0 %4608 }
0x340c   : > { %v4611_v41 = vunpack.i.h.bf16 %v4609_v17  ;;  %v4610_v19 = vunpack.i.l.bf16 %v4609_v17 }
0x340e   : > { %v3478_v18 = vsel %vm909_vm3, %v3477_v22, %v4611_v41  ;;  %v3482_v55 = vsel %vm909_vm3, %v3481_v21, %v4610_v19 }
0x340f   : > { %v3483_v10 = vsel %vm3479_vm4, %v3482_v55, %v3464_v53  ;;  %v3480_v25 = vsel %vm3479_vm4, %v3478_v18, %v6027_v8 }
0x3410   : > { %v3485_v24 = vpack.c.bf16 %v3483_v10, %v3483_v10  ;;  %v3484_v28 = vpack.c.bf16 %v3480_v25, %v3480_v25 }
0x3412   : > { %3653 = vmatprep.mubr.bf16.mxu1 %v3485_v24 }
0x3413   : > { %3654 = vmatmul.mubr.bf16.vlgmr.msra.gmra.mxu1 %v3484_v28 }
0x34d3   : > { %v4126_v29 = vpop.f32.mrf.mxu1 }
0x34d5   : > { %v4127_v59 = vpop.f32.mrf.mxu1 }
0x34d6   : > { %v4128_v2 = vadd.f32 %v4127_v59, %v4126_v29 }
0x34d7   : > { %v4129_v26 = vpop.f32.mrf.mxu1 }
0x34d8   : > { %v3656_v9 = vadd.f32 %v4128_v2, %v3948_v33 }
0x34d9   : > { %v4130_v8 = vpop.f32.mrf.mxu1 }
0x34da   : > { %3661 = vst [vmem:[%s652_s23] sm:$0xff] %v3656_v9 }
0x34db   : > { %5039 = shalt.err (!%p5036_p3)
}
0x34dc   : > { %s5040_s20 = scalar_lea.hbm %s6167_s30, 128  ;;  %s5044_s26 = scalar_lea.hbm %s6266_s15, 256 }
0x34dd   : > { %p5041_p4 = scmp.ne.s32.totalorder %s6167_s30, %s5040_s20  ;;  %p5045_p0 = scmp.lt.s32.totalorder %s6167_s30, %s6266_s15 }
0x34de   : > { %p5046_p7 = scmp.lt.s32.totalorder %s5044_s26, %s5040_s20 }
0x34df   : > { %p5042_p6 = pnand %p5041_p4, %p6267_p8 }
0x34e0   : > { %p5047_p2 = por %p5046_p7, %p5045_p0 }
0x34e1   : > { %p5043_p12 = pneg %p5042_p6 }
0x34e3   : > { %p5048_p9 = pnand %p5047_p2, %p5043_p12 }
0x34e5   : > { %5051 = shalt.err (!%p5048_p9)
}
0x34e6   : > { %4510 = dma.vmem_to_hbm [thread:$0]  (%p6267_p8), %s3677_s8, 128, %s6167_s30, %s3663_s2  }
0x34e7 PF: > { %s3688_s10 = sand.u32 1, %s5090_s24   ;;  %p6268_p10 = scmp.ne.s32.totalorder %s6253_s21, 0 }
0x34e8   : > { %p6269_p11 = scmp.ge.s32.totalorder %s5102_s27, 2  ;;  %s3689_s11 = scalar_lea.sflag [#allocation4], %s3688_s10 }
0x34ea   : > { %p4536_p13 = pnand %p6269_p11, %p6268_p10 }
0x34ec   : > { %p4537_p5 = pneg %p4536_p13 }
0x34ee   : > { %5085 = dma.done.wait (%p4537_p5), %s3689_s11, 128  }
0x34ef   : > { %5087 = vsyncadd (%p4537_p5), %s3689_s11, 4294967168  ;;  %s6270_s17 = sld [smem:[#allocation20_spill]]  ;;  %p33_p1 = scmp.ge.s32.totalorder %s5334_s22, 4  }
0x34f0   : > { %s6271_s26 = sld [smem:[#allocation21_spill]]  ;;  %s6272_s24 = smov %s5094_s25 }
0x34f1   : > { %s6274_s27 = smov %s5334_s22  ;;  %35 = sbr.rel (!%p33_p1) target bundleno = 19 (0x13), region = 157 }
0x34f5   : > { %s6273_s25 = smov %s6270_s17 }
0x34f6   :  { %3694 = vsyncpa [#allocation3], 1 }
0x34f7   :  { %3696 = vsyncpa [#allocation3 + $0x1], 1 }
0x34f8   :  { %3697 = vsyncpa [#allocation6], 1 }
0x34f9   :  { %3698 = vsyncpa [#allocation9], 1 }
0x34fa   :  { %3699 = vsyncpa [#allocation12], 1 }
0x34fb   :  { %3700 = vsyncpa [#allocation4], 1 }
0x34fc   :  { %3702 = vsyncpa [#allocation4 + $0x1], 1 }

</bundles_post_ra>
